<compile_context>
chip_gen: v6e
topology: v6e:2x2x1
jax: 0.10.0
libtpu: 0.0.40
codegen_flags: <defaults>
</compile_context>

<pallas_src>
import functools

import jax
import jax.numpy as jnp
from jax import lax
from jax.experimental import pallas as pl
from jax.experimental.pallas import tpu as pltpu


# ------------------------------ small helpers --------------------------------

def _nbytes(shape, dtype):
    n = 1
    for s in shape:
        n *= int(s)
    return n * jnp.dtype(dtype).itemsize


def _vmem_limit(block_bytes, scratch_bytes=0):
    # 2x for double-buffered blocks, 1.5x headroom + pad, clamped to a sane range.
    need = int(2 * block_bytes * 1.5) + scratch_bytes + (4 << 20)
    return max(16 << 20, min(need, 100 << 20))


def _largest_divisor(n, cap, multiple_of=1):
    """Largest divisor of n that is <= cap and a multiple of `multiple_of`
    (falls back to n itself, i.e. a full-extent block)."""
    if n <= cap:
        return n
    for d in range(cap, 0, -1):
        if n % d == 0 and d % multiple_of == 0:
            return d
    return n


# -------------- kernel 1: LayerNorm + layer-0 input->gates (batched) ---------

def _ln_gates_kernel(x_ref, ln_w_ref, ln_b_ref, w_ih_ref, b_ref, out_ref):
    x = x_ref[...]                                       # (R, D) f32
    mean = jnp.mean(x, axis=-1, keepdims=True)
    var = jnp.mean((x - mean) ** 2, axis=-1, keepdims=True)
    xn = (x - mean) * lax.rsqrt(var + 1e-5)              # torch LayerNorm eps
    xn = xn * ln_w_ref[0] + ln_b_ref[0]
    out_ref[...] = (
        jnp.dot(xn.astype(w_ih_ref.dtype), w_ih_ref[...],
                preferred_element_type=jnp.float32)
        + b_ref[0]
    )


def _ln_input_gates(x_rows, ln_w, ln_b, w_ih0, b0):
    rows, D = x_rows.shape
    G = w_ih0.shape[1]                                   # 4*D
    tr = _largest_divisor(rows, 256, multiple_of=8)
    grid = (rows // tr,)
    block_bytes = (
        _nbytes((tr, D), jnp.float32) + 2 * _nbytes((1, D), jnp.float32)
        + _nbytes(w_ih0.shape, w_ih0.dtype) + _nbytes((1, G), jnp.float32)
        + _nbytes((tr, G), jnp.float32)
    )
    return pl.pallas_call(
        _ln_gates_kernel,
        grid_spec=pltpu.PrefetchScalarGridSpec(
            num_scalar_prefetch=0,
            grid=grid,
            in_specs=[
                pl.BlockSpec((tr, D), lambda i: (i, 0)),
                pl.BlockSpec((1, D), lambda i: (0, 0)),
                pl.BlockSpec((1, D), lambda i: (0, 0)),
                pl.BlockSpec((D, G), lambda i: (0, 0)),
                pl.BlockSpec((1, G), lambda i: (0, 0)),
            ],
            out_specs=pl.BlockSpec((tr, G), lambda i: (i, 0)),
        ),
        out_shape=jax.ShapeDtypeStruct((rows, G), jnp.float32),
        compiler_params=pltpu.CompilerParams(
            dimension_semantics=("parallel",),
            vmem_limit_bytes=_vmem_limit(block_bytes),
        ),
    )(x_rows, ln_w, ln_b, w_ih0, b0)


# -------------- kernel 2: the sequential 2-layer LSTM recurrence -------------

def _lstm_recurrence_kernel(
    gin0_ref,   # (TT, B, 4D) f32 : LN(x_t) @ W_ih0 + (b_ih0 + b_hh0), precomputed
    w_hh0_ref,  # (D, 4D)   bf16
    w1_ref,     # (2D, 4D)  bf16 : [W_ih1 ; W_hh1] fused
    b1_ref,     # (1, 4D)   f32  : b_ih1 + b_hh1
    h0_ref,     # (2, B, D) f32
    c0_ref,     # (2, B, D) f32
    hid_ref,    # (TT, B, D) f32 out : layer-1 hidden per step
    hN_ref,     # (2, B, D) f32 out
    cN_ref,     # (2, B, D) f32 out
    h_sc,       # VMEM (2, B, D) f32 scratch (carried across grid steps)
    c_sc,       # VMEM (2, B, D) f32 scratch
    *,
    d_model: int,
    tt: int,
):
    D = d_model
    tb = pl.program_id(0)

    @pl.when(tb == 0)
    def _():
        h_sc[...] = h0_ref[...]
        c_sc[...] = c0_ref[...]

    w_hh0 = w_hh0_ref[...]
    w1 = w1_ref[...]
    b1 = b1_ref[0]

    def gates(g, c_prev):
        # torch gate order: i, f, g, o
        i_g = jax.nn.sigmoid(g[:, 0 * D:1 * D])
        f_g = jax.nn.sigmoid(g[:, 1 * D:2 * D])
        g_g = jnp.tanh(g[:, 2 * D:3 * D])
        o_g = jax.nn.sigmoid(g[:, 3 * D:4 * D])
        c_new = f_g * c_prev + i_g * g_g
        h_new = o_g * jnp.tanh(c_new)
        return h_new, c_new

    def step(i, carry):
        # layer 0: the input->gates matmul was hoisted; only the recurrent
        # (B, D) @ (D, 4D) stays on the serial critical path.
        g0 = gin0_ref[i] + jnp.dot(
            h_sc[0].astype(w_hh0.dtype), w_hh0, preferred_element_type=jnp.float32)
        h0_new, c0_new = gates(g0, c_sc[0])
        h_sc[0] = h0_new
        c_sc[0] = c0_new

        # layer 1: single fused MXU call [h_l0, h_prev] @ [W_ih1 ; W_hh1].
        cat = jnp.concatenate([h0_new, h_sc[1]], axis=-1).astype(w1.dtype)
        g1 = jnp.dot(cat, w1, preferred_element_type=jnp.float32) + b1
        h1_new, c1_new = gates(g1, c_sc[1])
        h_sc[1] = h1_new
        c_sc[1] = c1_new

        hid_ref[i] = h1_new.astype(hid_ref.dtype)
        return carry

    lax.fori_loop(0, tt, step, 0, unroll=True)

    @pl.when(tb == pl.num_programs(0) - 1)
    def _():
        hN_ref[...] = h_sc[...]
        cN_ref[...] = c_sc[...]


def _lstm_recurrence(gin0, w_hh0, w1, b1, h0, c0, *, d_model, time_block):
    T, B, G = gin0.shape
    D = d_model
    L = h0.shape[0]
    tt = _largest_divisor(T, time_block)          # timesteps per grid iteration
    grid = (T // tt,)

    kernel = functools.partial(_lstm_recurrence_kernel, d_model=D, tt=tt)

    const2 = lambda t: (0, 0)
    const3 = lambda t: (0, 0, 0)

    block_bytes = (
        _nbytes((tt, B, G), jnp.float32)
        + _nbytes(w_hh0.shape, w_hh0.dtype) + _nbytes(w1.shape, w1.dtype)
        + _nbytes((1, G), jnp.float32)
        + 4 * _nbytes((L, B, D), jnp.float32)     # h0, c0, hN, cN blocks
        + _nbytes((tt, B, D), jnp.float32)
    )
    scratch_bytes = 2 * _nbytes((L, B, D), jnp.float32)

    hidden, hN, cN = pl.pallas_call(
        kernel,
        grid_spec=pltpu.PrefetchScalarGridSpec(
            num_scalar_prefetch=0,
            grid=grid,
            in_specs=[
                pl.BlockSpec((tt, B, G), lambda t: (t, 0, 0)),   # gin0
                pl.BlockSpec((D, G), const2),                    # w_hh0
                pl.BlockSpec((2 * D, G), const2),                # w1 fused
                pl.BlockSpec((1, G), const2),                    # b1
                pl.BlockSpec((L, B, D), const3),                 # h0
                pl.BlockSpec((L, B, D), const3),                 # c0
            ],
            out_specs=[
                pl.BlockSpec((tt, B, D), lambda t: (t, 0, 0)),   # hidden
                pl.BlockSpec((L, B, D), const3),                 # hN
                pl.BlockSpec((L, B, D), const3),                 # cN
            ],
            scratch_shapes=[
                pltpu.VMEM((L, B, D), jnp.float32),
                pltpu.VMEM((L, B, D), jnp.float32),
            ],
        ),
        out_shape=(
            jax.ShapeDtypeStruct((T, B, D), jnp.float32),
            jax.ShapeDtypeStruct((L, B, D), jnp.float32),
            jax.ShapeDtypeStruct((L, B, D), jnp.float32),
        ),
        # Reuse the h0/c0 HBM buffers for the final-state outputs.
        input_output_aliases={4: 1, 5: 2},
        compiler_params=pltpu.CompilerParams(
            dimension_semantics=("arbitrary",),   # serial time recurrence
            vmem_limit_bytes=_vmem_limit(block_bytes, scratch_bytes),
        ),
    )(gin0, w_hh0, w1, b1, h0, c0)
    return hidden, hN, cN


# -------------- kernel 3: batched vocab projection (tiled over rows x V) -----

def _proj_kernel(h_ref, wp_ref, bp_ref, out_ref):
    out_ref[...] = (
        jnp.dot(h_ref[...].astype(wp_ref.dtype), wp_ref[...],
                preferred_element_type=jnp.float32)
        + bp_ref[0]
    )


def _projection(h_rows, wp, bp):
    rows, D = h_rows.shape
    V = wp.shape[1]
    tr = _largest_divisor(rows, 256, multiple_of=8)
    # NOTE: for real vocab sizes, pad V to a multiple of 128 so it tiles cleanly.
    tv = _largest_divisor(V, 512, multiple_of=128)
    grid = (rows // tr, V // tv)
    block_bytes = (
        _nbytes((tr, D), jnp.float32) + _nbytes((D, tv), wp.dtype)
        + _nbytes((1, tv), jnp.float32) + _nbytes((tr, tv), jnp.float32)
    )
    return pl.pallas_call(
        _proj_kernel,
        grid_spec=pltpu.PrefetchScalarGridSpec(
            num_scalar_prefetch=0,
            grid=grid,
            in_specs=[
                pl.BlockSpec((tr, D), lambda i, j: (i, 0)),
                pl.BlockSpec((D, tv), lambda i, j: (0, j)),
                pl.BlockSpec((1, tv), lambda i, j: (0, j)),
            ],
            out_specs=pl.BlockSpec((tr, tv), lambda i, j: (i, j)),
        ),
        out_shape=jax.ShapeDtypeStruct((rows, V), jnp.float32),
        compiler_params=pltpu.CompilerParams(
            dimension_semantics=("parallel", "parallel"),
            vmem_limit_bytes=_vmem_limit(block_bytes),
        ),
    )(h_rows, wp, bp)


# ------------------------------ full forward ---------------------------------

@functools.partial(jax.jit, static_argnames=("d_model", "vocab_size", "time_block"))
def lstm_decoder_forward(dec_input, h0, c0, params, *, d_model, vocab_size,
                         time_block=8):
    """dec_input: (B, T) int32; h0/c0: (L=2, B, D).  Returns (logits (B,T,V), (hN, cN))."""
    B, T = dec_input.shape
    D = d_model
    V = vocab_size

    # Embedding gather (+ dropout) stays in XLA.
    # TODO(synk): nn.Dropout(0.1) is treated as eval-mode identity (no RNG masking).
    x = jnp.take(params["embedding"], dec_input, axis=0)            # (B, T, D)
    x = jnp.transpose(x, (1, 0, 2)).reshape(T * B, D).astype(jnp.float32)

    # (1) LayerNorm + layer-0 input->gates for ALL timesteps at once.
    gin0 = _ln_input_gates(x, params["ln_w"], params["ln_b"],
                           params["w_ih0"], params["b0"])            # (T*B, 4D)
    gin0 = gin0.reshape(T, B, 4 * D)

    # (2) Serial recurrence (only recurrent matmuls + gate math in the loop).
    hidden, hN, cN = _lstm_recurrence(
        gin0, params["w_hh0"], params["w1"], params["b1"], h0, c0,
        d_model=D, time_block=time_block)                            # (T, B, D)

    # (3) Vocab projection as one big tiled matmul over (T*B, D) @ (D, V).
    logits = _projection(hidden.reshape(T * B, D), params["wp"], params["bp"])
    logits = logits.reshape(T, B, V).transpose(1, 0, 2)              # batch-first

    return logits, (hN, cN)


# ------------------------------ parameters -----------------------------------

def init_params(key, *, vocab_size, d_model):
    """Weights in the layout the kernels expect (transposed / fused, bf16)."""
    D, V = d_model, vocab_size
    ks = jax.random.split(key, 12)
    scale = 0.02

    def rnd(k, shape):
        return (scale * jax.random.normal(k, shape)).astype(jnp.float32)

    # torch layout: weight_ih_l* (4D, D), weight_hh_l* (4D, D), biases (4D,)
    w_ih0 = rnd(ks[1], (4 * D, D)).T                   # (D, 4D)
    w_hh0 = rnd(ks[2], (4 * D, D)).T
    w_ih1 = rnd(ks[3], (4 * D, D)).T
    w_hh1 = rnd(ks[4], (4 * D, D)).T
    b0 = rnd(ks[5], (4 * D,)) + rnd(ks[6], (4 * D,))   # b_ih_l0 + b_hh_l0
    b1 = rnd(ks[9], (4 * D,)) + rnd(ks[10], (4 * D,))  # b_ih_l1 + b_hh_l1
    wp = rnd(ks[7], (V, D)).T                          # (D, V)
    bp = rnd(ks[8], (V,))

    return {
        "embedding": rnd(ks[0], (V, D)),
        "ln_w": jnp.ones((1, D), jnp.float32),
        "ln_b": jnp.zeros((1, D), jnp.float32),
        # bf16 weights (MXU-native, half the VMEM/HBM bytes); f32 biases/state.
        "w_ih0": w_ih0.astype(jnp.bfloat16),
        "w_hh0": w_hh0.astype(jnp.bfloat16),
        "b0": b0.reshape(1, 4 * D),
        "w1": jnp.concatenate([w_ih1, w_hh1], axis=0).astype(jnp.bfloat16),  # (2D, 4D)
        "b1": b1.reshape(1, 4 * D),
        "wp": wp.astype(jnp.bfloat16),
        "bp": bp.reshape(1, V),
    }


# ------------------------- pure-JAX reference (check) ------------------------

def reference_forward(dec_input, h0, c0, params, *, d_model):
    """Plain-JAX forward with the same (bf16-rounded) weights, f32 math."""
    D = d_model
    B, T = dec_input.shape
    f32 = lambda a: a.astype(jnp.float32)

    x = jnp.take(params["embedding"], dec_input, axis=0).astype(jnp.float32)
    mean = x.mean(-1, keepdims=True)
    var = ((x - mean) ** 2).mean(-1, keepdims=True)
    xn = (x - mean) * lax.rsqrt(var + 1e-5) * params["ln_w"][0] + params["ln_b"][0]

    w_ih0, w_hh0 = f32(params["w_ih0"]), f32(params["w_hh0"])
    w1, wp = f32(params["w1"]), f32(params["wp"])
    b0, b1, bp = params["b0"][0], params["b1"][0], params["bp"][0]

    def gates(g, c_prev):
        i_g = jax.nn.sigmoid(g[:, :D])
        f_g = jax.nn.sigmoid(g[:, D:2 * D])
        g_g = jnp.tanh(g[:, 2 * D:3 * D])
        o_g = jax.nn.sigmoid(g[:, 3 * D:])
        c_new = f_g * c_prev + i_g * g_g
        return o_g * jnp.tanh(c_new), c_new

    h = [h0[0], h0[1]]
    c = [c0[0], c0[1]]
    outs = []
    for t in range(T):
        g0 = xn[:, t, :] @ w_ih0 + h[0] @ w_hh0 + b0
        h[0], c[0] = gates(g0, c[0])
        g1 = jnp.concatenate([h[0], h[1]], axis=-1) @ w1 + b1
        h[1], c[1] = gates(g1, c[1])
        outs.append(h[1] @ wp + bp)
    logits = jnp.stack(outs, axis=1)                   # (B, T, V)
    return logits, (jnp.stack(h), jnp.stack(c))


# --------------------------------- demo --------------------------------------

if __name__ == "__main__":
    B, T = 2, 8
    D = 128          # d_model (small stand-in for 256)
    V = 512          # vocab (small stand-in for the BERT vocab)
    L = 2            # layers_num

    key = jax.random.PRNGKey(0)
    k_par, k_tok, k_h, k_c = jax.random.split(key, 4)

    params = init_params(k_par, vocab_size=V, d_model=D)
    dec_input = jax.random.randint(k_tok, (B, T), 0, V, dtype=jnp.int32)
    h0 = (0.1 * jax.random.normal(k_h, (L, B, D))).astype(jnp.float32)
    c0 = (0.1 * jax.random.normal(k_c, (L, B, D))).astype(jnp.float32)

    logits, (hN, cN) = lstm_decoder_forward(
        dec_input, h0, c0, params, d_model=D, vocab_size=V, time_block=4)
    jax.block_until_ready((logits, hN, cN))

    assert logits.shape == (B, T, V)
    assert hN.shape == (L, B, D) and cN.shape == (L, B, D)

    # Numerical sanity check vs. a pure-JAX reference using the same weights.
    ref_logits, (ref_h, ref_c) = reference_forward(dec_input, h0, c0, params,
                                                   d_model=D)
    assert float(jnp.max(jnp.abs(logits - ref_logits))) < 5e-2
    assert float(jnp.max(jnp.abs(hN - ref_h))) < 5e-2
    assert float(jnp.max(jnp.abs(cN - ref_c))) < 5e-2

    print("KERNEL_OK")
</pallas_src>

<mosaic_0001>
module attributes {stable_mosaic.version = 11 : i64} {
  func.func @_proj_kernel(%arg0: i32, %arg1: i32, %arg2: memref<16x128xf32, #tpu.memory_space<vmem>>, %arg3: memref<128x512xbf16, #tpu.memory_space<vmem>>, %arg4: memref<1x512xf32, #tpu.memory_space<vmem>>, %arg5: memref<16x512xf32, #tpu.memory_space<vmem>>) attributes {dimension_semantics = [#tpu.dimension_semantics<parallel>, #tpu.dimension_semantics<parallel>], iteration_bounds = array<i64: 1, 1>, scalar_prefetch = 0 : i64, scratch_operands = 0 : i64, tpu.core_type = #tpu.core_type<tc>, window_params = [{transform_indices = @transform_0, window_bounds = array<i64: 16, 128>}, {transform_indices = @transform_1, window_bounds = array<i64: 128, 512>}, {transform_indices = @transform_2, window_bounds = array<i64: 1, 512>}, {transform_indices = @transform_3, window_bounds = array<i64: 16, 512>}]} {
    %c0 = arith.constant 0 : index
    %c0_0 = arith.constant 0 : index
    %0 = vector.load %arg2[%c0, %c0_0] : memref<16x128xf32, #tpu.memory_space<vmem>>, vector<16x128xf32>
    %1 = arith.truncf %0 : vector<16x128xf32> to vector<16x128xbf16>
    %c0_1 = arith.constant 0 : index
    %c0_2 = arith.constant 0 : index
    %2 = vector.load %arg3[%c0_1, %c0_2] : memref<128x512xbf16, #tpu.memory_space<vmem>>, vector<128x512xbf16>
    %cst = arith.constant dense<0.000000e+00> : vector<16x512xf32>
    %3 = tpu.matmul %1, %2, %cst {dimension_numbers = #tpu.dot_dimension_numbers<[1], [0], [0], [1], [0, 0, 1, 1], [], []>} : vector<16x128xbf16>, vector<128x512xbf16>, vector<16x512xf32> -> vector<16x512xf32>
    %c0_3 = arith.constant 0 : index
    %c0_4 = arith.constant 0 : index
    %4 = vector.load %arg4[%c0_3, %c0_4] : memref<1x512xf32, #tpu.memory_space<vmem>>, vector<1x512xf32>
    %5 = vector.shape_cast %4 : vector<1x512xf32> to vector<512xf32>
    %6 = vector.shape_cast %5 : vector<512xf32> to vector<1x512xf32>
    %7 = vector.broadcast %6 : vector<1x512xf32> to vector<16x512xf32>
    %8 = arith.addf %3, %7 : vector<16x512xf32>
    %c0_5 = arith.constant 0 : index
    %c0_6 = arith.constant 0 : index
    %9 = vector.load %arg5[%c0_5, %c0_6] : memref<16x512xf32, #tpu.memory_space<vmem>>, vector<16x512xf32>
    tpu.vector_store %arg5[%c0_5, %c0_6], %8 {strides = array<i32>} : memref<16x512xf32, #tpu.memory_space<vmem>>, vector<16x512xf32>,
    return
  }
  func.func @transform_0(%arg0: i32, %arg1: i32) -> (i32, i32) {
    %c0_i32 = arith.constant 0 : i32
    %c0_i32_0 = arith.constant 0 : i32
    return %arg0, %c0_i32 : i32, i32
  }
  func.func @transform_1(%arg0: i32, %arg1: i32) -> (i32, i32) {
    %c0_i32 = arith.constant 0 : i32
    %c0_i32_0 = arith.constant 0 : i32
    return %c0_i32, %arg1 : i32, i32
  }
  func.func @transform_2(%arg0: i32, %arg1: i32) -> (i32, i32) {
    %c0_i32 = arith.constant 0 : i32
    %c0_i32_0 = arith.constant 0 : i32
    return %c0_i32, %arg1 : i32, i32
  }
  func.func @transform_3(%arg0: i32, %arg1: i32) -> (i32, i32) {
    %c0_i32 = arith.constant 0 : i32
    return %arg0, %arg1 : i32, i32
  }
}

module attributes {stable_mosaic.version = 11 : i64} {
  func.func @_lstm_recurrence_kernel(%arg0: i32, %arg1: memref<4x2x512xf32, #tpu.memory_space<vmem>>, %arg2: memref<128x512xbf16, #tpu.memory_space<vmem>>, %arg3: memref<256x512xbf16, #tpu.memory_space<vmem>>, %arg4: memref<1x512xf32, #tpu.memory_space<vmem>>, %arg5: memref<2x2x128xf32, #tpu.memory_space<vmem>>, %arg6: memref<2x2x128xf32, #tpu.memory_space<vmem>>, %arg7: memref<4x2x128xf32, #tpu.memory_space<vmem>>, %arg8: memref<2x2x128xf32, #tpu.memory_space<vmem>>, %arg9: memref<2x2x128xf32, #tpu.memory_space<vmem>>, %arg10: memref<2x2x128xf32, #tpu.memory_space<vmem>>, %arg11: memref<2x2x128xf32, #tpu.memory_space<vmem>>) attributes {dimension_semantics = [#tpu.dimension_semantics<arbitrary>], iteration_bounds = array<i64: 2>, scalar_prefetch = 0 : i64, scratch_operands = 2 : i64, tpu.core_type = #tpu.core_type<tc>, window_params = [{transform_indices = @transform_0, window_bounds = array<i64: 4, 2, 512>}, {pipeline_mode = #tpu.pipeline_mode<synchronous>, transform_indices = @transform_1, window_bounds = array<i64: 128, 512>}, {pipeline_mode = #tpu.pipeline_mode<synchronous>, transform_indices = @transform_2, window_bounds = array<i64: 256, 512>}, {pipeline_mode = #tpu.pipeline_mode<synchronous>, transform_indices = @transform_3, window_bounds = array<i64: 1, 512>}, {pipeline_mode = #tpu.pipeline_mode<synchronous>, transform_indices = @transform_4, window_bounds = array<i64: 2, 2, 128>}, {pipeline_mode = #tpu.pipeline_mode<synchronous>, transform_indices = @transform_5, window_bounds = array<i64: 2, 2, 128>}, {transform_indices = @transform_6, window_bounds = array<i64: 4, 2, 128>}, {pipeline_mode = #tpu.pipeline_mode<synchronous>, transform_indices = @transform_7, window_bounds = array<i64: 2, 2, 128>}, {pipeline_mode = #tpu.pipeline_mode<synchronous>, transform_indices = @transform_8, window_bounds = array<i64: 2, 2, 128>}]} {
    %c0_i32 = arith.constant 0 : i32
    %0 = arith.cmpi eq, %arg0, %c0_i32 : i32
    %1 = arith.extui %0 : i1 to i32
    %c0_i32_0 = arith.constant 0 : i32
    %2 = arith.cmpi ne, %1, %c0_i32_0 : i32
    scf.if %2 {
      %c0_151 = arith.constant 0 : index
      %c0_152 = arith.constant 0 : index
      %c0_153 = arith.constant 0 : index
      %354 = vector.load %arg5[%c0_151, %c0_152, %c0_153] : memref<2x2x128xf32, #tpu.memory_space<vmem>>, vector<2x2x128xf32>
      %c0_154 = arith.constant 0 : index
      %c0_155 = arith.constant 0 : index
      %c0_156 = arith.constant 0 : index
      %355 = vector.load %arg10[%c0_154, %c0_155, %c0_156] : memref<2x2x128xf32, #tpu.memory_space<vmem>>, vector<2x2x128xf32>
      tpu.vector_store %arg10[%c0_154, %c0_155, %c0_156], %354 {strides = array<i32>} : memref<2x2x128xf32, #tpu.memory_space<vmem>>, vector<2x2x128xf32>,
      %c0_157 = arith.constant 0 : index
      %c0_158 = arith.constant 0 : index
      %c0_159 = arith.constant 0 : index
      %356 = vector.load %arg6[%c0_157, %c0_158, %c0_159] : memref<2x2x128xf32, #tpu.memory_space<vmem>>, vector<2x2x128xf32>
      %c0_160 = arith.constant 0 : index
      %c0_161 = arith.constant 0 : index
      %c0_162 = arith.constant 0 : index
      %357 = vector.load %arg11[%c0_160, %c0_161, %c0_162] : memref<2x2x128xf32, #tpu.memory_space<vmem>>, vector<2x2x128xf32>
      tpu.vector_store %arg11[%c0_160, %c0_161, %c0_162], %356 {strides = array<i32>} : memref<2x2x128xf32, #tpu.memory_space<vmem>>, vector<2x2x128xf32>,
    } else {
    }
    %c0 = arith.constant 0 : index
    %c0_1 = arith.constant 0 : index
    %3 = vector.load %arg2[%c0, %c0_1] : memref<128x512xbf16, #tpu.memory_space<vmem>>, vector<128x512xbf16>
    %c0_2 = arith.constant 0 : index
    %c0_3 = arith.constant 0 : index
    %4 = vector.load %arg3[%c0_2, %c0_3] : memref<256x512xbf16, #tpu.memory_space<vmem>>, vector<256x512xbf16>
    %c0_4 = arith.constant 0 : index
    %c0_5 = arith.constant 0 : index
    %5 = vector.load %arg4[%c0_4, %c0_5] : memref<1x512xf32, #tpu.memory_space<vmem>>, vector<1x512xf32>
    %6 = vector.shape_cast %5 : vector<1x512xf32> to vector<512xf32>
    %c0_i32_6 = arith.constant 0 : i32
    %7 = arith.index_cast %c0_i32_6 : i32 to index
    %c0_7 = arith.constant 0 : index
    %c0_8 = arith.constant 0 : index
    %8 = vector.load %arg1[%7, %c0_7, %c0_8] : memref<4x2x512xf32, #tpu.memory_space<vmem>>, vector<1x2x512xf32>
    %9 = vector.shape_cast %8 : vector<1x2x512xf32> to vector<2x512xf32>
    %c0_9 = arith.constant 0 : index
    %c0_10 = arith.constant 0 : index
    %c0_11 = arith.constant 0 : index
    %10 = vector.load %arg10[%c0_9, %c0_10, %c0_11] : memref<2x2x128xf32, #tpu.memory_space<vmem>>, vector<1x2x128xf32>
    %11 = vector.shape_cast %10 : vector<1x2x128xf32> to vector<2x128xf32>
    %12 = arith.truncf %11 : vector<2x128xf32> to vector<2x128xbf16>
    %cst = arith.constant dense<0.000000e+00> : vector<2x512xf32>
    %13 = tpu.matmul %12, %3, %cst {dimension_numbers = #tpu.dot_dimension_numbers<[1], [0], [0], [1], [0, 0, 1, 1], [], []>} : vector<2x128xbf16>, vector<128x512xbf16>, vector<2x512xf32> -> vector<2x512xf32>
    %14 = arith.addf %9, %13 : vector<2x512xf32>
    %c0_12 = arith.constant 0 : index
    %c0_13 = arith.constant 0 : index
    %c0_14 = arith.constant 0 : index
    %15 = vector.load %arg11[%c0_12, %c0_13, %c0_14] : memref<2x2x128xf32, #tpu.memory_space<vmem>>, vector<1x2x128xf32>
    %16 = vector.shape_cast %15 : vector<1x2x128xf32> to vector<2x128xf32>
    %17 = vector.extract_strided_slice %14 {offsets = [0, 0], sizes = [2, 128], strides = [1, 1]} : vector<2x512xf32> to vector<2x128xf32>
    %18 = arith.negf %17 : vector<2x128xf32>
    %19 = math.exp %18 : vector<2x128xf32>
    %cst_15 = arith.constant 1.000000e+00 : f32
    %20 = vector.broadcast %cst_15 : f32 to vector<2x128xf32>
    %21 = arith.addf %20, %19 : vector<2x128xf32>
    %22 = arith.divf %20, %21 : vector<2x128xf32>
    %23 = vector.extract_strided_slice %14 {offsets = [0, 128], sizes = [2, 128], strides = [1, 1]} : vector<2x512xf32> to vector<2x128xf32>
    %24 = arith.negf %23 : vector<2x128xf32>
    %25 = math.exp %24 : vector<2x128xf32>
    %cst_16 = arith.constant 1.000000e+00 : f32
    %26 = vector.broadcast %cst_16 : f32 to vector<2x128xf32>
    %27 = arith.addf %26, %25 : vector<2x128xf32>
    %28 = arith.divf %26, %27 : vector<2x128xf32>
    %29 = vector.extract_strided_slice %14 {offsets = [0, 256], sizes = [2, 128], strides = [1, 1]} : vector<2x512xf32> to vector<2x128xf32>
    %30 = math.tanh %29 : vector<2x128xf32>
    %31 = vector.extract_strided_slice %14 {offsets = [0, 384], sizes = [2, 128], strides = [1, 1]} : vector<2x512xf32> to vector<2x128xf32>
    %32 = arith.negf %31 : vector<2x128xf32>
    %33 = math.exp %32 : vector<2x128xf32>
    %cst_17 = arith.constant 1.000000e+00 : f32
    %34 = vector.broadcast %cst_17 : f32 to vector<2x128xf32>
    %35 = arith.addf %34, %33 : vector<2x128xf32>
    %36 = arith.divf %34, %35 : vector<2x128xf32>
    %37 = arith.mulf %28, %16 : vector<2x128xf32>
    %38 = arith.mulf %22, %30 : vector<2x128xf32>
    %39 = arith.addf %37, %38 : vector<2x128xf32>
    %40 = math.tanh %39 : vector<2x128xf32>
    %41 = arith.mulf %36, %40 : vector<2x128xf32>
    %c0_18 = arith.constant 0 : index
    %c0_19 = arith.constant 0 : index
    %c0_20 = arith.constant 0 : index
    %42 = vector.load %arg10[%c0_18, %c0_19, %c0_20] : memref<2x2x128xf32, #tpu.memory_space<vmem>>, vector<1x2x128xf32>
    %43 = vector.shape_cast %42 : vector<1x2x128xf32> to vector<2x128xf32>
    %44 = vector.shape_cast %41 : vector<2x128xf32> to vector<1x2x128xf32>
    tpu.vector_store %arg10[%c0_18, %c0_19, %c0_20], %44 {strides = array<i32>} : memref<2x2x128xf32, #tpu.memory_space<vmem>>, vector<1x2x128xf32>,
    %c0_21 = arith.constant 0 : index
    %c0_22 = arith.constant 0 : index
    %c0_23 = arith.constant 0 : index
    %45 = vector.load %arg11[%c0_21, %c0_22, %c0_23] : memref<2x2x128xf32, #tpu.memory_space<vmem>>, vector<1x2x128xf32>
    %46 = vector.shape_cast %45 : vector<1x2x128xf32> to vector<2x128xf32>
    %47 = vector.shape_cast %39 : vector<2x128xf32> to vector<1x2x128xf32>
    tpu.vector_store %arg11[%c0_21, %c0_22, %c0_23], %47 {strides = array<i32>} : memref<2x2x128xf32, #tpu.memory_space<vmem>>, vector<1x2x128xf32>,
    %c1 = arith.constant 1 : index
    %c0_24 = arith.constant 0 : index
    %c0_25 = arith.constant 0 : index
    %48 = vector.load %arg10[%c1, %c0_24, %c0_25] : memref<2x2x128xf32, #tpu.memory_space<vmem>>, vector<1x2x128xf32>
    %49 = vector.shape_cast %48 : vector<1x2x128xf32> to vector<2x128xf32>
    %50 = tpu.concatenate %41, %49 in 1 : vector<2x128xf32>, vector<2x128xf32> -> vector<2x256xf32>
    %51 = arith.truncf %50 : vector<2x256xf32> to vector<2x256xbf16>
    %cst_26 = arith.constant dense<0.000000e+00> : vector<2x512xf32>
    %52 = tpu.matmul %51, %4, %cst_26 {dimension_numbers = #tpu.dot_dimension_numbers<[1], [0], [0], [1], [0, 0, 1, 1], [], []>} : vector<2x256xbf16>, vector<256x512xbf16>, vector<2x512xf32> -> vector<2x512xf32>
    %53 = vector.shape_cast %6 : vector<512xf32> to vector<1x512xf32>
    %54 = vector.broadcast %53 : vector<1x512xf32> to vector<2x512xf32>
    %55 = arith.addf %52, %54 : vector<2x512xf32>
    %c1_27 = arith.constant 1 : index
    %c0_28 = arith.constant 0 : index
    %c0_29 = arith.constant 0 : index
    %56 = vector.load %arg11[%c1_27, %c0_28, %c0_29] : memref<2x2x128xf32, #tpu.memory_space<vmem>>, vector<1x2x128xf32>
    %57 = vector.shape_cast %56 : vector<1x2x128xf32> to vector<2x128xf32>
    %58 = vector.extract_strided_slice %55 {offsets = [0, 0], sizes = [2, 128], strides = [1, 1]} : vector<2x512xf32> to vector<2x128xf32>
    %59 = arith.negf %58 : vector<2x128xf32>
    %60 = math.exp %59 : vector<2x128xf32>
    %cst_30 = arith.constant 1.000000e+00 : f32
    %61 = vector.broadcast %cst_30 : f32 to vector<2x128xf32>
    %62 = arith.addf %61, %60 : vector<2x128xf32>
    %63 = arith.divf %61, %62 : vector<2x128xf32>
    %64 = vector.extract_strided_slice %55 {offsets = [0, 128], sizes = [2, 128], strides = [1, 1]} : vector<2x512xf32> to vector<2x128xf32>
    %65 = arith.negf %64 : vector<2x128xf32>
    %66 = math.exp %65 : vector<2x128xf32>
    %cst_31 = arith.constant 1.000000e+00 : f32
    %67 = vector.broadcast %cst_31 : f32 to vector<2x128xf32>
    %68 = arith.addf %67, %66 : vector<2x128xf32>
    %69 = arith.divf %67, %68 : vector<2x128xf32>
    %70 = vector.extract_strided_slice %55 {offsets = [0, 256], sizes = [2, 128], strides = [1, 1]} : vector<2x512xf32> to vector<2x128xf32>
    %71 = math.tanh %70 : vector<2x128xf32>
    %72 = vector.extract_strided_slice %55 {offsets = [0, 384], sizes = [2, 128], strides = [1, 1]} : vector<2x512xf32> to vector<2x128xf32>
    %73 = arith.negf %72 : vector<2x128xf32>
    %74 = math.exp %73 : vector<2x128xf32>
    %cst_32 = arith.constant 1.000000e+00 : f32
    %75 = vector.broadcast %cst_32 : f32 to vector<2x128xf32>
    %76 = arith.addf %75, %74 : vector<2x128xf32>
    %77 = arith.divf %75, %76 : vector<2x128xf32>
    %78 = arith.mulf %69, %57 : vector<2x128xf32>
    %79 = arith.mulf %63, %71 : vector<2x128xf32>
    %80 = arith.addf %78, %79 : vector<2x128xf32>
    %81 = math.tanh %80 : vector<2x128xf32>
    %82 = arith.mulf %77, %81 : vector<2x128xf32>
    %c1_33 = arith.constant 1 : index
    %c0_34 = arith.constant 0 : index
    %c0_35 = arith.constant 0 : index
    %83 = vector.load %arg10[%c1_33, %c0_34, %c0_35] : memref<2x2x128xf32, #tpu.memory_space<vmem>>, vector<1x2x128xf32>
    %84 = vector.shape_cast %83 : vector<1x2x128xf32> to vector<2x128xf32>
    %85 = vector.shape_cast %82 : vector<2x128xf32> to vector<1x2x128xf32>
    tpu.vector_store %arg10[%c1_33, %c0_34, %c0_35], %85 {strides = array<i32>} : memref<2x2x128xf32, #tpu.memory_space<vmem>>, vector<1x2x128xf32>,
    %c1_36 = arith.constant 1 : index
    %c0_37 = arith.constant 0 : index
    %c0_38 = arith.constant 0 : index
    %86 = vector.load %arg11[%c1_36, %c0_37, %c0_38] : memref<2x2x128xf32, #tpu.memory_space<vmem>>, vector<1x2x128xf32>
    %87 = vector.shape_cast %86 : vector<1x2x128xf32> to vector<2x128xf32>
    %88 = vector.shape_cast %80 : vector<2x128xf32> to vector<1x2x128xf32>
    tpu.vector_store %arg11[%c1_36, %c0_37, %c0_38], %88 {strides = array<i32>} : memref<2x2x128xf32, #tpu.memory_space<vmem>>, vector<1x2x128xf32>,
    %89 = arith.index_cast %c0_i32_6 : i32 to index
    %c0_39 = arith.constant 0 : index
    %c0_40 = arith.constant 0 : index
    %90 = vector.load %arg7[%89, %c0_39, %c0_40] : memref<4x2x128xf32, #tpu.memory_space<vmem>>, vector<1x2x128xf32>
    %91 = vector.shape_cast %90 : vector<1x2x128xf32> to vector<2x128xf32>
    %92 = vector.shape_cast %82 : vector<2x128xf32> to vector<1x2x128xf32>
    tpu.vector_store %arg7[%89, %c0_39, %c0_40], %92 {strides = array<i32>} : memref<4x2x128xf32, #tpu.memory_space<vmem>>, vector<1x2x128xf32>,
    %c1_i32 = arith.constant 1 : i32
    %93 = arith.index_cast %c1_i32 : i32 to index
    %c0_41 = arith.constant 0 : index
    %c0_42 = arith.constant 0 : index
    %94 = vector.load %arg1[%93, %c0_41, %c0_42] : memref<4x2x512xf32, #tpu.memory_space<vmem>>, vector<1x2x512xf32>
    %95 = vector.shape_cast %94 : vector<1x2x512xf32> to vector<2x512xf32>
    %c0_43 = arith.constant 0 : index
    %c0_44 = arith.constant 0 : index
    %c0_45 = arith.constant 0 : index
    %96 = vector.load %arg10[%c0_43, %c0_44, %c0_45] : memref<2x2x128xf32, #tpu.memory_space<vmem>>, vector<1x2x128xf32>
    %97 = vector.shape_cast %96 : vector<1x2x128xf32> to vector<2x128xf32>
    %98 = arith.truncf %97 : vector<2x128xf32> to vector<2x128xbf16>
    %cst_46 = arith.constant dense<0.000000e+00> : vector<2x512xf32>
    %99 = tpu.matmul %98, %3, %cst_46 {dimension_numbers = #tpu.dot_dimension_numbers<[1], [0], [0], [1], [0, 0, 1, 1], [], []>} : vector<2x128xbf16>, vector<128x512xbf16>, vector<2x512xf32> -> vector<2x512xf32>
    %100 = arith.addf %95, %99 : vector<2x512xf32>
    %c0_47 = arith.constant 0 : index
    %c0_48 = arith.constant 0 : index
    %c0_49 = arith.constant 0 : index
    %101 = vector.load %arg11[%c0_47, %c0_48, %c0_49] : memref<2x2x128xf32, #tpu.memory_space<vmem>>, vector<1x2x128xf32>
    %102 = vector.shape_cast %101 : vector<1x2x128xf32> to vector<2x128xf32>
    %103 = vector.extract_strided_slice %100 {offsets = [0, 0], sizes = [2, 128], strides = [1, 1]} : vector<2x512xf32> to vector<2x128xf32>
    %104 = arith.negf %103 : vector<2x128xf32>
    %105 = math.exp %104 : vector<2x128xf32>
    %cst_50 = arith.constant 1.000000e+00 : f32
    %106 = vector.broadcast %cst_50 : f32 to vector<2x128xf32>
    %107 = arith.addf %106, %105 : vector<2x128xf32>
    %108 = arith.divf %106, %107 : vector<2x128xf32>
    %109 = vector.extract_strided_slice %100 {offsets = [0, 128], sizes = [2, 128], strides = [1, 1]} : vector<2x512xf32> to vector<2x128xf32>
    %110 = arith.negf %109 : vector<2x128xf32>
    %111 = math.exp %110 : vector<2x128xf32>
    %cst_51 = arith.constant 1.000000e+00 : f32
    %112 = vector.broadcast %cst_51 : f32 to vector<2x128xf32>
    %113 = arith.addf %112, %111 : vector<2x128xf32>
    %114 = arith.divf %112, %113 : vector<2x128xf32>
    %115 = vector.extract_strided_slice %100 {offsets = [0, 256], sizes = [2, 128], strides = [1, 1]} : vector<2x512xf32> to vector<2x128xf32>
    %116 = math.tanh %115 : vector<2x128xf32>
    %117 = vector.extract_strided_slice %100 {offsets = [0, 384], sizes = [2, 128], strides = [1, 1]} : vector<2x512xf32> to vector<2x128xf32>
    %118 = arith.negf %117 : vector<2x128xf32>
    %119 = math.exp %118 : vector<2x128xf32>
    %cst_52 = arith.constant 1.000000e+00 : f32
    %120 = vector.broadcast %cst_52 : f32 to vector<2x128xf32>
    %121 = arith.addf %120, %119 : vector<2x128xf32>
    %122 = arith.divf %120, %121 : vector<2x128xf32>
    %123 = arith.mulf %114, %102 : vector<2x128xf32>
    %124 = arith.mulf %108, %116 : vector<2x128xf32>
    %125 = arith.addf %123, %124 : vector<2x128xf32>
    %126 = math.tanh %125 : vector<2x128xf32>
    %127 = arith.mulf %122, %126 : vector<2x128xf32>
    %c0_53 = arith.constant 0 : index
    %c0_54 = arith.constant 0 : index
    %c0_55 = arith.constant 0 : index
    %128 = vector.load %arg10[%c0_53, %c0_54, %c0_55] : memref<2x2x128xf32, #tpu.memory_space<vmem>>, vector<1x2x128xf32>
    %129 = vector.shape_cast %128 : vector<1x2x128xf32> to vector<2x128xf32>
    %130 = vector.shape_cast %127 : vector<2x128xf32> to vector<1x2x128xf32>
    tpu.vector_store %arg10[%c0_53, %c0_54, %c0_55], %130 {strides = array<i32>} : memref<2x2x128xf32, #tpu.memory_space<vmem>>, vector<1x2x128xf32>,
    %c0_56 = arith.constant 0 : index
    %c0_57 = arith.constant 0 : index
    %c0_58 = arith.constant 0 : index
    %131 = vector.load %arg11[%c0_56, %c0_57, %c0_58] : memref<2x2x128xf32, #tpu.memory_space<vmem>>, vector<1x2x128xf32>
    %132 = vector.shape_cast %131 : vector<1x2x128xf32> to vector<2x128xf32>
    %133 = vector.shape_cast %125 : vector<2x128xf32> to vector<1x2x128xf32>
    tpu.vector_store %arg11[%c0_56, %c0_57, %c0_58], %133 {strides = array<i32>} : memref<2x2x128xf32, #tpu.memory_space<vmem>>, vector<1x2x128xf32>,
    %c1_59 = arith.constant 1 : index
    %c0_60 = arith.constant 0 : index
    %c0_61 = arith.constant 0 : index
    %134 = vector.load %arg10[%c1_59, %c0_60, %c0_61] : memref<2x2x128xf32, #tpu.memory_space<vmem>>, vector<1x2x128xf32>
    %135 = vector.shape_cast %134 : vector<1x2x128xf32> to vector<2x128xf32>
    %136 = tpu.concatenate %127, %135 in 1 : vector<2x128xf32>, vector<2x128xf32> -> vector<2x256xf32>
    %137 = arith.truncf %136 : vector<2x256xf32> to vector<2x256xbf16>
    %cst_62 = arith.constant dense<0.000000e+00> : vector<2x512xf32>
    %138 = tpu.matmul %137, %4, %cst_62 {dimension_numbers = #tpu.dot_dimension_numbers<[1], [0], [0], [1], [0, 0, 1, 1], [], []>} : vector<2x256xbf16>, vector<256x512xbf16>, vector<2x512xf32> -> vector<2x512xf32>
    %139 = vector.shape_cast %6 : vector<512xf32> to vector<1x512xf32>
    %140 = vector.broadcast %139 : vector<1x512xf32> to vector<2x512xf32>
    %141 = arith.addf %138, %140 : vector<2x512xf32>
    %c1_63 = arith.constant 1 : index
    %c0_64 = arith.constant 0 : index
    %c0_65 = arith.constant 0 : index
    %142 = vector.load %arg11[%c1_63, %c0_64, %c0_65] : memref<2x2x128xf32, #tpu.memory_space<vmem>>, vector<1x2x128xf32>
    %143 = vector.shape_cast %142 : vector<1x2x128xf32> to vector<2x128xf32>
    %144 = vector.extract_strided_slice %141 {offsets = [0, 0], sizes = [2, 128], strides = [1, 1]} : vector<2x512xf32> to vector<2x128xf32>
    %145 = arith.negf %144 : vector<2x128xf32>
    %146 = math.exp %145 : vector<2x128xf32>
    %cst_66 = arith.constant 1.000000e+00 : f32
    %147 = vector.broadcast %cst_66 : f32 to vector<2x128xf32>
    %148 = arith.addf %147, %146 : vector<2x128xf32>
    %149 = arith.divf %147, %148 : vector<2x128xf32>
    %150 = vector.extract_strided_slice %141 {offsets = [0, 128], sizes = [2, 128], strides = [1, 1]} : vector<2x512xf32> to vector<2x128xf32>
    %151 = arith.negf %150 : vector<2x128xf32>
    %152 = math.exp %151 : vector<2x128xf32>
    %cst_67 = arith.constant 1.000000e+00 : f32
    %153 = vector.broadcast %cst_67 : f32 to vector<2x128xf32>
    %154 = arith.addf %153, %152 : vector<2x128xf32>
    %155 = arith.divf %153, %154 : vector<2x128xf32>
    %156 = vector.extract_strided_slice %141 {offsets = [0, 256], sizes = [2, 128], strides = [1, 1]} : vector<2x512xf32> to vector<2x128xf32>
    %157 = math.tanh %156 : vector<2x128xf32>
    %158 = vector.extract_strided_slice %141 {offsets = [0, 384], sizes = [2, 128], strides = [1, 1]} : vector<2x512xf32> to vector<2x128xf32>
    %159 = arith.negf %158 : vector<2x128xf32>
    %160 = math.exp %159 : vector<2x128xf32>
    %cst_68 = arith.constant 1.000000e+00 : f32
    %161 = vector.broadcast %cst_68 : f32 to vector<2x128xf32>
    %162 = arith.addf %161, %160 : vector<2x128xf32>
    %163 = arith.divf %161, %162 : vector<2x128xf32>
    %164 = arith.mulf %155, %143 : vector<2x128xf32>
    %165 = arith.mulf %149, %157 : vector<2x128xf32>
    %166 = arith.addf %164, %165 : vector<2x128xf32>
    %167 = math.tanh %166 : vector<2x128xf32>
    %168 = arith.mulf %163, %167 : vector<2x128xf32>
    %c1_69 = arith.constant 1 : index
    %c0_70 = arith.constant 0 : index
    %c0_71 = arith.constant 0 : index
    %169 = vector.load %arg10[%c1_69, %c0_70, %c0_71] : memref<2x2x128xf32, #tpu.memory_space<vmem>>, vector<1x2x128xf32>
    %170 = vector.shape_cast %169 : vector<1x2x128xf32> to vector<2x128xf32>
    %171 = vector.shape_cast %168 : vector<2x128xf32> to vector<1x2x128xf32>
    tpu.vector_store %arg10[%c1_69, %c0_70, %c0_71], %171 {strides = array<i32>} : memref<2x2x128xf32, #tpu.memory_space<vmem>>, vector<1x2x128xf32>,
    %c1_72 = arith.constant 1 : index
    %c0_73 = arith.constant 0 : index
    %c0_74 = arith.constant 0 : index
    %172 = vector.load %arg11[%c1_72, %c0_73, %c0_74] : memref<2x2x128xf32, #tpu.memory_space<vmem>>, vector<1x2x128xf32>
    %173 = vector.shape_cast %172 : vector<1x2x128xf32> to vector<2x128xf32>
    %174 = vector.shape_cast %166 : vector<2x128xf32> to vector<1x2x128xf32>
    tpu.vector_store %arg11[%c1_72, %c0_73, %c0_74], %174 {strides = array<i32>} : memref<2x2x128xf32, #tpu.memory_space<vmem>>, vector<1x2x128xf32>,
    %175 = arith.index_cast %c1_i32 : i32 to index
    %c0_75 = arith.constant 0 : index
    %c0_76 = arith.constant 0 : index
    %176 = vector.load %arg7[%175, %c0_75, %c0_76] : memref<4x2x128xf32, #tpu.memory_space<vmem>>, vector<1x2x128xf32>
    %177 = vector.shape_cast %176 : vector<1x2x128xf32> to vector<2x128xf32>
    %178 = vector.shape_cast %168 : vector<2x128xf32> to vector<1x2x128xf32>
    tpu.vector_store %arg7[%175, %c0_75, %c0_76], %178 {strides = array<i32>} : memref<4x2x128xf32, #tpu.memory_space<vmem>>, vector<1x2x128xf32>,
    %c2_i32 = arith.constant 2 : i32
    %179 = arith.index_cast %c2_i32 : i32 to index
    %c0_77 = arith.constant 0 : index
    %c0_78 = arith.constant 0 : index
    %180 = vector.load %arg1[%179, %c0_77, %c0_78] : memref<4x2x512xf32, #tpu.memory_space<vmem>>, vector<1x2x512xf32>
    %181 = vector.shape_cast %180 : vector<1x2x512xf32> to vector<2x512xf32>
    %c0_79 = arith.constant 0 : index
    %c0_80 = arith.constant 0 : index
    %c0_81 = arith.constant 0 : index
    %182 = vector.load %arg10[%c0_79, %c0_80, %c0_81] : memref<2x2x128xf32, #tpu.memory_space<vmem>>, vector<1x2x128xf32>
    %183 = vector.shape_cast %182 : vector<1x2x128xf32> to vector<2x128xf32>
    %184 = arith.truncf %183 : vector<2x128xf32> to vector<2x128xbf16>
    %cst_82 = arith.constant dense<0.000000e+00> : vector<2x512xf32>
    %185 = tpu.matmul %184, %3, %cst_82 {dimension_numbers = #tpu.dot_dimension_numbers<[1], [0], [0], [1], [0, 0, 1, 1], [], []>} : vector<2x128xbf16>, vector<128x512xbf16>, vector<2x512xf32> -> vector<2x512xf32>
    %186 = arith.addf %181, %185 : vector<2x512xf32>
    %c0_83 = arith.constant 0 : index
    %c0_84 = arith.constant 0 : index
    %c0_85 = arith.constant 0 : index
    %187 = vector.load %arg11[%c0_83, %c0_84, %c0_85] : memref<2x2x128xf32, #tpu.memory_space<vmem>>, vector<1x2x128xf32>
    %188 = vector.shape_cast %187 : vector<1x2x128xf32> to vector<2x128xf32>
    %189 = vector.extract_strided_slice %186 {offsets = [0, 0], sizes = [2, 128], strides = [1, 1]} : vector<2x512xf32> to vector<2x128xf32>
    %190 = arith.negf %189 : vector<2x128xf32>
    %191 = math.exp %190 : vector<2x128xf32>
    %cst_86 = arith.constant 1.000000e+00 : f32
    %192 = vector.broadcast %cst_86 : f32 to vector<2x128xf32>
    %193 = arith.addf %192, %191 : vector<2x128xf32>
    %194 = arith.divf %192, %193 : vector<2x128xf32>
    %195 = vector.extract_strided_slice %186 {offsets = [0, 128], sizes = [2, 128], strides = [1, 1]} : vector<2x512xf32> to vector<2x128xf32>
    %196 = arith.negf %195 : vector<2x128xf32>
    %197 = math.exp %196 : vector<2x128xf32>
    %cst_87 = arith.constant 1.000000e+00 : f32
    %198 = vector.broadcast %cst_87 : f32 to vector<2x128xf32>
    %199 = arith.addf %198, %197 : vector<2x128xf32>
    %200 = arith.divf %198, %199 : vector<2x128xf32>
    %201 = vector.extract_strided_slice %186 {offsets = [0, 256], sizes = [2, 128], strides = [1, 1]} : vector<2x512xf32> to vector<2x128xf32>
    %202 = math.tanh %201 : vector<2x128xf32>
    %203 = vector.extract_strided_slice %186 {offsets = [0, 384], sizes = [2, 128], strides = [1, 1]} : vector<2x512xf32> to vector<2x128xf32>
    %204 = arith.negf %203 : vector<2x128xf32>
    %205 = math.exp %204 : vector<2x128xf32>
    %cst_88 = arith.constant 1.000000e+00 : f32
    %206 = vector.broadcast %cst_88 : f32 to vector<2x128xf32>
    %207 = arith.addf %206, %205 : vector<2x128xf32>
    %208 = arith.divf %206, %207 : vector<2x128xf32>
    %209 = arith.mulf %200, %188 : vector<2x128xf32>
    %210 = arith.mulf %194, %202 : vector<2x128xf32>
    %211 = arith.addf %209, %210 : vector<2x128xf32>
    %212 = math.tanh %211 : vector<2x128xf32>
    %213 = arith.mulf %208, %212 : vector<2x128xf32>
    %c0_89 = arith.constant 0 : index
    %c0_90 = arith.constant 0 : index
    %c0_91 = arith.constant 0 : index
    %214 = vector.load %arg10[%c0_89, %c0_90, %c0_91] : memref<2x2x128xf32, #tpu.memory_space<vmem>>, vector<1x2x128xf32>
    %215 = vector.shape_cast %214 : vector<1x2x128xf32> to vector<2x128xf32>
    %216 = vector.shape_cast %213 : vector<2x128xf32> to vector<1x2x128xf32>
    tpu.vector_store %arg10[%c0_89, %c0_90, %c0_91], %216 {strides = array<i32>} : memref<2x2x128xf32, #tpu.memory_space<vmem>>, vector<1x2x128xf32>,
    %c0_92 = arith.constant 0 : index
    %c0_93 = arith.constant 0 : index
    %c0_94 = arith.constant 0 : index
    %217 = vector.load %arg11[%c0_92, %c0_93, %c0_94] : memref<2x2x128xf32, #tpu.memory_space<vmem>>, vector<1x2x128xf32>
    %218 = vector.shape_cast %217 : vector<1x2x128xf32> to vector<2x128xf32>
    %219 = vector.shape_cast %211 : vector<2x128xf32> to vector<1x2x128xf32>
    tpu.vector_store %arg11[%c0_92, %c0_93, %c0_94], %219 {strides = array<i32>} : memref<2x2x128xf32, #tpu.memory_space<vmem>>, vector<1x2x128xf32>,
    %c1_95 = arith.constant 1 : index
    %c0_96 = arith.constant 0 : index
    %c0_97 = arith.constant 0 : index
    %220 = vector.load %arg10[%c1_95, %c0_96, %c0_97] : memref<2x2x128xf32, #tpu.memory_space<vmem>>, vector<1x2x128xf32>
    %221 = vector.shape_cast %220 : vector<1x2x128xf32> to vector<2x128xf32>
    %222 = tpu.concatenate %213, %221 in 1 : vector<2x128xf32>, vector<2x128xf32> -> vector<2x256xf32>
    %223 = arith.truncf %222 : vector<2x256xf32> to vector<2x256xbf16>
    %cst_98 = arith.constant dense<0.000000e+00> : vector<2x512xf32>
    %224 = tpu.matmul %223, %4, %cst_98 {dimension_numbers = #tpu.dot_dimension_numbers<[1], [0], [0], [1], [0, 0, 1, 1], [], []>} : vector<2x256xbf16>, vector<256x512xbf16>, vector<2x512xf32> -> vector<2x512xf32>
    %225 = vector.shape_cast %6 : vector<512xf32> to vector<1x512xf32>
    %226 = vector.broadcast %225 : vector<1x512xf32> to vector<2x512xf32>
    %227 = arith.addf %224, %226 : vector<2x512xf32>
    %c1_99 = arith.constant 1 : index
    %c0_100 = arith.constant 0 : index
    %c0_101 = arith.constant 0 : index
    %228 = vector.load %arg11[%c1_99, %c0_100, %c0_101] : memref<2x2x128xf32, #tpu.memory_space<vmem>>, vector<1x2x128xf32>
    %229 = vector.shape_cast %228 : vector<1x2x128xf32> to vector<2x128xf32>
    %230 = vector.extract_strided_slice %227 {offsets = [0, 0], sizes = [2, 128], strides = [1, 1]} : vector<2x512xf32> to vector<2x128xf32>
    %231 = arith.negf %230 : vector<2x128xf32>
    %232 = math.exp %231 : vector<2x128xf32>
    %cst_102 = arith.constant 1.000000e+00 : f32
    %233 = vector.broadcast %cst_102 : f32 to vector<2x128xf32>
    %234 = arith.addf %233, %232 : vector<2x128xf32>
    %235 = arith.divf %233, %234 : vector<2x128xf32>
    %236 = vector.extract_strided_slice %227 {offsets = [0, 128], sizes = [2, 128], strides = [1, 1]} : vector<2x512xf32> to vector<2x128xf32>
    %237 = arith.negf %236 : vector<2x128xf32>
    %238 = math.exp %237 : vector<2x128xf32>
    %cst_103 = arith.constant 1.000000e+00 : f32
    %239 = vector.broadcast %cst_103 : f32 to vector<2x128xf32>
    %240 = arith.addf %239, %238 : vector<2x128xf32>
    %241 = arith.divf %239, %240 : vector<2x128xf32>
    %242 = vector.extract_strided_slice %227 {offsets = [0, 256], sizes = [2, 128], strides = [1, 1]} : vector<2x512xf32> to vector<2x128xf32>
    %243 = math.tanh %242 : vector<2x128xf32>
    %244 = vector.extract_strided_slice %227 {offsets = [0, 384], sizes = [2, 128], strides = [1, 1]} : vector<2x512xf32> to vector<2x128xf32>
    %245 = arith.negf %244 : vector<2x128xf32>
    %246 = math.exp %245 : vector<2x128xf32>
    %cst_104 = arith.constant 1.000000e+00 : f32
    %247 = vector.broadcast %cst_104 : f32 to vector<2x128xf32>
    %248 = arith.addf %247, %246 : vector<2x128xf32>
    %249 = arith.divf %247, %248 : vector<2x128xf32>
    %250 = arith.mulf %241, %229 : vector<2x128xf32>
    %251 = arith.mulf %235, %243 : vector<2x128xf32>
    %252 = arith.addf %250, %251 : vector<2x128xf32>
    %253 = math.tanh %252 : vector<2x128xf32>
    %254 = arith.mulf %249, %253 : vector<2x128xf32>
    %c1_105 = arith.constant 1 : index
    %c0_106 = arith.constant 0 : index
    %c0_107 = arith.constant 0 : index
    %255 = vector.load %arg10[%c1_105, %c0_106, %c0_107] : memref<2x2x128xf32, #tpu.memory_space<vmem>>, vector<1x2x128xf32>
    %256 = vector.shape_cast %255 : vector<1x2x128xf32> to vector<2x128xf32>
    %257 = vector.shape_cast %254 : vector<2x128xf32> to vector<1x2x128xf32>
    tpu.vector_store %arg10[%c1_105, %c0_106, %c0_107], %257 {strides = array<i32>} : memref<2x2x128xf32, #tpu.memory_space<vmem>>, vector<1x2x128xf32>,
    %c1_108 = arith.constant 1 : index
    %c0_109 = arith.constant 0 : index
    %c0_110 = arith.constant 0 : index
    %258 = vector.load %arg11[%c1_108, %c0_109, %c0_110] : memref<2x2x128xf32, #tpu.memory_space<vmem>>, vector<1x2x128xf32>
    %259 = vector.shape_cast %258 : vector<1x2x128xf32> to vector<2x128xf32>
    %260 = vector.shape_cast %252 : vector<2x128xf32> to vector<1x2x128xf32>
    tpu.vector_store %arg11[%c1_108, %c0_109, %c0_110], %260 {strides = array<i32>} : memref<2x2x128xf32, #tpu.memory_space<vmem>>, vector<1x2x128xf32>,
    %261 = arith.index_cast %c2_i32 : i32 to index
    %c0_111 = arith.constant 0 : index
    %c0_112 = arith.constant 0 : index
    %262 = vector.load %arg7[%261, %c0_111, %c0_112] : memref<4x2x128xf32, #tpu.memory_space<vmem>>, vector<1x2x128xf32>
    %263 = vector.shape_cast %262 : vector<1x2x128xf32> to vector<2x128xf32>
    %264 = vector.shape_cast %254 : vector<2x128xf32> to vector<1x2x128xf32>
    tpu.vector_store %arg7[%261, %c0_111, %c0_112], %264 {strides = array<i32>} : memref<4x2x128xf32, #tpu.memory_space<vmem>>, vector<1x2x128xf32>,
    %c3_i32 = arith.constant 3 : i32
    %265 = arith.index_cast %c3_i32 : i32 to index
    %c0_113 = arith.constant 0 : index
    %c0_114 = arith.constant 0 : index
    %266 = vector.load %arg1[%265, %c0_113, %c0_114] : memref<4x2x512xf32, #tpu.memory_space<vmem>>, vector<1x2x512xf32>
    %267 = vector.shape_cast %266 : vector<1x2x512xf32> to vector<2x512xf32>
    %c0_115 = arith.constant 0 : index
    %c0_116 = arith.constant 0 : index
    %c0_117 = arith.constant 0 : index
    %268 = vector.load %arg10[%c0_115, %c0_116, %c0_117] : memref<2x2x128xf32, #tpu.memory_space<vmem>>, vector<1x2x128xf32>
    %269 = vector.shape_cast %268 : vector<1x2x128xf32> to vector<2x128xf32>
    %270 = arith.truncf %269 : vector<2x128xf32> to vector<2x128xbf16>
    %cst_118 = arith.constant dense<0.000000e+00> : vector<2x512xf32>
    %271 = tpu.matmul %270, %3, %cst_118 {dimension_numbers = #tpu.dot_dimension_numbers<[1], [0], [0], [1], [0, 0, 1, 1], [], []>} : vector<2x128xbf16>, vector<128x512xbf16>, vector<2x512xf32> -> vector<2x512xf32>
    %272 = arith.addf %267, %271 : vector<2x512xf32>
    %c0_119 = arith.constant 0 : index
    %c0_120 = arith.constant 0 : index
    %c0_121 = arith.constant 0 : index
    %273 = vector.load %arg11[%c0_119, %c0_120, %c0_121] : memref<2x2x128xf32, #tpu.memory_space<vmem>>, vector<1x2x128xf32>
    %274 = vector.shape_cast %273 : vector<1x2x128xf32> to vector<2x128xf32>
    %275 = vector.extract_strided_slice %272 {offsets = [0, 0], sizes = [2, 128], strides = [1, 1]} : vector<2x512xf32> to vector<2x128xf32>
    %276 = arith.negf %275 : vector<2x128xf32>
    %277 = math.exp %276 : vector<2x128xf32>
    %cst_122 = arith.constant 1.000000e+00 : f32
    %278 = vector.broadcast %cst_122 : f32 to vector<2x128xf32>
    %279 = arith.addf %278, %277 : vector<2x128xf32>
    %280 = arith.divf %278, %279 : vector<2x128xf32>
    %281 = vector.extract_strided_slice %272 {offsets = [0, 128], sizes = [2, 128], strides = [1, 1]} : vector<2x512xf32> to vector<2x128xf32>
    %282 = arith.negf %281 : vector<2x128xf32>
    %283 = math.exp %282 : vector<2x128xf32>
    %cst_123 = arith.constant 1.000000e+00 : f32
    %284 = vector.broadcast %cst_123 : f32 to vector<2x128xf32>
    %285 = arith.addf %284, %283 : vector<2x128xf32>
    %286 = arith.divf %284, %285 : vector<2x128xf32>
    %287 = vector.extract_strided_slice %272 {offsets = [0, 256], sizes = [2, 128], strides = [1, 1]} : vector<2x512xf32> to vector<2x128xf32>
    %288 = math.tanh %287 : vector<2x128xf32>
    %289 = vector.extract_strided_slice %272 {offsets = [0, 384], sizes = [2, 128], strides = [1, 1]} : vector<2x512xf32> to vector<2x128xf32>
    %290 = arith.negf %289 : vector<2x128xf32>
    %291 = math.exp %290 : vector<2x128xf32>
    %cst_124 = arith.constant 1.000000e+00 : f32
    %292 = vector.broadcast %cst_124 : f32 to vector<2x128xf32>
    %293 = arith.addf %292, %291 : vector<2x128xf32>
    %294 = arith.divf %292, %293 : vector<2x128xf32>
    %295 = arith.mulf %286, %274 : vector<2x128xf32>
    %296 = arith.mulf %280, %288 : vector<2x128xf32>
    %297 = arith.addf %295, %296 : vector<2x128xf32>
    %298 = math.tanh %297 : vector<2x128xf32>
    %299 = arith.mulf %294, %298 : vector<2x128xf32>
    %c0_125 = arith.constant 0 : index
    %c0_126 = arith.constant 0 : index
    %c0_127 = arith.constant 0 : index
    %300 = vector.load %arg10[%c0_125, %c0_126, %c0_127] : memref<2x2x128xf32, #tpu.memory_space<vmem>>, vector<1x2x128xf32>
    %301 = vector.shape_cast %300 : vector<1x2x128xf32> to vector<2x128xf32>
    %302 = vector.shape_cast %299 : vector<2x128xf32> to vector<1x2x128xf32>
    tpu.vector_store %arg10[%c0_125, %c0_126, %c0_127], %302 {strides = array<i32>} : memref<2x2x128xf32, #tpu.memory_space<vmem>>, vector<1x2x128xf32>,
    %c0_128 = arith.constant 0 : index
    %c0_129 = arith.constant 0 : index
    %c0_130 = arith.constant 0 : index
    %303 = vector.load %arg11[%c0_128, %c0_129, %c0_130] : memref<2x2x128xf32, #tpu.memory_space<vmem>>, vector<1x2x128xf32>
    %304 = vector.shape_cast %303 : vector<1x2x128xf32> to vector<2x128xf32>
    %305 = vector.shape_cast %297 : vector<2x128xf32> to vector<1x2x128xf32>
    tpu.vector_store %arg11[%c0_128, %c0_129, %c0_130], %305 {strides = array<i32>} : memref<2x2x128xf32, #tpu.memory_space<vmem>>, vector<1x2x128xf32>,
    %c1_131 = arith.constant 1 : index
    %c0_132 = arith.constant 0 : index
    %c0_133 = arith.constant 0 : index
    %306 = vector.load %arg10[%c1_131, %c0_132, %c0_133] : memref<2x2x128xf32, #tpu.memory_space<vmem>>, vector<1x2x128xf32>
    %307 = vector.shape_cast %306 : vector<1x2x128xf32> to vector<2x128xf32>
    %308 = tpu.concatenate %299, %307 in 1 : vector<2x128xf32>, vector<2x128xf32> -> vector<2x256xf32>
    %309 = arith.truncf %308 : vector<2x256xf32> to vector<2x256xbf16>
    %cst_134 = arith.constant dense<0.000000e+00> : vector<2x512xf32>
    %310 = tpu.matmul %309, %4, %cst_134 {dimension_numbers = #tpu.dot_dimension_numbers<[1], [0], [0], [1], [0, 0, 1, 1], [], []>} : vector<2x256xbf16>, vector<256x512xbf16>, vector<2x512xf32> -> vector<2x512xf32>
    %311 = vector.shape_cast %6 : vector<512xf32> to vector<1x512xf32>
    %312 = vector.broadcast %311 : vector<1x512xf32> to vector<2x512xf32>
    %313 = arith.addf %310, %312 : vector<2x512xf32>
    %c1_135 = arith.constant 1 : index
    %c0_136 = arith.constant 0 : index
    %c0_137 = arith.constant 0 : index
    %314 = vector.load %arg11[%c1_135, %c0_136, %c0_137] : memref<2x2x128xf32, #tpu.memory_space<vmem>>, vector<1x2x128xf32>
    %315 = vector.shape_cast %314 : vector<1x2x128xf32> to vector<2x128xf32>
    %316 = vector.extract_strided_slice %313 {offsets = [0, 0], sizes = [2, 128], strides = [1, 1]} : vector<2x512xf32> to vector<2x128xf32>
    %317 = arith.negf %316 : vector<2x128xf32>
    %318 = math.exp %317 : vector<2x128xf32>
    %cst_138 = arith.constant 1.000000e+00 : f32
    %319 = vector.broadcast %cst_138 : f32 to vector<2x128xf32>
    %320 = arith.addf %319, %318 : vector<2x128xf32>
    %321 = arith.divf %319, %320 : vector<2x128xf32>
    %322 = vector.extract_strided_slice %313 {offsets = [0, 128], sizes = [2, 128], strides = [1, 1]} : vector<2x512xf32> to vector<2x128xf32>
    %323 = arith.negf %322 : vector<2x128xf32>
    %324 = math.exp %323 : vector<2x128xf32>
    %cst_139 = arith.constant 1.000000e+00 : f32
    %325 = vector.broadcast %cst_139 : f32 to vector<2x128xf32>
    %326 = arith.addf %325, %324 : vector<2x128xf32>
    %327 = arith.divf %325, %326 : vector<2x128xf32>
    %328 = vector.extract_strided_slice %313 {offsets = [0, 256], sizes = [2, 128], strides = [1, 1]} : vector<2x512xf32> to vector<2x128xf32>
    %329 = math.tanh %328 : vector<2x128xf32>
    %330 = vector.extract_strided_slice %313 {offsets = [0, 384], sizes = [2, 128], strides = [1, 1]} : vector<2x512xf32> to vector<2x128xf32>
    %331 = arith.negf %330 : vector<2x128xf32>
    %332 = math.exp %331 : vector<2x128xf32>
    %cst_140 = arith.constant 1.000000e+00 : f32
    %333 = vector.broadcast %cst_140 : f32 to vector<2x128xf32>
    %334 = arith.addf %333, %332 : vector<2x128xf32>
    %335 = arith.divf %333, %334 : vector<2x128xf32>
    %336 = arith.mulf %327, %315 : vector<2x128xf32>
    %337 = arith.mulf %321, %329 : vector<2x128xf32>
    %338 = arith.addf %336, %337 : vector<2x128xf32>
    %339 = math.tanh %338 : vector<2x128xf32>
    %340 = arith.mulf %335, %339 : vector<2x128xf32>
    %c1_141 = arith.constant 1 : index
    %c0_142 = arith.constant 0 : index
    %c0_143 = arith.constant 0 : index
    %341 = vector.load %arg10[%c1_141, %c0_142, %c0_143] : memref<2x2x128xf32, #tpu.memory_space<vmem>>, vector<1x2x128xf32>
    %342 = vector.shape_cast %341 : vector<1x2x128xf32> to vector<2x128xf32>
    %343 = vector.shape_cast %340 : vector<2x128xf32> to vector<1x2x128xf32>
    tpu.vector_store %arg10[%c1_141, %c0_142, %c0_143], %343 {strides = array<i32>} : memref<2x2x128xf32, #tpu.memory_space<vmem>>, vector<1x2x128xf32>,
    %c1_144 = arith.constant 1 : index
    %c0_145 = arith.constant 0 : index
    %c0_146 = arith.constant 0 : index
    %344 = vector.load %arg11[%c1_144, %c0_145, %c0_146] : memref<2x2x128xf32, #tpu.memory_space<vmem>>, vector<1x2x128xf32>
    %345 = vector.shape_cast %344 : vector<1x2x128xf32> to vector<2x128xf32>
    %346 = vector.shape_cast %338 : vector<2x128xf32> to vector<1x2x128xf32>
    tpu.vector_store %arg11[%c1_144, %c0_145, %c0_146], %346 {strides = array<i32>} : memref<2x2x128xf32, #tpu.memory_space<vmem>>, vector<1x2x128xf32>,
    %347 = arith.index_cast %c3_i32 : i32 to index
    %c0_147 = arith.constant 0 : index
    %c0_148 = arith.constant 0 : index
    %348 = vector.load %arg7[%347, %c0_147, %c0_148] : memref<4x2x128xf32, #tpu.memory_space<vmem>>, vector<1x2x128xf32>
    %349 = vector.shape_cast %348 : vector<1x2x128xf32> to vector<2x128xf32>
    %350 = vector.shape_cast %340 : vector<2x128xf32> to vector<1x2x128xf32>
    tpu.vector_store %arg7[%347, %c0_147, %c0_148], %350 {strides = array<i32>} : memref<4x2x128xf32, #tpu.memory_space<vmem>>, vector<1x2x128xf32>,
    %c4_i32 = arith.constant 4 : i32
    %c1_i32_149 = arith.constant 1 : i32
    %351 = arith.cmpi eq, %arg0, %c1_i32_149 : i32
    %352 = arith.extui %351 : i1 to i32
    %c0_i32_150 = arith.constant 0 : i32
    %353 = arith.cmpi ne, %352, %c0_i32_150 : i32
    scf.if %353 {
      %c0_151 = arith.constant 0 : index
      %c0_152 = arith.constant 0 : index
      %c0_153 = arith.constant 0 : index
      %354 = vector.load %arg10[%c0_151, %c0_152, %c0_153] : memref<2x2x128xf32, #tpu.memory_space<vmem>>, vector<2x2x128xf32>
      %c0_154 = arith.constant 0 : index
      %c0_155 = arith.constant 0 : index
      %c0_156 = arith.constant 0 : index
      %355 = vector.load %arg8[%c0_154, %c0_155, %c0_156] : memref<2x2x128xf32, #tpu.memory_space<vmem>>, vector<2x2x128xf32>
      tpu.vector_store %arg8[%c0_154, %c0_155, %c0_156], %354 {strides = array<i32>} : memref<2x2x128xf32, #tpu.memory_space<vmem>>, vector<2x2x128xf32>,
      %c0_157 = arith.constant 0 : index
      %c0_158 = arith.constant 0 : index
      %c0_159 = arith.constant 0 : index
      %356 = vector.load %arg11[%c0_157, %c0_158, %c0_159] : memref<2x2x128xf32, #tpu.memory_space<vmem>>, vector<2x2x128xf32>
      %c0_160 = arith.constant 0 : index
      %c0_161 = arith.constant 0 : index
      %c0_162 = arith.constant 0 : index
      %357 = vector.load %arg9[%c0_160, %c0_161, %c0_162] : memref<2x2x128xf32, #tpu.memory_space<vmem>>, vector<2x2x128xf32>
      tpu.vector_store %arg9[%c0_160, %c0_161, %c0_162], %356 {strides = array<i32>} : memref<2x2x128xf32, #tpu.memory_space<vmem>>, vector<2x2x128xf32>,
    } else {
    }
    return
  }
  func.func @transform_0(%arg0: i32) -> (i32, i32, i32) {
    %c0_i32 = arith.constant 0 : i32
    %c0_i32_0 = arith.constant 0 : i32
    %c0_i32_1 = arith.constant 0 : i32
    return %arg0, %c0_i32, %c0_i32_0 : i32, i32, i32
  }
  func.func @transform_1(%arg0: i32) -> (i32, i32) {
    %c0_i32 = arith.constant 0 : i32
    %c0_i32_0 = arith.constant 0 : i32
    %c0_i32_1 = arith.constant 0 : i32
    return %c0_i32, %c0_i32_0 : i32, i32
  }
  func.func @transform_2(%arg0: i32) -> (i32, i32) {
    %c0_i32 = arith.constant 0 : i32
    %c0_i32_0 = arith.constant 0 : i32
    %c0_i32_1 = arith.constant 0 : i32
    return %c0_i32, %c0_i32_0 : i32, i32
  }
  func.func @transform_3(%arg0: i32) -> (i32, i32) {
    %c0_i32 = arith.constant 0 : i32
    %c0_i32_0 = arith.constant 0 : i32
    %c0_i32_1 = arith.constant 0 : i32
    return %c0_i32, %c0_i32_0 : i32, i32
  }
  func.func @transform_4(%arg0: i32) -> (i32, i32, i32) {
    %c0_i32 = arith.constant 0 : i32
    %c0_i32_0 = arith.constant 0 : i32
    %c0_i32_1 = arith.constant 0 : i32
    %c0_i32_2 = arith.constant 0 : i32
    return %c0_i32, %c0_i32_0, %c0_i32_1 : i32, i32, i32
  }
  func.func @transform_5(%arg0: i32) -> (i32, i32, i32) {
    %c0_i32 = arith.constant 0 : i32
    %c0_i32_0 = arith.constant 0 : i32
    %c0_i32_1 = arith.constant 0 : i32
    %c0_i32_2 = arith.constant 0 : i32
    return %c0_i32, %c0_i32_0, %c0_i32_1 : i32, i32, i32
  }
  func.func @transform_6(%arg0: i32) -> (i32, i32, i32) {
    %c0_i32 = arith.constant 0 : i32
    %c0_i32_0 = arith.constant 0 : i32
    %c0_i32_1 = arith.constant 0 : i32
    return %arg0, %c0_i32, %c0_i32_0 : i32, i32, i32
  }
  func.func @transform_7(%arg0: i32) -> (i32, i32, i32) {
    %c0_i32 = arith.constant 0 : i32
    %c0_i32_0 = arith.constant 0 : i32
    %c0_i32_1 = arith.constant 0 : i32
    %c0_i32_2 = arith.constant 0 : i32
    return %c0_i32, %c0_i32_0, %c0_i32_1 : i32, i32, i32
  }
  func.func @transform_8(%arg0: i32) -> (i32, i32, i32) {
    %c0_i32 = arith.constant 0 : i32
    %c0_i32_0 = arith.constant 0 : i32
    %c0_i32_1 = arith.constant 0 : i32
    %c0_i32_2 = arith.constant 0 : i32
    return %c0_i32, %c0_i32_0, %c0_i32_1 : i32, i32, i32
  }
}

module attributes {stable_mosaic.version = 11 : i64} {
  func.func @_ln_gates_kernel(%arg0: i32, %arg1: memref<16x128xf32, #tpu.memory_space<vmem>>, %arg2: memref<1x128xf32, #tpu.memory_space<vmem>>, %arg3: memref<1x128xf32, #tpu.memory_space<vmem>>, %arg4: memref<128x512xbf16, #tpu.memory_space<vmem>>, %arg5: memref<1x512xf32, #tpu.memory_space<vmem>>, %arg6: memref<16x512xf32, #tpu.memory_space<vmem>>) attributes {dimension_semantics = [#tpu.dimension_semantics<parallel>], iteration_bounds = array<i64: 1>, scalar_prefetch = 0 : i64, scratch_operands = 0 : i64, tpu.core_type = #tpu.core_type<tc>, window_params = [{transform_indices = @transform_0, window_bounds = array<i64: 16, 128>}, {pipeline_mode = #tpu.pipeline_mode<synchronous>, transform_indices = @transform_1, window_bounds = array<i64: 1, 128>}, {pipeline_mode = #tpu.pipeline_mode<synchronous>, transform_indices = @transform_2, window_bounds = array<i64: 1, 128>}, {pipeline_mode = #tpu.pipeline_mode<synchronous>, transform_indices = @transform_3, window_bounds = array<i64: 128, 512>}, {pipeline_mode = #tpu.pipeline_mode<synchronous>, transform_indices = @transform_4, window_bounds = array<i64: 1, 512>}, {transform_indices = @transform_5, window_bounds = array<i64: 16, 512>}]} {
    %c0 = arith.constant 0 : index
    %c0_0 = arith.constant 0 : index
    %0 = vector.load %arg1[%c0, %c0_0] : memref<16x128xf32, #tpu.memory_space<vmem>>, vector<16x128xf32>
    %cst = arith.constant dense<0.000000e+00> : vector<16xf32>
    %1 = vector.multi_reduction <add>, %0, %cst [1] : vector<16x128xf32> to vector<16xf32>
    %2 = vector.shape_cast %1 : vector<16xf32> to vector<16x1xf32>
    %cst_1 = arith.constant 1.280000e+02 : f32
    %3 = vector.broadcast %cst_1 : f32 to vector<16x1xf32>
    %4 = arith.divf %2, %3 : vector<16x1xf32>
    %5 = vector.broadcast %4 : vector<16x1xf32> to vector<16x128xf32>
    %6 = arith.subf %0, %5 : vector<16x128xf32>
    %7 = arith.mulf %6, %6 : vector<16x128xf32>
    %cst_2 = arith.constant dense<0.000000e+00> : vector<16xf32>
    %8 = vector.multi_reduction <add>, %7, %cst_2 [1] : vector<16x128xf32> to vector<16xf32>
    %9 = vector.shape_cast %8 : vector<16xf32> to vector<16x1xf32>
    %cst_3 = arith.constant 1.280000e+02 : f32
    %10 = vector.broadcast %cst_3 : f32 to vector<16x1xf32>
    %11 = arith.divf %9, %10 : vector<16x1xf32>
    %12 = vector.broadcast %4 : vector<16x1xf32> to vector<16x128xf32>
    %13 = arith.subf %0, %12 : vector<16x128xf32>
    %cst_4 = arith.constant 9.99999974E-6 : f32
    %14 = vector.broadcast %cst_4 : f32 to vector<16x1xf32>
    %15 = arith.addf %11, %14 : vector<16x1xf32>
    %16 = math.rsqrt %15 : vector<16x1xf32>
    %17 = vector.broadcast %16 : vector<16x1xf32> to vector<16x128xf32>
    %18 = arith.mulf %13, %17 : vector<16x128xf32>
    %c0_5 = arith.constant 0 : index
    %c0_6 = arith.constant 0 : index
    %19 = vector.load %arg2[%c0_5, %c0_6] : memref<1x128xf32, #tpu.memory_space<vmem>>, vector<1x128xf32>
    %20 = vector.shape_cast %19 : vector<1x128xf32> to vector<128xf32>
    %21 = vector.shape_cast %20 : vector<128xf32> to vector<1x128xf32>
    %22 = vector.broadcast %21 : vector<1x128xf32> to vector<16x128xf32>
    %23 = arith.mulf %18, %22 : vector<16x128xf32>
    %c0_7 = arith.constant 0 : index
    %c0_8 = arith.constant 0 : index
    %24 = vector.load %arg3[%c0_7, %c0_8] : memref<1x128xf32, #tpu.memory_space<vmem>>, vector<1x128xf32>
    %25 = vector.shape_cast %24 : vector<1x128xf32> to vector<128xf32>
    %26 = vector.shape_cast %25 : vector<128xf32> to vector<1x128xf32>
    %27 = vector.broadcast %26 : vector<1x128xf32> to vector<16x128xf32>
    %28 = arith.addf %23, %27 : vector<16x128xf32>
    %29 = arith.truncf %28 : vector<16x128xf32> to vector<16x128xbf16>
    %c0_9 = arith.constant 0 : index
    %c0_10 = arith.constant 0 : index
    %30 = vector.load %arg4[%c0_9, %c0_10] : memref<128x512xbf16, #tpu.memory_space<vmem>>, vector<128x512xbf16>
    %cst_11 = arith.constant dense<0.000000e+00> : vector<16x512xf32>
    %31 = tpu.matmul %29, %30, %cst_11 {dimension_numbers = #tpu.dot_dimension_numbers<[1], [0], [0], [1], [0, 0, 1, 1], [], []>} : vector<16x128xbf16>, vector<128x512xbf16>, vector<16x512xf32> -> vector<16x512xf32>
    %c0_12 = arith.constant 0 : index
    %c0_13 = arith.constant 0 : index
    %32 = vector.load %arg5[%c0_12, %c0_13] : memref<1x512xf32, #tpu.memory_space<vmem>>, vector<1x512xf32>
    %33 = vector.shape_cast %32 : vector<1x512xf32> to vector<512xf32>
    %34 = vector.shape_cast %33 : vector<512xf32> to vector<1x512xf32>
    %35 = vector.broadcast %34 : vector<1x512xf32> to vector<16x512xf32>
    %36 = arith.addf %31, %35 : vector<16x512xf32>
    %c0_14 = arith.constant 0 : index
    %c0_15 = arith.constant 0 : index
    %37 = vector.load %arg6[%c0_14, %c0_15] : memref<16x512xf32, #tpu.memory_space<vmem>>, vector<16x512xf32>
    tpu.vector_store %arg6[%c0_14, %c0_15], %36 {strides = array<i32>} : memref<16x512xf32, #tpu.memory_space<vmem>>, vector<16x512xf32>,
    return
  }
  func.func @transform_0(%arg0: i32) -> (i32, i32) {
    %c0_i32 = arith.constant 0 : i32
    %c0_i32_0 = arith.constant 0 : i32
    return %arg0, %c0_i32 : i32, i32
  }
  func.func @transform_1(%arg0: i32) -> (i32, i32) {
    %c0_i32 = arith.constant 0 : i32
    %c0_i32_0 = arith.constant 0 : i32
    %c0_i32_1 = arith.constant 0 : i32
    return %c0_i32, %c0_i32_0 : i32, i32
  }
  func.func @transform_2(%arg0: i32) -> (i32, i32) {
    %c0_i32 = arith.constant 0 : i32
    %c0_i32_0 = arith.constant 0 : i32
    %c0_i32_1 = arith.constant 0 : i32
    return %c0_i32, %c0_i32_0 : i32, i32
  }
  func.func @transform_3(%arg0: i32) -> (i32, i32) {
    %c0_i32 = arith.constant 0 : i32
    %c0_i32_0 = arith.constant 0 : i32
    %c0_i32_1 = arith.constant 0 : i32
    return %c0_i32, %c0_i32_0 : i32, i32
  }
  func.func @transform_4(%arg0: i32) -> (i32, i32) {
    %c0_i32 = arith.constant 0 : i32
    %c0_i32_0 = arith.constant 0 : i32
    %c0_i32_1 = arith.constant 0 : i32
    return %c0_i32, %c0_i32_0 : i32, i32
  }
  func.func @transform_5(%arg0: i32) -> (i32, i32) {
    %c0_i32 = arith.constant 0 : i32
    %c0_i32_0 = arith.constant 0 : i32
    return %arg0, %c0_i32 : i32, i32
  }
}

</mosaic_0001>

<bundles_post_ra>
// kernel: lstm_decoder_forward.5
= control target key start
LH: loop header
LB: loop body
LE: loop exit
PB: predicated region body
PF: predicated region fallthrough
CT: control target
= control target key end

     0   :  { %v411_v1 = vmov 0   ;;  %v52_v36 = vlaneseq  ;;  %s561_s1 = inlined_call_operand.vmem [shape: bf16[128,512], index: 1, kind: input, shape index: {}]   ;;  %s562_s0 = inlined_call_operand.vmem [shape: f32[16,128], index: 0, kind: input, shape index: {}]   ;;  %s563_s2 = inlined_call_operand.vmem [shape: f32[1,512], index: 2, kind: input, shape index: {}]   ;;  %s564_s3 = inlined_call_operand.vmem [shape: f32[16,512], index: 3, kind: output, shape index: {}]  }
   0x1   :  { %v363_v0 = vld [vmem:[%s561_s1 + $0xe4] ss:$16 sps:$4 sm:$0xff]   ;;  %264 = vmatprep.mubr.bf16.mxu0 %v411_v1  ;;  %307 = vmatprep.mubr.bf16.mxu1 %v411_v1  ;;  %v365_v2 = vld [vmem:[%s561_s1 + $0xec] ss:$16 sps:$4 sm:$0xff]   ;;  %v367_v3 = vld [vmem:[%s561_s1 + $0xe0] ss:$16 sps:$4 sm:$0xff]  }
   0x2   :  { %232 = vmatprep.subr.bf16.mxu0 %v363_v0  ;;  %v368_v4 = vld [vmem:[%s561_s1 + $0xe8] ss:$16 sps:$4 sm:$0xff]   ;;  %275 = vmatprep.subr.bf16.mxu1 %v365_v2  ;;  %v369_v5 = vld [vmem:[%s561_s1 + $0xc4] ss:$16 sps:$4 sm:$0xff]   ;;  %v371_v6 = vld [vmem:[%s561_s1 + $0xcc] ss:$16 sps:$4 sm:$0xff]  }
   0x3   :  { %233 = vmatpush1.bf16.msra.mxu0 %v367_v3  ;;  %276 = vmatpush1.bf16.msra.mxu1 %v368_v4  ;;  %v373_v7 = vld [vmem:[%s561_s1 + $0xc0] ss:$16 sps:$4 sm:$0xff]   ;;  %v374_v8 = vld [vmem:[%s561_s1 + $0xc8] ss:$16 sps:$4 sm:$0xff]   ;;  %v375_v9 = vld [vmem:[%s561_s1 + $0xa4] ss:$16 sps:$4 sm:$0xff]  }
   0x4   :  { %234 = vmatprep.subr.bf16.mxu0 %v369_v5  ;;  %277 = vmatprep.subr.bf16.mxu1 %v371_v6  ;;  %v377_v10 = vld [vmem:[%s561_s1 + $0xac] ss:$16 sps:$4 sm:$0xff]   ;;  %v379_v11 = vld [vmem:[%s561_s1 + $0xa0] ss:$16 sps:$4 sm:$0xff]   ;;  %v380_v12 = vld [vmem:[%s561_s1 + $0xa8] ss:$16 sps:$4 sm:$0xff]  }
   0x5   :  { %v381_v13 = vld [vmem:[%s561_s1 + $0x84] ss:$16 sps:$4 sm:$0xff]   ;;  %v383_v14 = vld [vmem:[%s561_s1 + $0x8c] ss:$16 sps:$4 sm:$0xff]   ;;  %v385_v15 = vld [vmem:[%s561_s1 + $0x80] ss:$16 sps:$4 sm:$0xff]  }
   0x6   :  { %v386_v16 = vld [vmem:[%s561_s1 + $0x88] ss:$16 sps:$4 sm:$0xff]   ;;  %v387_v17 = vld [vmem:[%s561_s1 + $0x64] ss:$16 sps:$4 sm:$0xff]   ;;  %v389_v18 = vld [vmem:[%s561_s1 + $0x6c] ss:$16 sps:$4 sm:$0xff]  }
   0x7   :  { %235 = vmatpush1.bf16.msra.mxu0 %v373_v7  ;;  %278 = vmatpush1.bf16.msra.mxu1 %v374_v8  ;;  %v391_v19 = vld [vmem:[%s561_s1 + $0x60] ss:$16 sps:$4 sm:$0xff]   ;;  %v392_v20 = vld [vmem:[%s561_s1 + $0x68] ss:$16 sps:$4 sm:$0xff]   ;;  %v393_v21 = vld [vmem:[%s561_s1 + $0x44] ss:$16 sps:$4 sm:$0xff]  }
   0x8   :  { %236 = vmatprep.subr.bf16.mxu0 %v375_v9  ;;  %279 = vmatprep.subr.bf16.mxu1 %v377_v10  ;;  %v395_v22 = vld [vmem:[%s561_s1 + $0x4c] ss:$16 sps:$4 sm:$0xff]   ;;  %v397_v23 = vld [vmem:[%s561_s1 + $0x40] ss:$16 sps:$4 sm:$0xff]   ;;  %v398_v24 = vld [vmem:[%s561_s1 + $0x48] ss:$16 sps:$4 sm:$0xff]  }
   0x9   :  { %v399_v25 = vld [vmem:[%s561_s1 + $0x24] ss:$16 sps:$4 sm:$0xff]   ;;  %v401_v26 = vld [vmem:[%s561_s1 + $0x2c] ss:$16 sps:$4 sm:$0xff]   ;;  %v403_v27 = vld [vmem:[%s561_s1 + $0x20] ss:$16 sps:$4 sm:$0xff]  }
   0xa   :  { %v404_v28 = vld [vmem:[%s561_s1 + $0x28] ss:$16 sps:$4 sm:$0xff]   ;;  %v405_v29 = vld [vmem:[%s561_s1 + $0x4] ss:$16 sps:$4 sm:$0xff]   ;;  %v407_v30 = vld [vmem:[%s561_s1 + $0xc] ss:$16 sps:$4 sm:$0xff]  }
   0xb   :  { %237 = vmatpush1.bf16.msra.mxu0 %v379_v11  ;;  %280 = vmatpush1.bf16.msra.mxu1 %v380_v12  ;;  %v409_v31 = vld [vmem:[%s561_s1] ss:$16 sps:$4 sm:$0xff]   ;;  %v410_v32 = vld [vmem:[%s561_s1 + $0x8] ss:$16 sps:$4 sm:$0xff]   ;;  %v53_v37 = vshrl.u32 %v52_v36, 7 }
   0xc   :  { %238 = vmatprep.subr.bf16.mxu0 %v381_v13  ;;  %281 = vmatprep.subr.bf16.mxu1 %v383_v14  ;;  %v15_v33 = vld [vmem:[%s562_s0] sm:$0xff]  ;;  %v16_v34 = vld [vmem:[%s562_s0 + $0x8] sm:$0xff] }
   0xd   :  { %v17_v35 = vpack.c.bf16 %v16_v34, %v15_v33  ;;  %v54_v38 = vsub.s32 0, %v53_v37  ;;  %v62_v39 = vsub.s32 2, %v53_v37  ;;  %v50_v40 = vld [vmem:[%s563_s2] sm:$0xf]  ;;  %v58_v41 = vsub.s32 1, %v53_v37 }
   0xe   :  { %v66_v42 = vsub.s32 3, %v53_v37 }
   0xf   :  { %239 = vmatpush1.bf16.msra.mxu0 %v385_v15  ;;  %282 = vmatpush1.bf16.msra.mxu1 %v386_v16  ;;  %v55_v43 = vrot.slane %v50_v40, %v54_v38  ;;  %v63_v44 = vrot.slane %v50_v40, %v62_v39  ;;  %v59_v45 = vrot.slane %v50_v40, %v58_v41 }
  0x10   :  { %240 = vmatprep.subr.bf16.mxu0 %v387_v17  ;;  %283 = vmatprep.subr.bf16.mxu1 %v389_v18  ;;  %v67_v46 = vrot.slane %v50_v40, %v66_v42 }
  0x13   :  { %241 = vmatpush1.bf16.msra.mxu0 %v391_v19  ;;  %284 = vmatpush1.bf16.msra.mxu1 %v392_v20 }
  0x14   :  { %242 = vmatprep.subr.bf16.mxu0 %v393_v21  ;;  %285 = vmatprep.subr.bf16.mxu1 %v395_v22 }
  0x17   :  { %243 = vmatpush1.bf16.msra.mxu0 %v397_v23  ;;  %286 = vmatpush1.bf16.msra.mxu1 %v398_v24 }
  0x18   :  { %244 = vmatprep.subr.bf16.mxu0 %v399_v25  ;;  %287 = vmatprep.subr.bf16.mxu1 %v401_v26 }
  0x1b   :  { %245 = vmatpush1.bf16.msra.mxu0 %v403_v27  ;;  %288 = vmatpush1.bf16.msra.mxu1 %v404_v28 }
  0x1c   :  { %246 = vmatprep.subr.bf16.mxu0 %v405_v29  ;;  %289 = vmatprep.subr.bf16.mxu1 %v407_v30 }
  0x1f   :  { %247 = vmatpush1.bf16.msra.mxu0 %v409_v31  ;;  %290 = vmatpush1.bf16.msra.mxu1 %v410_v32 }
  0x22   :  { %265 = vmatmul.mubr.bf16.vlgmr.msra.gmra.mxu0 %v17_v35  ;;  %308 = vmatmul.mubr.bf16.vlgmr.msra.gmra.mxu1 %v17_v35 }
  0xe2   :  { %v266_v47 = vpop.f32.mrf.mxu0  ;;  %v309_v48 = vpop.f32.mrf.mxu1 }
  0xe3   :  { %v267_v49 = vadd.f32 %v266_v47, %v55_v43  ;;  %v310_v50 = vadd.f32 %v309_v48, %v63_v44 }
  0xe4   :  { %v268_v51 = vpop.f32.mrf.mxu0  ;;  %v311_v52 = vpop.f32.mrf.mxu1 }
  0xe5   :  { %318 = vst [vmem:[%s564_s3] sm:$0xff] %v267_v49  ;;  %320 = vst [vmem:[%s564_s3 + $0x10] sm:$0xff] %v310_v50  ;;  %v269_v53 = vadd.f32 %v268_v51, %v59_v45  ;;  %v312_v54 = vadd.f32 %v311_v52, %v67_v46 }
  0xe6   :  { %v270_v55 = vpop.f32.mrf.mxu0  ;;  %v313_v56 = vpop.f32.mrf.mxu1 }
  0xe7   :  { %319 = vst [vmem:[%s564_s3 + $0x8] sm:$0xff] %v269_v53  ;;  %321 = vst [vmem:[%s564_s3 + $0x18] sm:$0xff] %v312_v54  ;;  %v271_v57 = vadd.f32 %v270_v55, %v55_v43  ;;  %v314_v58 = vadd.f32 %v313_v56, %v63_v44 }
  0xe8   :  { %v272_v59 = vpop.f32.mrf.mxu0  ;;  %v315_v60 = vpop.f32.mrf.mxu1 }
  0xe9   :  { %322 = vst [vmem:[%s564_s3 + $0x20] sm:$0xff] %v271_v57  ;;  %324 = vst [vmem:[%s564_s3 + $0x30] sm:$0xff] %v314_v58  ;;  %v273_v61 = vadd.f32 %v272_v59, %v59_v45  ;;  %v316_v62 = vadd.f32 %v315_v60, %v67_v46 }
  0xeb   :  { %323 = vst [vmem:[%s564_s3 + $0x28] sm:$0xff] %v273_v61  ;;  %325 = vst [vmem:[%s564_s3 + $0x38] sm:$0xff] %v316_v62 }

// kernel: lstm_decoder_forward.3
= control target key start
LH: loop header
LB: loop body
LE: loop exit
PB: predicated region body
PF: predicated region fallthrough
CT: control target
= control target key end

     0   :  { %10 = vsyncpa [#allocation3], 0  ;;  %s504_s18 = smov [#allocation2]   ;;  %s590_s0 = inlined_call_operand.vmem [shape: f32[16,128], index: 0, kind: input, shape index: {}]   ;;  %s591_s1 = inlined_call_operand.vmem [shape: f32[1,128], index: 1, kind: input, shape index: {}]   ;;  %s592_s2 = inlined_call_operand.vmem [shape: f32[1,128], index: 2, kind: input, shape index: {}]   ;;  %s593_s3 = inlined_call_operand.hbm [shape: bf16[128,512], index: 3, kind: input, shape index: {}]   ;;  %s594_s4 = inlined_call_operand.vmem [shape: f32[1,512], index: 4, kind: input, shape index: {}]   ;;  %s595_s5 = inlined_call_operand.vmem [shape: f32[16,512], index: 5, kind: output, shape index: {}]  }
   0x1   :  { %s22_s19 = sshll.u32 %s504_s18, 4  ;;  %s23_s19 = int_to_ptr.vmem [resolvable:$true] %s22_s19 }
   0x2   :  { %s490_s20 = scalar_lea.vmem %s23_s19, 4096  ;;  %p495_p1 = scmp.lt.s32.totalorder %s23_s19, %s23_s19 }
   0x3   :  { %p491_p0 = scmp.ne.s32.totalorder %s23_s19, %s490_s20  ;;  %p496_p2 = scmp.lt.s32.totalorder %s490_s20, %s490_s20 }
   0x5   :  { %p497_p3 = por %p496_p2, %p495_p1 }
   0x7   :  { %p498_p4 = pnand %p497_p3, %p491_p0 }
   0x9   :  { %501 = shalt.err (!%p498_p4)
}
   0xa   :  { %s505_s21 = smov 256   ;;  %s506_s22 = smov 16  }
   0xb   :  { %28 = dma.hbm_to_vmem [thread:$0]  %s593_s3, 4096, %s23_s19, [#allocation3], %s505_s21, %s505_s21, %s506_s22  }
   0xc   :  { %502 = dma.done.wait [#allocation3], 4096  }
   0xd   :  { %503 = vsyncadd [#allocation3], 4294963200  ;;  %v35_v0 = vld [vmem:[%s590_s0] sm:$0xff]  ;;  %v36_v1 = vld [vmem:[%s590_s0 + $0x8] sm:$0xff]  ;;  %v507_v36 = vmov 0   ;;  %v113_v60 = vlaneseq }
   0xe   :  { %37 = vadd.xlane.f32.xlu0 %v35_v0  ;;  %v430_v2 = vld [vmem:[#allocation2 + $0xe4] ss:$16 sps:$4 sm:$0xff]   ;;  %v432_v3 = vld [vmem:[#allocation2 + $0xec] ss:$16 sps:$4 sm:$0xff]   ;;  %v434_v4 = vld [vmem:[#allocation2 + $0xe0] ss:$16 sps:$4 sm:$0xff]   ;;  %325 = vmatprep.mubr.bf16.mxu0 %v507_v36 }
   0xf   :  { %v435_v5 = vld [vmem:[#allocation2 + $0xe8] ss:$16 sps:$4 sm:$0xff]   ;;  %293 = vmatprep.subr.bf16.mxu0 %v430_v2  ;;  %336 = vmatprep.subr.bf16.mxu1 %v432_v3  ;;  %v436_v14 = vld [vmem:[#allocation2 + $0xc4] ss:$16 sps:$4 sm:$0xff]   ;;  %v438_v15 = vld [vmem:[#allocation2 + $0xcc] ss:$16 sps:$4 sm:$0xff]  }
  0x10   :  { %294 = vmatpush1.bf16.msra.mxu0 %v434_v4  ;;  %337 = vmatpush1.bf16.msra.mxu1 %v435_v5  ;;  %v440_v16 = vld [vmem:[#allocation2 + $0xc0] ss:$16 sps:$4 sm:$0xff]   ;;  %v441_v17 = vld [vmem:[#allocation2 + $0xc8] ss:$16 sps:$4 sm:$0xff]   ;;  %v442_v18 = vld [vmem:[#allocation2 + $0xa4] ss:$16 sps:$4 sm:$0xff]  }
  0x11   :  { %295 = vmatprep.subr.bf16.mxu0 %v436_v14  ;;  %338 = vmatprep.subr.bf16.mxu1 %v438_v15  ;;  %v444_v19 = vld [vmem:[#allocation2 + $0xac] ss:$16 sps:$4 sm:$0xff]   ;;  %v446_v20 = vld [vmem:[#allocation2 + $0xa0] ss:$16 sps:$4 sm:$0xff]   ;;  %v447_v21 = vld [vmem:[#allocation2 + $0xa8] ss:$16 sps:$4 sm:$0xff]  }
  0x12   :  { %39 = vadd.xlane.f32.xlu0 %v36_v1  ;;  %v448_v22 = vld [vmem:[#allocation2 + $0x84] ss:$16 sps:$4 sm:$0xff]   ;;  %v450_v23 = vld [vmem:[#allocation2 + $0x8c] ss:$16 sps:$4 sm:$0xff]   ;;  %v452_v24 = vld [vmem:[#allocation2 + $0x80] ss:$16 sps:$4 sm:$0xff]   ;;  %368 = vmatprep.mubr.bf16.mxu1 %v507_v36 }
  0x13   :  { %v453_v25 = vld [vmem:[#allocation2 + $0x88] ss:$16 sps:$4 sm:$0xff]   ;;  %v454_v26 = vld [vmem:[#allocation2 + $0x64] ss:$16 sps:$4 sm:$0xff]   ;;  %v456_v27 = vld [vmem:[#allocation2 + $0x6c] ss:$16 sps:$4 sm:$0xff]  }
  0x14   :  { %296 = vmatpush1.bf16.msra.mxu0 %v440_v16  ;;  %339 = vmatpush1.bf16.msra.mxu1 %v441_v17  ;;  %v458_v28 = vld [vmem:[#allocation2 + $0x60] ss:$16 sps:$4 sm:$0xff]   ;;  %v459_v29 = vld [vmem:[#allocation2 + $0x68] ss:$16 sps:$4 sm:$0xff]   ;;  %v460_v30 = vld [vmem:[#allocation2 + $0x44] ss:$16 sps:$4 sm:$0xff]  }
  0x15   :  { %297 = vmatprep.subr.bf16.mxu0 %v442_v18  ;;  %340 = vmatprep.subr.bf16.mxu1 %v444_v19  ;;  %v462_v31 = vld [vmem:[#allocation2 + $0x4c] ss:$16 sps:$4 sm:$0xff]   ;;  %v464_v32 = vld [vmem:[#allocation2 + $0x40] ss:$16 sps:$4 sm:$0xff]   ;;  %v465_v33 = vld [vmem:[#allocation2 + $0x48] ss:$16 sps:$4 sm:$0xff]  }
  0x16   :  { %v466_v34 = vld [vmem:[#allocation2 + $0x24] ss:$16 sps:$4 sm:$0xff]   ;;  %v468_v35 = vld [vmem:[#allocation2 + $0x2c] ss:$16 sps:$4 sm:$0xff]   ;;  %v470_v37 = vld [vmem:[#allocation2 + $0x20] ss:$16 sps:$4 sm:$0xff]  }
  0x17   :  { %v471_v38 = vld [vmem:[#allocation2 + $0x28] ss:$16 sps:$4 sm:$0xff]   ;;  %v472_v39 = vld [vmem:[#allocation2 + $0x4] ss:$16 sps:$4 sm:$0xff]   ;;  %v474_v40 = vld [vmem:[#allocation2 + $0xc] ss:$16 sps:$4 sm:$0xff]  }
  0x18   :  { %298 = vmatpush1.bf16.msra.mxu0 %v446_v20  ;;  %341 = vmatpush1.bf16.msra.mxu1 %v447_v21  ;;  %v476_v41 = vld [vmem:[#allocation2] ss:$16 sps:$4 sm:$0xff]   ;;  %v477_v42 = vld [vmem:[#allocation2 + $0x8] ss:$16 sps:$4 sm:$0xff]   ;;  %v114_v61 = vshrl.u32 %v113_v60, 7 }
  0x19   :  { %299 = vmatprep.subr.bf16.mxu0 %v448_v22  ;;  %342 = vmatprep.subr.bf16.mxu1 %v450_v23  ;;  %v392_v51 = vld [vmem:[%s591_s1] ss:$0 sm:$0xff] }
  0x1a   :  { %v393_v55 = vld [vmem:[%s592_s2] ss:$0 sm:$0xff]  ;;  %v115_v62 = vsub.s32 0, %v114_v61  ;;  %v123_v63 = vsub.s32 2, %v114_v61  ;;  %v127_v2 = vsub.s32 3, %v114_v61 }
  0x1c   :  { %300 = vmatpush1.bf16.msra.mxu0 %v452_v24  ;;  %343 = vmatpush1.bf16.msra.mxu1 %v453_v25 }
  0x1d   :  { %301 = vmatprep.subr.bf16.mxu0 %v454_v26  ;;  %344 = vmatprep.subr.bf16.mxu1 %v456_v27 }
  0x20   :  { %302 = vmatpush1.bf16.msra.mxu0 %v458_v28  ;;  %345 = vmatpush1.bf16.msra.mxu1 %v459_v29 }
  0x21   :  { %303 = vmatprep.subr.bf16.mxu0 %v460_v30  ;;  %346 = vmatprep.subr.bf16.mxu1 %v462_v31 }
  0x24   :  { %304 = vmatpush1.bf16.msra.mxu0 %v464_v32  ;;  %347 = vmatpush1.bf16.msra.mxu1 %v465_v33 }
  0x25   :  { %305 = vmatprep.subr.bf16.mxu0 %v466_v34  ;;  %348 = vmatprep.subr.bf16.mxu1 %v468_v35 }
  0x28   :  { %306 = vmatpush1.bf16.msra.mxu0 %v470_v37  ;;  %349 = vmatpush1.bf16.msra.mxu1 %v471_v38 }
  0x29   :  { %307 = vmatprep.subr.bf16.mxu0 %v472_v39  ;;  %350 = vmatprep.subr.bf16.mxu1 %v474_v40 }
  0x2c   :  { %308 = vmatpush1.bf16.msra.mxu0 %v476_v41  ;;  %351 = vmatpush1.bf16.msra.mxu1 %v477_v42 }
  0x97   :  { %v38_v6 = vpop.xlane.xlu0 %37 }
  0x98   :  { %v42_v7 = vmul.f32 0.0078125, %v38_v6 }
  0x9a   :  { %v547_v8 = vsub.f32 %v35_v0, %v42_v7  ;;  %v111_v0 = vld [vmem:[%s594_s4] sm:$0xf] }
  0x9b   :  { %v40_v9 = vpop.xlane.xlu0 %39  ;;  %v116_v3 = vrot.slane %v111_v0, %v115_v62  ;;  %v124_v4 = vrot.slane %v111_v0, %v123_v63  ;;  %v128_v6 = vrot.slane %v111_v0, %v127_v2 }
  0x9c   :  { %v43_v10 = vmul.f32 0.0078125, %v40_v9  ;;  %v46_v11 = vmul.f32 %v547_v8, %v547_v8 }
  0x9e   :  { %v551_v12 = vsub.f32 %v36_v1, %v43_v10  ;;  %48 = vadd.xlane.f32.xlu1 %v46_v11  ;;  %v119_v1 = vsub.s32 1, %v114_v61 }
  0xa0   :  { %v47_v13 = vmul.f32 %v551_v12, %v551_v12  ;;  %v120_v5 = vrot.slane %v111_v0, %v119_v1 }
  0xa2   :  { %50 = vadd.xlane.f32.xlu1 %v47_v13 }
 0x127   :  { %v49_v43 = vpop.xlane.xlu1 %48 }
 0x128   :  { %v52_v44 = vmul.f32 0.0078125, %v49_v43 }
 0x12a   :  { %v54_v45 = vadd.f32 1e-05, %v52_v44 }
 0x12b   :  { %v51_v46 = vpop.xlane.xlu1 %50 }
 0x12c   :  { %478 = vrsqrt.f32 %v54_v45  ;;  %v53_v47 = vmul.f32 0.0078125, %v51_v46 }
 0x12e   :  { %v55_v48 = vadd.f32 1e-05, %v53_v47 }
 0x130   :  { %480 = vrsqrt.f32 %v55_v48 }
 0x139   :  { %v479_v49 = vpop.eup %478 }
 0x13a   :  { %v58_v50 = vmul.f32 %v479_v49, %v547_v8 }
 0x13c   :  { %v67_v54 = vmul.f32 %v392_v51, %v58_v50 }
 0x13d   :  { %v481_v52 = vpop.eup %480 }
 0x13e   :  { %v59_v53 = vmul.f32 %v481_v52, %v551_v12  ;;  %v76_v57 = vadd.f32 %v393_v55, %v67_v54 }
 0x140   :  { %v68_v56 = vmul.f32 %v392_v51, %v59_v53 }
 0x142   :  { %v77_v58 = vadd.f32 %v393_v55, %v68_v56 }
 0x144   :  { %v78_v59 = vpack.c.bf16 %v77_v58, %v76_v57 }
 0x146   :  { %326 = vmatmul.mubr.bf16.vlgmr.msra.gmra.mxu0 %v78_v59  ;;  %369 = vmatmul.mubr.bf16.vlgmr.msra.gmra.mxu1 %v78_v59 }
 0x206   :  { %v327_v7 = vpop.f32.mrf.mxu0  ;;  %v370_v8 = vpop.f32.mrf.mxu1 }
 0x207   :  { %v328_v9 = vadd.f32 %v327_v7, %v116_v3  ;;  %v371_v10 = vadd.f32 %v370_v8, %v124_v4 }
 0x208   :  { %v329_v11 = vpop.f32.mrf.mxu0  ;;  %v372_v12 = vpop.f32.mrf.mxu1 }
 0x209   :  { %379 = vst [vmem:[%s595_s5] sm:$0xff] %v328_v9  ;;  %381 = vst [vmem:[%s595_s5 + $0x10] sm:$0xff] %v371_v10  ;;  %v330_v13 = vadd.f32 %v329_v11, %v120_v5  ;;  %v373_v14 = vadd.f32 %v372_v12, %v128_v6 }
 0x20a   :  { %v331_v15 = vpop.f32.mrf.mxu0  ;;  %v374_v16 = vpop.f32.mrf.mxu1 }
 0x20b   :  { %380 = vst [vmem:[%s595_s5 + $0x8] sm:$0xff] %v330_v13  ;;  %382 = vst [vmem:[%s595_s5 + $0x18] sm:$0xff] %v373_v14  ;;  %v332_v17 = vadd.f32 %v331_v15, %v116_v3  ;;  %v375_v18 = vadd.f32 %v374_v16, %v124_v4 }
 0x20c   :  { %v333_v19 = vpop.f32.mrf.mxu0  ;;  %v376_v20 = vpop.f32.mrf.mxu1 }
 0x20d   :  { %383 = vst [vmem:[%s595_s5 + $0x20] sm:$0xff] %v332_v17  ;;  %385 = vst [vmem:[%s595_s5 + $0x30] sm:$0xff] %v375_v18  ;;  %v334_v21 = vadd.f32 %v333_v19, %v120_v5  ;;  %v377_v22 = vadd.f32 %v376_v20, %v128_v6 }
 0x20f   :  { %384 = vst [vmem:[%s595_s5 + $0x28] sm:$0xff] %v334_v21  ;;  %386 = vst [vmem:[%s595_s5 + $0x38] sm:$0xff] %v377_v22 }
 0x210   :  { %391 = vsyncpa [#allocation3], 1 }

// kernel: lstm_decoder_forward.4
= control target key start
LH: loop header
LB: loop body
LE: loop exit
PB: predicated region body
PF: predicated region fallthrough
CT: control target
= control target key end

     0   :  { %14 = vsyncpa [#allocation5], 0  ;;  %s2675_s27 = smov 0   ;;  %s3717_s0 = inlined_call_operand.vmem [shape: f32[8,2,512], index: 0, kind: input, shape index: {}]   ;;  %s3718_s1 = inlined_call_operand.hbm [shape: bf16[128,512], index: 1, kind: input, shape index: {}]   ;;  %s3719_s2 = inlined_call_operand.vmem [shape: bf16[256,512], index: 2, kind: input, shape index: {}]   ;;  %s3720_s3 = inlined_call_operand.vmem [shape: f32[1,512], index: 3, kind: input, shape index: {}]   ;;  %s3721_s4 = inlined_call_operand.vmem [shape: f32[2,2,128], index: 4, kind: input, shape index: {}, may-alias: {4,7}]   ;;  %s3722_s5 = inlined_call_operand.vmem [shape: f32[2,2,128], index: 5, kind: input, shape index: {}, may-alias: {5,8}]   ;;  %s3723_s6 = inlined_call_operand.vmem [shape: f32[8,2,128], index: 6, kind: output, shape index: {0}]   ;;  %s3724_s7 = inlined_call_operand.vmem [shape: f32[2,2,128], index: 7, kind: output, shape index: {1}, may-alias: {4,7}]   ;;  %s3725_s8 = inlined_call_operand.vmem [shape: f32[2,2,128], index: 8, kind: output, shape index: {2}, may-alias: {5,8}]  }
   0x1 LB: > { %s2681_s28 = sadd.s32 4294967295, %s2623_s27   ;;  %p2055_p0 = scmp.ge.s32.totalorder %s2623_s27, 1  ;;  %s2623_s27 = sphi %s2675_s27, %s20_s27  }
   0x2   : > { %p224_p1 = scmp.lt.s32.totalorder %s2623_s27, 3  ;;  %s2625_s29 = smov [#allocation4]  }
   0x3   : > { %s236_s30 = sshll.u32 %s2625_s29, 4  ;;  %p2204_p4 = scmp.eq.s32.totalorder %s2681_s28, 0  ;;  %s237_s30 = int_to_ptr.vmem [resolvable:$true] %s236_s30 }
   0x4   : > { %p2686_p3 = pnand %p2055_p0, %p224_p1  ;;  %s2598_s10 = scalar_lea.vmem %s237_s30, 4096 }
   0x5   : > { %p2599_p8 = scmp.ne.s32.totalorder %s237_s30, %s2598_s10  ;;  %p2606_p11 = scmp.lt.s32.totalorder %s237_s30, %s237_s30 }
   0x6   : > { %p2200_p5 = pneg %p2686_p3  ;;  %p2607_p12 = scmp.lt.s32.totalorder %s2598_s10, %s2598_s10 }
   0x8   : > { %p2201_p6 = pnand %p2204_p4, %p2200_p5  ;;  %p2608_p13 = por %p2607_p12, %p2606_p11 }
   0xa   : > { %p2589_p7 = pneg %p2201_p6 }
   0xc   : > { %p2601_p9 = pnand %p2599_p8, %p2589_p7 }
   0xe   : > { %p2602_p10 = pneg %p2601_p9 }
  0x10   : > { %p2609_p2 = pnand %p2608_p13, %p2602_p10 }
  0x12   : > { %2612 = shalt.err (!%p2609_p2)
}
  0x13   : > { %s2626_s11 = smov 256   ;;  %s2627_s12 = smov 16  }
  0x14   : > { %2203 = dma.hbm_to_vmem [thread:$0]  (!%p2201_p6), %s3718_s1, 4096, %s237_s30, [#allocation5], %s2626_s11, %s2626_s11, %s2627_s12  }
  0x15   : > { %274 = sbr.rel (%p2686_p3) target bundleno = 1464 (0x5b8), region = 44 }
  0x1a   : > { %2618 = dma.done.wait (%p2204_p4), [#allocation5], 4096  }
  0x1b   : > { %2620 = vsyncadd (%p2204_p4), [#allocation5], 4294963200  ;;  %s2060_s15 = sshll.u32 %s2681_s28, 2  ;;  %p3843_p1 = scmp.ne.s32.totalorder %s2681_s28, 0 }
  0x1c   : > { %p310_p0 = scmp.lt.s32.totalorder %s2060_s15, 7 }
  0x1d   : > { %326 = sbr.rel (%p3843_p1) target bundleno = 37 (0x25), region = 52 }
  0x1e   : > { %s3997_s15 = smov (!%p310_p0, %s2060_s15), 7 }
  0x1f   : > { %s2195_s16 = sshll.u32 %s3997_s15, 3  ;;  %s2064_s17 = sshll.u32 %s3997_s15, 1 }
  0x20   : > { %s2708_s20 = scalar_lea.vmem %s3717_s0, %s2195_s16  ;;  %s2713_s23 = scalar_lea.vmem %s3723_s6, %s2064_s17 }
  0x22   : > { %v327_v0 = vld [vmem:[%s3721_s4] sm:$0xf]  }
  0x23   : > { %v331_v1 = vld [vmem:[%s3722_s5] sm:$0xf]   ;;  %329 = vst [vmem:[#allocation2] sm:$0xf] %v327_v0  }
  0x24   : > { %333 = vst [vmem:[#allocation3] sm:$0xf] %v331_v1  }
  0x25 PF: > { %v2723_v2 = vld [vmem:[#allocation4 + $0xe4] ss:$16 sps:$4 sm:$0xff]   ;;  %v2725_v3 = vld [vmem:[#allocation4 + $0xec] ss:$16 sps:$4 sm:$0xff]   ;;  %v3726_v4 = vmov 0   ;;  %p2192_p2 = scmp.ne.s32.totalorder %s2681_s28, 1 }
  0x26   : > { %3844 = vst [vmem:[#allocation7_spill] sm:$0xff] %v2723_v2  ;;  %3845 = vst [vmem:[#allocation8_spill] sm:$0xff] %v2725_v3  ;;  %627 = vmatprep.mubr.bf16.mxu0 %v3726_v4  ;;  %668 = vmatprep.mubr.bf16.mxu1 %v3726_v4  ;;  %v2730_v5 = vld [vmem:[#allocation4 + $0xe0] ss:$16 sps:$4 sm:$0xff]   ;;  %v2732_v6 = vld [vmem:[#allocation4 + $0xe8] ss:$16 sps:$4 sm:$0xff]  }
  0x27   : > { %595 = vmatprep.subr.bf16.mxu0 %v2723_v2  ;;  %636 = vmatprep.subr.bf16.mxu1 %v2725_v3  ;;  %v2735_v7 = vld [vmem:[#allocation4 + $0xc4] ss:$16 sps:$4 sm:$0xff]   ;;  %v2739_v8 = vld [vmem:[#allocation4 + $0xcc] ss:$16 sps:$4 sm:$0xff]   ;;  %v2741_v9 = vld [vmem:[#allocation4 + $0xc0] ss:$16 sps:$4 sm:$0xff]  }
  0x28   : > { %596 = vmatpush1.bf16.msra.mxu0 %v2730_v5  ;;  %637 = vmatpush1.bf16.msra.mxu1 %v2732_v6  ;;  %v2744_v10 = vld [vmem:[#allocation4 + $0xc8] ss:$16 sps:$4 sm:$0xff]   ;;  %v2747_v11 = vld [vmem:[#allocation4 + $0xa4] ss:$16 sps:$4 sm:$0xff]   ;;  %v2749_v12 = vld [vmem:[#allocation4 + $0xac] ss:$16 sps:$4 sm:$0xff]  }
  0x29   : > { %597 = vmatprep.subr.bf16.mxu0 %v2735_v7  ;;  %638 = vmatprep.subr.bf16.mxu1 %v2739_v8  ;;  %v2751_v13 = vld [vmem:[#allocation4 + $0xa0] ss:$16 sps:$4 sm:$0xff]   ;;  %v2753_v14 = vld [vmem:[#allocation4 + $0xa8] ss:$16 sps:$4 sm:$0xff]   ;;  %v2757_v15 = vld [vmem:[#allocation4 + $0x84] ss:$16 sps:$4 sm:$0xff]  }
  0x2a   : > { %v2761_v16 = vld [vmem:[#allocation4 + $0x8c] ss:$16 sps:$4 sm:$0xff]   ;;  %v2763_v17 = vld [vmem:[#allocation4 + $0x80] ss:$16 sps:$4 sm:$0xff]   ;;  %v2767_v18 = vld [vmem:[#allocation4 + $0x88] ss:$16 sps:$4 sm:$0xff]  }
  0x2b   : > { %v2769_v19 = vld [vmem:[#allocation4 + $0x64] ss:$16 sps:$4 sm:$0xff]   ;;  %v2773_v20 = vld [vmem:[#allocation4 + $0x6c] ss:$16 sps:$4 sm:$0xff]   ;;  %v2775_v21 = vld [vmem:[#allocation4 + $0x60] ss:$16 sps:$4 sm:$0xff]  }
  0x2c   : > { %598 = vmatpush1.bf16.msra.mxu0 %v2741_v9  ;;  %639 = vmatpush1.bf16.msra.mxu1 %v2744_v10  ;;  %v2777_v22 = vld [vmem:[#allocation4 + $0x68] ss:$16 sps:$4 sm:$0xff]   ;;  %v2781_v23 = vld [vmem:[#allocation4 + $0x44] ss:$16 sps:$4 sm:$0xff]   ;;  %v2785_v24 = vld [vmem:[#allocation4 + $0x4c] ss:$16 sps:$4 sm:$0xff]  }
  0x2d   : > { %599 = vmatprep.subr.bf16.mxu0 %v2747_v11  ;;  %640 = vmatprep.subr.bf16.mxu1 %v2749_v12  ;;  %v2789_v25 = vld [vmem:[#allocation4 + $0x40] ss:$16 sps:$4 sm:$0xff]   ;;  %v2791_v26 = vld [vmem:[#allocation4 + $0x48] ss:$16 sps:$4 sm:$0xff]   ;;  %v2795_v27 = vld [vmem:[#allocation4 + $0x24] ss:$16 sps:$4 sm:$0xff]  }
  0x2e   : > { %v2797_v28 = vld [vmem:[#allocation4 + $0x2c] ss:$16 sps:$4 sm:$0xff]   ;;  %v2799_v29 = vld [vmem:[#allocation4 + $0x20] ss:$16 sps:$4 sm:$0xff]   ;;  %v2801_v30 = vld [vmem:[#allocation4 + $0x28] ss:$16 sps:$4 sm:$0xff]  }
  0x2f   : > { %v2803_v31 = vld [vmem:[#allocation4 + $0x4] ss:$16 sps:$4 sm:$0xff]   ;;  %v2805_v32 = vld [vmem:[#allocation4 + $0xc] ss:$16 sps:$4 sm:$0xff]   ;;  %v2811_v33 = vld [vmem:[#allocation4] ss:$16 sps:$4 sm:$0xff]  }
  0x30   : > { %600 = vmatpush1.bf16.msra.mxu0 %v2751_v13  ;;  %641 = vmatpush1.bf16.msra.mxu1 %v2753_v14  ;;  %v2813_v34 = vld [vmem:[#allocation4 + $0x8] ss:$16 sps:$4 sm:$0xff]   ;;  %v2824_v37 = vld [vmem:[%s3719_s2 + $0xe4] ss:$16 sps:$4 sm:$0xff]   ;;  %v2829_v38 = vld [vmem:[%s3719_s2 + $0xec] ss:$16 sps:$4 sm:$0xff]  }
  0x31   : > { %601 = vmatprep.subr.bf16.mxu0 %v2757_v15  ;;  %642 = vmatprep.subr.bf16.mxu1 %v2761_v16  ;;  %v433_v35 = vld [vmem:[#allocation2] sm:$0x3]  ;;  %v2839_v40 = vld [vmem:[%s3719_s2 + $0xe8] ss:$16 sps:$4 sm:$0xff]   ;;  %v2848_v41 = vld [vmem:[%s3719_s2 + $0xc4] ss:$16 sps:$4 sm:$0xff]  }
  0x32   : > { %v434_v36 = vpack.c.bf16 %v433_v35, %v433_v35  ;;  %v2834_v39 = vld [vmem:[%s3719_s2 + $0xe0] ss:$16 sps:$4 sm:$0xff]   ;;  %v2853_v42 = vld [vmem:[%s3719_s2 + $0xcc] ss:$16 sps:$4 sm:$0xff]   ;;  %v2863_v44 = vld [vmem:[%s3719_s2 + $0xc8] ss:$16 sps:$4 sm:$0xff]  }
  0x33   : > { %v2858_v43 = vld [vmem:[%s3719_s2 + $0xc0] ss:$16 sps:$4 sm:$0xff]   ;;  %v2872_v45 = vld [vmem:[%s3719_s2 + $0xa4] ss:$16 sps:$4 sm:$0xff]   ;;  %v2877_v46 = vld [vmem:[%s3719_s2 + $0xac] ss:$16 sps:$4 sm:$0xff]  }
  0x34   : > { %602 = vmatpush1.bf16.msra.mxu0 %v2763_v17  ;;  %643 = vmatpush1.bf16.msra.mxu1 %v2767_v18  ;;  %v2882_v47 = vld [vmem:[%s3719_s2 + $0xa0] ss:$16 sps:$4 sm:$0xff]   ;;  %v2887_v48 = vld [vmem:[%s3719_s2 + $0xa8] ss:$16 sps:$4 sm:$0xff]   ;;  %v2896_v49 = vld [vmem:[%s3719_s2 + $0x84] ss:$16 sps:$4 sm:$0xff]  }
  0x35   : > { %603 = vmatprep.subr.bf16.mxu0 %v2769_v19  ;;  %644 = vmatprep.subr.bf16.mxu1 %v2773_v20  ;;  %v2901_v50 = vld [vmem:[%s3719_s2 + $0x8c] ss:$16 sps:$4 sm:$0xff]   ;;  %v2906_v51 = vld [vmem:[%s3719_s2 + $0x80] ss:$16 sps:$4 sm:$0xff]   ;;  %v2911_v52 = vld [vmem:[%s3719_s2 + $0x88] ss:$16 sps:$4 sm:$0xff]  }
  0x36   : > { %3846 = vst [vmem:[#allocation9_spill] sm:$0xff] %v2901_v50  ;;  %3847 = vst [vmem:[#allocation10_spill] sm:$0xff] %v2906_v51  ;;  %v2920_v53 = vld [vmem:[%s3719_s2 + $0x64] ss:$16 sps:$4 sm:$0xff]   ;;  %v2925_v54 = vld [vmem:[%s3719_s2 + $0x6c] ss:$16 sps:$4 sm:$0xff]  }
  0x37   : > { %3848 = vst [vmem:[#allocation11_spill] sm:$0xff] %v2911_v52  ;;  %3849 = vst [vmem:[#allocation12_spill] sm:$0xff] %v2920_v53  ;;  %v2930_v55 = vld [vmem:[%s3719_s2 + $0x60] ss:$16 sps:$4 sm:$0xff]   ;;  %v2935_v56 = vld [vmem:[%s3719_s2 + $0x68] ss:$16 sps:$4 sm:$0xff]  }
  0x38   : > { %604 = vmatpush1.bf16.msra.mxu0 %v2775_v21  ;;  %645 = vmatpush1.bf16.msra.mxu1 %v2777_v22  ;;  %3850 = vst [vmem:[#allocation13_spill] sm:$0xff] %v2925_v54  ;;  %3851 = vst [vmem:[#allocation14_spill] sm:$0xff] %v2930_v55  ;;  %v2944_v57 = vld [vmem:[%s3719_s2 + $0x44] ss:$16 sps:$4 sm:$0xff]   ;;  %v2949_v58 = vld [vmem:[%s3719_s2 + $0x4c] ss:$16 sps:$4 sm:$0xff]  }
  0x39   : > { %605 = vmatprep.subr.bf16.mxu0 %v2781_v23  ;;  %646 = vmatprep.subr.bf16.mxu1 %v2785_v24  ;;  %3852 = vst [vmem:[#allocation15_spill] sm:$0xff] %v2935_v56  ;;  %3853 = vst [vmem:[#allocation16_spill] sm:$0xff] %v2944_v57  ;;  %v2954_v59 = vld [vmem:[%s3719_s2 + $0x40] ss:$16 sps:$4 sm:$0xff]   ;;  %v2959_v60 = vld [vmem:[%s3719_s2 + $0x48] ss:$16 sps:$4 sm:$0xff]  }
  0x3a   : > { %3854 = vst [vmem:[#allocation17_spill] sm:$0xff] %v2949_v58  ;;  %3855 = vst [vmem:[#allocation18_spill] sm:$0xff] %v2954_v59  ;;  %v2968_v61 = vld [vmem:[%s3719_s2 + $0x24] ss:$16 sps:$4 sm:$0xff]   ;;  %v2973_v62 = vld [vmem:[%s3719_s2 + $0x2c] ss:$16 sps:$4 sm:$0xff]  }
  0x3b   : > { %3856 = vst [vmem:[#allocation19_spill] sm:$0xff] %v2959_v60  ;;  %3857 = vst [vmem:[#allocation20_spill] sm:$0xff] %v2968_v61  ;;  %v2978_v63 = vld [vmem:[%s3719_s2 + $0x20] ss:$16 sps:$4 sm:$0xff]   ;;  %v2983_v0 = vld [vmem:[%s3719_s2 + $0x28] ss:$16 sps:$4 sm:$0xff]  }
  0x3c   : > { %606 = vmatpush1.bf16.msra.mxu0 %v2789_v25  ;;  %647 = vmatpush1.bf16.msra.mxu1 %v2791_v26  ;;  %3858 = vst [vmem:[#allocation21_spill] sm:$0xff] %v2973_v62  ;;  %3859 = vst [vmem:[#allocation22_spill] sm:$0xff] %v2978_v63  ;;  %v2992_v1 = vld [vmem:[%s3719_s2 + $0x4] ss:$16 sps:$4 sm:$0xff]   ;;  %v2997_v35 = vld [vmem:[%s3719_s2 + $0xc] ss:$16 sps:$4 sm:$0xff]  }
  0x3d   : > { %607 = vmatprep.subr.bf16.mxu0 %v2795_v27  ;;  %648 = vmatprep.subr.bf16.mxu1 %v2797_v28  ;;  %3860 = vst [vmem:[#allocation23_spill] sm:$0xff] %v2983_v0  ;;  %3861 = vst [vmem:[#allocation24_spill] sm:$0xff] %v2992_v1  ;;  %v3007_v4 = vld [vmem:[%s3719_s2 + $0x8] ss:$16 sps:$4 sm:$0xff]  }
  0x3e   : > { %3862 = vst [vmem:[#allocation25_spill] sm:$0xff] %v2997_v35  ;;  %3864 = vst [vmem:[#allocation27_spill] sm:$0xff] %v3007_v4 }
  0x40   : > { %608 = vmatpush1.bf16.msra.mxu0 %v2799_v29  ;;  %649 = vmatpush1.bf16.msra.mxu1 %v2801_v30 }
  0x41   : > { %609 = vmatprep.subr.bf16.mxu0 %v2803_v31  ;;  %650 = vmatprep.subr.bf16.mxu1 %v2805_v32 }
  0x44   : > { %610 = vmatpush1.bf16.msra.mxu0 %v2811_v33  ;;  %651 = vmatpush1.bf16.msra.mxu1 %v2813_v34 }
  0x45   : > { %1079 = vmatprep.subr.bf16.mxu0 %v2824_v37  ;;  %1120 = vmatprep.subr.bf16.mxu1 %v2829_v38 }
  0x47   : > { %628 = vmatmul.mubr.bf16.vlgmr.msra.gmra.mxu0 %v434_v36  ;;  %669 = vmatmul.mubr.bf16.vlgmr.msra.gmra.mxu1 %v434_v36  ;;  %v3002_v36 = vld [vmem:[%s3719_s2] ss:$16 sps:$4 sm:$0xff]  }
  0x48   : > { %1080 = vmatpush1.bf16.msra.mxu0 %v2834_v39  ;;  %1121 = vmatpush1.bf16.msra.mxu1 %v2839_v40  ;;  %3863 = vst [vmem:[#allocation26_spill] sm:$0xff] %v3002_v36 }
  0x49   : > { %1081 = vmatprep.subr.bf16.mxu0 %v2848_v41  ;;  %1122 = vmatprep.subr.bf16.mxu1 %v2853_v42 }
  0x4c   : > { %1082 = vmatpush1.bf16.msra.mxu0 %v2858_v43  ;;  %1123 = vmatpush1.bf16.msra.mxu1 %v2863_v44 }
  0x4d   : > { %1083 = vmatprep.subr.bf16.mxu0 %v2872_v45  ;;  %1124 = vmatprep.subr.bf16.mxu1 %v2877_v46 }
  0x50   : > { %1084 = vmatpush1.bf16.msra.mxu0 %v2882_v47  ;;  %1125 = vmatpush1.bf16.msra.mxu1 %v2887_v48 }
  0x51   : > { %1085 = vmatprep.subr.bf16.mxu0 %v2896_v49  ;;  %1126 = vmatprep.subr.bf16.mxu1 %v2901_v50 }
  0x54   : > { %1086 = vmatpush1.bf16.msra.mxu0 %v2906_v51  ;;  %1127 = vmatpush1.bf16.msra.mxu1 %v2911_v52 }
  0x55   : > { %1087 = vmatprep.subr.bf16.mxu0 %v2920_v53  ;;  %1128 = vmatprep.subr.bf16.mxu1 %v2925_v54 }
  0x58   : > { %1088 = vmatpush1.bf16.msra.mxu0 %v2930_v55  ;;  %1129 = vmatpush1.bf16.msra.mxu1 %v2935_v56 }
  0x59   : > { %1089 = vmatprep.subr.bf16.mxu0 %v2944_v57  ;;  %1130 = vmatprep.subr.bf16.mxu1 %v2949_v58 }
  0x5c   : > { %1090 = vmatpush1.bf16.msra.mxu0 %v2954_v59  ;;  %1131 = vmatpush1.bf16.msra.mxu1 %v2959_v60 }
  0x5d   : > { %1091 = vmatprep.subr.bf16.mxu0 %v2968_v61  ;;  %1132 = vmatprep.subr.bf16.mxu1 %v2973_v62  ;;  %v3050_v62 = vld [vmem:[%s3719_s2 + $0x1c0] ss:$16 sps:$4 sm:$0xff]   ;;  %v3055_v61 = vld [vmem:[%s3719_s2 + $0x1c8] ss:$16 sps:$4 sm:$0xff]  }
  0x5e   : > { %3871 = vst [vmem:[#allocation34_spill] sm:$0xff] %v3050_v62  ;;  %3872 = vst [vmem:[#allocation35_spill] sm:$0xff] %v3055_v61 }
  0x60   : > { %1092 = vmatpush1.bf16.msra.mxu0 %v2978_v63  ;;  %1133 = vmatpush1.bf16.msra.mxu1 %v2983_v0  ;;  %v3016_v0 = vld [vmem:[%s3719_s2 + $0x1e4] ss:$16 sps:$4 sm:$0xff]   ;;  %v3021_v63 = vld [vmem:[%s3719_s2 + $0x1ec] ss:$16 sps:$4 sm:$0xff]  }
  0x61   : > { %1093 = vmatprep.subr.bf16.mxu0 %v2992_v1  ;;  %1134 = vmatprep.subr.bf16.mxu1 %v2997_v35  ;;  %3865 = vst [vmem:[#allocation28_spill] sm:$0xff] %v3016_v0  ;;  %3866 = vst [vmem:[#allocation29_spill] sm:$0xff] %v3021_v63  ;;  %v3026_v1 = vld [vmem:[%s3719_s2 + $0x1e0] ss:$16 sps:$4 sm:$0xff]   ;;  %v3041_v35 = vld [vmem:[%s3719_s2 + $0x1cc] ss:$16 sps:$4 sm:$0xff]  }
  0x62   : > { %3867 = vst [vmem:[#allocation30_spill] sm:$0xff] %v3026_v1  ;;  %3870 = vst [vmem:[#allocation33_spill] sm:$0xff] %v3041_v35 }
  0x64   : > { %1094 = vmatpush1.bf16.msra.mxu0 %v3002_v36  ;;  %1135 = vmatpush1.bf16.msra.mxu1 %v3007_v4  ;;  %v3031_v36 = vld [vmem:[%s3719_s2 + $0x1e8] ss:$16 sps:$4 sm:$0xff]   ;;  %v3036_v4 = vld [vmem:[%s3719_s2 + $0x1c4] ss:$16 sps:$4 sm:$0xff]  }
  0x65   : > { %3868 = vst [vmem:[#allocation31_spill] sm:$0xff] %v3031_v36  ;;  %3869 = vst [vmem:[#allocation32_spill] sm:$0xff] %v3036_v4  ;;  %1095 = vmatprep.subr.bf16.mxu0 %v3016_v0  ;;  %1136 = vmatprep.subr.bf16.mxu1 %v3021_v63  ;;  %v735_v63 = vld [vmem:[#allocation2 + $0x2] sm:$0x3] }
  0x66   : > { %v737_v0 = vpack.c.bf16 %v735_v63, %v735_v63  ;;  %v3110_v63 = vld [vmem:[%s3719_s2 + $0x164] ss:$16 sps:$4 sm:$0xff]  }
  0x67   : > { %3881 = vst [vmem:[#allocation44_spill] sm:$0xff] %v3110_v63 }
  0x68   : > { %1096 = vmatpush2.bf16.msra.mxu0 %v3026_v1  ;;  %1137 = vmatpush2.bf16.msra.mxu1 %v3031_v36  ;;  %v3062_v1 = vld [vmem:[%s3719_s2 + $0x1a4] ss:$16 sps:$4 sm:$0xff]   ;;  %v3067_v36 = vld [vmem:[%s3719_s2 + $0x1ac] ss:$16 sps:$4 sm:$0xff]  }
  0x69   : > { %1097 = vmatprep.subr.bf16.mxu0 %v3036_v4  ;;  %1138 = vmatprep.subr.bf16.mxu1 %v3041_v35  ;;  %3873 = vst [vmem:[#allocation36_spill] sm:$0xff] %v3062_v1  ;;  %3874 = vst [vmem:[#allocation37_spill] sm:$0xff] %v3067_v36  ;;  %v3074_v4 = vld [vmem:[%s3719_s2 + $0x1a0] ss:$16 sps:$4 sm:$0xff]   ;;  %v3079_v35 = vld [vmem:[%s3719_s2 + $0x1a8] ss:$16 sps:$4 sm:$0xff]  }
  0x6a   : > { %3875 = vst [vmem:[#allocation38_spill] sm:$0xff] %v3074_v4  ;;  %3876 = vst [vmem:[#allocation39_spill] sm:$0xff] %v3079_v35  ;;  %1111 = vmatprep.mubr.bf16.mxu0 %v737_v0  ;;  %1152 = vmatprep.mubr.bf16.mxu1 %v737_v0  ;;  %v3134_v0 = vld [vmem:[%s3719_s2 + $0x144] ss:$16 sps:$4 sm:$0xff]  }
  0x6b   : > { %3885 = vst [vmem:[#allocation48_spill] sm:$0xff] %v3134_v0 }
  0x6c   : > { %1098 = vmatpush2.bf16.msra.mxu0 %v3050_v62  ;;  %1139 = vmatpush2.bf16.msra.mxu1 %v3055_v61  ;;  %v3086_v62 = vld [vmem:[%s3719_s2 + $0x184] ss:$16 sps:$4 sm:$0xff]   ;;  %v3091_v61 = vld [vmem:[%s3719_s2 + $0x18c] ss:$16 sps:$4 sm:$0xff]  }
  0x6d   : > { %1099 = vmatprep.subr.bf16.mxu0 %v3062_v1  ;;  %1140 = vmatprep.subr.bf16.mxu1 %v3067_v36  ;;  %3877 = vst [vmem:[#allocation40_spill] sm:$0xff] %v3086_v62  ;;  %3878 = vst [vmem:[#allocation41_spill] sm:$0xff] %v3091_v61  ;;  %v3098_v36 = vld [vmem:[%s3719_s2 + $0x180] ss:$16 sps:$4 sm:$0xff]   ;;  %v3103_v1 = vld [vmem:[%s3719_s2 + $0x188] ss:$16 sps:$4 sm:$0xff]  }
  0x6e   : > { %3879 = vst [vmem:[#allocation42_spill] sm:$0xff] %v3098_v36  ;;  %3880 = vst [vmem:[#allocation43_spill] sm:$0xff] %v3103_v1 }
  0x70   : > { %1100 = vmatpush2.bf16.msra.mxu0 %v3074_v4  ;;  %1141 = vmatpush2.bf16.msra.mxu1 %v3079_v35  ;;  %v3115_v35 = vld [vmem:[%s3719_s2 + $0x16c] ss:$16 sps:$4 sm:$0xff]  }
  0x71   : > { %1101 = vmatprep.subr.bf16.mxu0 %v3086_v62  ;;  %1142 = vmatprep.subr.bf16.mxu1 %v3091_v61  ;;  %3882 = vst [vmem:[#allocation45_spill] sm:$0xff] %v3115_v35  ;;  %v3122_v61 = vld [vmem:[%s3719_s2 + $0x160] ss:$16 sps:$4 sm:$0xff]   ;;  %v3127_v62 = vld [vmem:[%s3719_s2 + $0x168] ss:$16 sps:$4 sm:$0xff]  }
  0x72   : > { %3883 = vst [vmem:[#allocation46_spill] sm:$0xff] %v3122_v61  ;;  %3884 = vst [vmem:[#allocation47_spill] sm:$0xff] %v3127_v62 }
  0x74   : > { %1102 = vmatpush2.bf16.msra.mxu0 %v3098_v36  ;;  %1143 = vmatpush2.bf16.msra.mxu1 %v3103_v1  ;;  %v3139_v1 = vld [vmem:[%s3719_s2 + $0x14c] ss:$16 sps:$4 sm:$0xff]   ;;  %v686_v36 = vlaneseq }
  0x75   : > { %1103 = vmatprep.subr.bf16.mxu0 %v3110_v63  ;;  %1144 = vmatprep.subr.bf16.mxu1 %v3115_v35  ;;  %3886 = vst [vmem:[#allocation49_spill] sm:$0xff] %v3139_v1  ;;  %v3146_v63 = vld [vmem:[%s3719_s2 + $0x140] ss:$16 sps:$4 sm:$0xff]   ;;  %v3151_v35 = vld [vmem:[%s3719_s2 + $0x148] ss:$16 sps:$4 sm:$0xff]  }
  0x76   : > { %3887 = vst [vmem:[#allocation50_spill] sm:$0xff] %v3146_v63  ;;  %3888 = vst [vmem:[#allocation51_spill] sm:$0xff] %v3151_v35  ;;  %v3207_v60 = vshrl.u32 %v686_v36, 7 }
  0x78   : > { %1104 = vmatpush2.bf16.msra.mxu0 %v3122_v61  ;;  %1145 = vmatpush2.bf16.msra.mxu1 %v3127_v62  ;;  %v3158_v61 = vld [vmem:[%s3719_s2 + $0x124] ss:$16 sps:$4 sm:$0xff]   ;;  %v3163_v62 = vld [vmem:[%s3719_s2 + $0x12c] ss:$16 sps:$4 sm:$0xff]   ;;  %3897 = vst [vmem:[#allocation60_spill] sm:$0xff] %v3207_v60 }
  0x79   : > { %1105 = vmatprep.subr.bf16.mxu0 %v3134_v0  ;;  %1146 = vmatprep.subr.bf16.mxu1 %v3139_v1  ;;  %3889 = vst [vmem:[#allocation52_spill] sm:$0xff] %v3158_v61  ;;  %3890 = vst [vmem:[#allocation53_spill] sm:$0xff] %v3163_v62  ;;  %v3170_v0 = vld [vmem:[%s3719_s2 + $0x120] ss:$16 sps:$4 sm:$0xff]   ;;  %v3175_v1 = vld [vmem:[%s3719_s2 + $0x128] ss:$16 sps:$4 sm:$0xff]  }
  0x7a   : > { %3891 = vst [vmem:[#allocation54_spill] sm:$0xff] %v3170_v0  ;;  %3892 = vst [vmem:[#allocation55_spill] sm:$0xff] %v3175_v1 }
  0x7c   : > { %1106 = vmatpush2.bf16.msra.mxu0 %v3146_v63  ;;  %1147 = vmatpush2.bf16.msra.mxu1 %v3151_v35  ;;  %v3182_v63 = vld [vmem:[%s3719_s2 + $0x104] ss:$16 sps:$4 sm:$0xff]   ;;  %v3187_v35 = vld [vmem:[%s3719_s2 + $0x10c] ss:$16 sps:$4 sm:$0xff]  }
  0x7d   : > { %1107 = vmatprep.subr.bf16.mxu0 %v3158_v61  ;;  %1148 = vmatprep.subr.bf16.mxu1 %v3163_v62  ;;  %3893 = vst [vmem:[#allocation56_spill] sm:$0xff] %v3182_v63  ;;  %3894 = vst [vmem:[#allocation57_spill] sm:$0xff] %v3187_v35  ;;  %v3194_v61 = vld [vmem:[%s3719_s2 + $0x100] ss:$16 sps:$4 sm:$0xff]   ;;  %v3199_v62 = vld [vmem:[%s3719_s2 + $0x108] ss:$16 sps:$4 sm:$0xff]  }
  0x7e   : > { %3895 = vst [vmem:[#allocation58_spill] sm:$0xff] %v3194_v61  ;;  %3896 = vst [vmem:[#allocation59_spill] sm:$0xff] %v3199_v62 }
  0x80   : > { %1108 = vmatpush2.bf16.msra.mxu0 %v3170_v0  ;;  %1149 = vmatpush2.bf16.msra.mxu1 %v3175_v1  ;;  %v2629_v1 = vmov 1983009808  }
  0x81   : > { %1109 = vmatprep.subr.bf16.mxu0 %v3182_v63  ;;  %1150 = vmatprep.subr.bf16.mxu1 %v3187_v35  ;;  %v684_v0 = vunpack.c.l.s4 %v2629_v1  ;;  %v432_v1 = vld [vmem:[%s2708_s20] sm:$0xff] }
  0x83   : > { %v685_v4 = vunpack.c.0.s8 %v684_v0 }
  0x84   : > { %1110 = vmatpush2.bf16.msra.mxu0 %v3194_v61  ;;  %1151 = vmatpush2.bf16.msra.mxu1 %v3199_v62 }
  0x85   : > { %1194 = vmatprep.subr.bf16.mxu0 %v2723_v2  ;;  %1235 = vmatprep.subr.bf16.mxu1 %v2725_v3  ;;  %v3210_v63 = vsub.s32 %v685_v4, %v3207_v60 }
 0x107   : > { %v629_v59 = vpop.f32.mrf.mxu0  ;;  %v670_v58 = vpop.f32.mrf.mxu1 }
 0x109   : > { %v631_v35 = vpop.f32.mrf.mxu0  ;;  %v672_v61 = vpop.f32.mrf.mxu1 }
 0x10a   : > { %v681_v57 = vcombine.low %v629_v59, %v631_v35  ;;  %v682_v62 = vcombine.low %v670_v58, %v672_v61 }
 0x10b   : > { %v633_v56 = vpop.f32.mrf.mxu0  ;;  %v674_v2 = vpop.f32.mrf.mxu1 }
 0x10c   : > { %v689_v3 = vrot.slane %v681_v57, %v3210_v63  ;;  %v696_v55 = vrot.slane %v682_v62, %v3210_v63 }
 0x10d   : > { %v634_v54 = vpop.f32.mrf.mxu0  ;;  %v675_v0 = vpop.f32.mrf.mxu1 }
 0x10e   : > { %v697_v36 = vcombine.low %v689_v3, %v696_v55  ;;  %v700_v3 = vld [vmem:[#allocation3] sm:$0x3] }
 0x110   : > { %v699_v53 = vadd.f32 %v697_v36, %v432_v1  ;;  %v3898_v36 = vmov 0  }
 0x112   : > { %v2098_v52 = vmul.f32 -1.442695, %v699_v53  ;;  %v708_v51 = vrot.slane %v699_v53, 2  ;;  %v719_v60 = vrot.slane %v699_v53, 6  ;;  %v716_v58 = vrot.slane %v699_v53, 4 }
 0x114   : > { %2363 = vpow2.f32 %v2098_v52  ;;  %v2099_v4 = vmul.f32 -1.442695, %v708_v51  ;;  %v2100_v50 = vmul.f32 -1.442695, %v719_v60 }
 0x116   : > { %2365 = vpow2.f32 %v2099_v4  ;;  %v3917_v4 = vld [vmem:[#allocation27_spill] sm:$0xff] }
 0x117   : > { %2367 = vpow2.f32 %v2100_v50 }
 0x121   : > { %v2364_v59 = vpop.eup %2363 }
 0x122   : > { %v704_v56 = vadd.f32 1.0, %v2364_v59  ;;  %v3918_v59 = vld [vmem:[#allocation28_spill] sm:$0xff] }
 0x123   : > { %v2366_v2 = vpop.eup %2365 }
 0x124   : > { %2369 = vrcp.f32 %v704_v56  ;;  %v713_v57 = vadd.f32 1.0, %v2366_v2  ;;  %v2368_v54 = vpop.eup %2367  ;;  %v3920_v56 = vld [vmem:[#allocation30_spill] sm:$0xff]  ;;  %v3921_v2 = vld [vmem:[#allocation31_spill] sm:$0xff] }
 0x125   : > { %2371 = vtanh.f32 %v716_v58  ;;  %v724_v35 = vadd.f32 1.0, %v2368_v54  ;;  %v3919_v58 = vld [vmem:[#allocation29_spill] sm:$0xff] }
 0x126   : > { %2373 = vrcp.f32 %v713_v57  ;;  %v3922_v57 = vld [vmem:[#allocation32_spill] sm:$0xff]  ;;  %v3923_v54 = vld [vmem:[#allocation33_spill] sm:$0xff] }
 0x127   : > { %2375 = vrcp.f32 %v724_v35  ;;  %v3928_v35 = vld [vmem:[#allocation38_spill] sm:$0xff] }
 0x131   : > { %v2370_v61 = vpop.eup %2369 }
 0x132   : > { %v2372_v55 = vpop.eup %2371 }
 0x133   : > { %v2374_v62 = vpop.eup %2373  ;;  %v728_v51 = vmul.f32 %v2372_v55, %v2370_v61  ;;  %v3924_v61 = vld [vmem:[#allocation34_spill] sm:$0xff]  ;;  %v3926_v55 = vld [vmem:[#allocation36_spill] sm:$0xff] }
 0x134   : > { %v727_v52 = vmul.f32 %v2374_v62, %v700_v3  ;;  %v2376_v53 = vpop.eup %2375  ;;  %v3925_v3 = vld [vmem:[#allocation35_spill] sm:$0xff]  ;;  %v3927_v62 = vld [vmem:[#allocation37_spill] sm:$0xff] }
 0x136   : > { %v729_v1 = vadd.f32 %v728_v51, %v727_v52  ;;  %v3929_v52 = vld [vmem:[#allocation39_spill] sm:$0xff]  ;;  %v3930_v51 = vld [vmem:[#allocation40_spill] sm:$0xff] }
 0x138   : > { %2377 = vtanh.f32 %v729_v1  ;;  %733 = vst [vmem:[#allocation3] sm:$0x3] %v729_v1  ;;  %v3931_v1 = vld [vmem:[#allocation41_spill] sm:$0xff] }
 0x145   : > { %v2378_v60 = vpop.eup %2377 }
 0x146   : > { %v731_v0 = vmul.f32 %v2378_v60, %v2376_v53  ;;  %v3932_v53 = vld [vmem:[#allocation42_spill] sm:$0xff]  ;;  %v3933_v60 = vld [vmem:[#allocation43_spill] sm:$0xff] }
 0x148   : > { %732 = vst [vmem:[#allocation2] sm:$0x3] %v731_v0  ;;  %v736_v50 = vpack.c.bf16 %v731_v0, %v731_v0  ;;  %v3934_v0 = vld [vmem:[#allocation44_spill] sm:$0xff] }
 0x14a   : > { %1112 = vmatmul.mubr.bf16.vlgmr.msra.gmra.mxu0 %v736_v50  ;;  %1153 = vmatmul.mubr.bf16.vlgmr.msra.gmra.mxu1 %v736_v50  ;;  %v3935_v50 = vld [vmem:[#allocation45_spill] sm:$0xff] }
 0x14b   : > { %1195 = vmatpush1.bf16.msra.mxu0 %v2730_v5  ;;  %1236 = vmatpush1.bf16.msra.mxu1 %v2732_v6 }
 0x14c   : > { %1196 = vmatprep.subr.bf16.mxu0 %v2735_v7  ;;  %1237 = vmatprep.subr.bf16.mxu1 %v2739_v8  ;;  %v3899_v7 = vld [vmem:[#allocation9_spill] sm:$0xff]  ;;  %v3900_v8 = vld [vmem:[#allocation10_spill] sm:$0xff] }
 0x14d   : > { %1226 = vmatprep.mubr.bf16.mxu0 %v3898_v36  ;;  %1267 = vmatprep.mubr.bf16.mxu1 %v3898_v36 }
 0x14f   : > { %1197 = vmatpush1.bf16.msra.mxu0 %v2741_v9  ;;  %1238 = vmatpush1.bf16.msra.mxu1 %v2744_v10  ;;  %v1192_v5 = vld [vmem:[#allocation2] sm:$0x3]  ;;  %v3901_v9 = vld [vmem:[#allocation11_spill] sm:$0xff]  ;;  %v3902_v10 = vld [vmem:[#allocation12_spill] sm:$0xff] }
 0x150   : > { %1198 = vmatprep.subr.bf16.mxu0 %v2747_v11  ;;  %1239 = vmatprep.subr.bf16.mxu1 %v2749_v12  ;;  %v1193_v6 = vpack.c.bf16 %v1192_v5, %v1192_v5  ;;  %v3903_v11 = vld [vmem:[#allocation13_spill] sm:$0xff]  ;;  %v3904_v12 = vld [vmem:[#allocation14_spill] sm:$0xff] }
 0x151   : > { %v3936_v5 = vld [vmem:[#allocation46_spill] sm:$0xff] }
 0x153   : > { %1199 = vmatpush1.bf16.msra.mxu0 %v2751_v13  ;;  %1240 = vmatpush1.bf16.msra.mxu1 %v2753_v14  ;;  %v3905_v13 = vld [vmem:[#allocation15_spill] sm:$0xff]  ;;  %v3906_v14 = vld [vmem:[#allocation16_spill] sm:$0xff] }
 0x154   : > { %1200 = vmatprep.subr.bf16.mxu0 %v2757_v15  ;;  %1241 = vmatprep.subr.bf16.mxu1 %v2761_v16  ;;  %v3907_v15 = vld [vmem:[#allocation17_spill] sm:$0xff]  ;;  %v3908_v16 = vld [vmem:[#allocation18_spill] sm:$0xff] }
 0x157   : > { %1201 = vmatpush1.bf16.msra.mxu0 %v2763_v17  ;;  %1242 = vmatpush1.bf16.msra.mxu1 %v2767_v18  ;;  %v3909_v17 = vld [vmem:[#allocation19_spill] sm:$0xff]  ;;  %v3910_v18 = vld [vmem:[#allocation20_spill] sm:$0xff] }
 0x158   : > { %1202 = vmatprep.subr.bf16.mxu0 %v2769_v19  ;;  %1243 = vmatprep.subr.bf16.mxu1 %v2773_v20  ;;  %v3911_v19 = vld [vmem:[#allocation21_spill] sm:$0xff]  ;;  %v3912_v20 = vld [vmem:[#allocation22_spill] sm:$0xff] }
 0x15b   : > { %1203 = vmatpush1.bf16.msra.mxu0 %v2775_v21  ;;  %1244 = vmatpush1.bf16.msra.mxu1 %v2777_v22  ;;  %v3913_v21 = vld [vmem:[#allocation23_spill] sm:$0xff]  ;;  %v3914_v22 = vld [vmem:[#allocation24_spill] sm:$0xff] }
 0x15c   : > { %1204 = vmatprep.subr.bf16.mxu0 %v2781_v23  ;;  %1245 = vmatprep.subr.bf16.mxu1 %v2785_v24  ;;  %v3915_v23 = vld [vmem:[#allocation25_spill] sm:$0xff]  ;;  %v3916_v24 = vld [vmem:[#allocation26_spill] sm:$0xff] }
 0x15f   : > { %1205 = vmatpush1.bf16.msra.mxu0 %v2789_v25  ;;  %1246 = vmatpush1.bf16.msra.mxu1 %v2791_v26 }
 0x160   : > { %1206 = vmatprep.subr.bf16.mxu0 %v2795_v27  ;;  %1247 = vmatprep.subr.bf16.mxu1 %v2797_v28 }
 0x163   : > { %1207 = vmatpush1.bf16.msra.mxu0 %v2799_v29  ;;  %1248 = vmatpush1.bf16.msra.mxu1 %v2801_v30 }
 0x164   : > { %1208 = vmatprep.subr.bf16.mxu0 %v2803_v31  ;;  %1249 = vmatprep.subr.bf16.mxu1 %v2805_v32 }
 0x167   : > { %1209 = vmatpush1.bf16.msra.mxu0 %v2811_v33  ;;  %1250 = vmatpush1.bf16.msra.mxu1 %v2813_v34 }
 0x168   : > { %1336 = vmatprep.subr.bf16.mxu0 %v2824_v37  ;;  %1377 = vmatprep.subr.bf16.mxu1 %v2829_v38 }
 0x16a   : > { %1227 = vmatmul.mubr.bf16.vlgmr.msra.gmra.mxu0 %v1193_v6  ;;  %1268 = vmatmul.mubr.bf16.vlgmr.msra.gmra.mxu1 %v1193_v6  ;;  %v3937_v6 = vld [vmem:[#allocation47_spill] sm:$0xff] }
 0x16b   : > { %1337 = vmatpush1.bf16.msra.mxu0 %v2834_v39  ;;  %1378 = vmatpush1.bf16.msra.mxu1 %v2839_v40 }
 0x16c   : > { %1338 = vmatprep.subr.bf16.mxu0 %v2848_v41  ;;  %1379 = vmatprep.subr.bf16.mxu1 %v2853_v42 }
 0x16f   : > { %1339 = vmatpush1.bf16.msra.mxu0 %v2858_v43  ;;  %1380 = vmatpush1.bf16.msra.mxu1 %v2863_v44 }
 0x170   : > { %1340 = vmatprep.subr.bf16.mxu0 %v2872_v45  ;;  %1381 = vmatprep.subr.bf16.mxu1 %v2877_v46 }
 0x173   : > { %1341 = vmatpush1.bf16.msra.mxu0 %v2882_v47  ;;  %1382 = vmatpush1.bf16.msra.mxu1 %v2887_v48 }
 0x174   : > { %1342 = vmatprep.subr.bf16.mxu0 %v2896_v49  ;;  %1383 = vmatprep.subr.bf16.mxu1 %v3899_v7 }
 0x177   : > { %1343 = vmatpush1.bf16.msra.mxu0 %v3900_v8  ;;  %1384 = vmatpush1.bf16.msra.mxu1 %v3901_v9 }
 0x178   : > { %1344 = vmatprep.subr.bf16.mxu0 %v3902_v10  ;;  %1385 = vmatprep.subr.bf16.mxu1 %v3903_v11 }
 0x17b   : > { %1345 = vmatpush1.bf16.msra.mxu0 %v3904_v12  ;;  %1386 = vmatpush1.bf16.msra.mxu1 %v3905_v13 }
 0x17c   : > { %1346 = vmatprep.subr.bf16.mxu0 %v3906_v14  ;;  %1387 = vmatprep.subr.bf16.mxu1 %v3907_v15 }
 0x17f   : > { %1347 = vmatpush1.bf16.msra.mxu0 %v3908_v16  ;;  %1388 = vmatpush1.bf16.msra.mxu1 %v3909_v17 }
 0x180   : > { %1348 = vmatprep.subr.bf16.mxu0 %v3910_v18  ;;  %1389 = vmatprep.subr.bf16.mxu1 %v3911_v19 }
 0x183   : > { %1349 = vmatpush1.bf16.msra.mxu0 %v3912_v20  ;;  %1390 = vmatpush1.bf16.msra.mxu1 %v3913_v21 }
 0x184   : > { %1350 = vmatprep.subr.bf16.mxu0 %v3914_v22  ;;  %1391 = vmatprep.subr.bf16.mxu1 %v3915_v23 }
 0x187   : > { %1351 = vmatpush1.bf16.msra.mxu0 %v3916_v24  ;;  %1392 = vmatpush1.bf16.msra.mxu1 %v3917_v4 }
 0x188   : > { %1352 = vmatprep.subr.bf16.mxu0 %v3918_v59  ;;  %1393 = vmatprep.subr.bf16.mxu1 %v3919_v58 }
 0x18b   : > { %1353 = vmatpush2.bf16.msra.mxu0 %v3920_v56  ;;  %1394 = vmatpush2.bf16.msra.mxu1 %v3921_v2 }
 0x18c   : > { %1354 = vmatprep.subr.bf16.mxu0 %v3922_v57  ;;  %1395 = vmatprep.subr.bf16.mxu1 %v3923_v54 }
 0x18f   : > { %1355 = vmatpush2.bf16.msra.mxu0 %v3924_v61  ;;  %1396 = vmatpush2.bf16.msra.mxu1 %v3925_v3 }
 0x190   : > { %1356 = vmatprep.subr.bf16.mxu0 %v3926_v55  ;;  %1397 = vmatprep.subr.bf16.mxu1 %v3927_v62  ;;  %v3938_v62 = vld [vmem:[#allocation48_spill] sm:$0xff] }
 0x193   : > { %1357 = vmatpush2.bf16.msra.mxu0 %v3928_v35  ;;  %1398 = vmatpush2.bf16.msra.mxu1 %v3929_v52  ;;  %v3939_v35 = vld [vmem:[#allocation49_spill] sm:$0xff]  ;;  %v3940_v52 = vld [vmem:[#allocation50_spill] sm:$0xff] }
 0x194   : > { %1358 = vmatprep.subr.bf16.mxu0 %v3930_v51  ;;  %1399 = vmatprep.subr.bf16.mxu1 %v3931_v1  ;;  %v3941_v51 = vld [vmem:[#allocation51_spill] sm:$0xff]  ;;  %v3942_v1 = vld [vmem:[#allocation52_spill] sm:$0xff] }
 0x197   : > { %1359 = vmatpush2.bf16.msra.mxu0 %v3932_v53  ;;  %1400 = vmatpush2.bf16.msra.mxu1 %v3933_v60  ;;  %v3943_v53 = vld [vmem:[#allocation53_spill] sm:$0xff]  ;;  %v3944_v60 = vld [vmem:[#allocation54_spill] sm:$0xff] }
 0x198   : > { %1360 = vmatprep.subr.bf16.mxu0 %v3934_v0  ;;  %1401 = vmatprep.subr.bf16.mxu1 %v3935_v50  ;;  %v3945_v0 = vld [vmem:[#allocation55_spill] sm:$0xff]  ;;  %v3946_v50 = vld [vmem:[#allocation56_spill] sm:$0xff] }
 0x19b   : > { %1361 = vmatpush2.bf16.msra.mxu0 %v3936_v5  ;;  %1402 = vmatpush2.bf16.msra.mxu1 %v3937_v6  ;;  %v3947_v5 = vld [vmem:[#allocation57_spill] sm:$0xff]  ;;  %v3948_v6 = vld [vmem:[#allocation58_spill] sm:$0xff] }
 0x19c   : > { %1362 = vmatprep.subr.bf16.mxu0 %v3938_v62  ;;  %1403 = vmatprep.subr.bf16.mxu1 %v3939_v35  ;;  %v3949_v62 = vld [vmem:[#allocation59_spill] sm:$0xff] }
 0x19d   : > { %v3950_v35 = vld [vmem:[#allocation7_spill] sm:$0xff] }
 0x19f   : > { %1363 = vmatpush2.bf16.msra.mxu0 %v3940_v52  ;;  %1404 = vmatpush2.bf16.msra.mxu1 %v3941_v51  ;;  %v3951_v52 = vld [vmem:[#allocation8_spill] sm:$0xff] }
 0x1a0   : > { %1364 = vmatprep.subr.bf16.mxu0 %v3942_v1  ;;  %1405 = vmatprep.subr.bf16.mxu1 %v3943_v53  ;;  %v3952_v51 = vld [vmem:[#allocation60_spill] sm:$0xff] }
 0x1a1   : > { %v741_v1 = vsub.s32 0, %v3952_v51  ;;  %v753_v61 = vsub.s32 3, %v3952_v51  ;;  %v749_v58 = vsub.s32 2, %v3952_v51 }
 0x1a3   : > { %1365 = vmatpush2.bf16.msra.mxu0 %v3944_v60  ;;  %1406 = vmatpush2.bf16.msra.mxu1 %v3945_v0  ;;  %v431_v60 = vld [vmem:[%s3720_s3] sm:$0xf]  ;;  %v745_v0 = vsub.s32 1, %v3952_v51  ;;  %v1162_v51 = vld [vmem:[#allocation3 + $0x2] sm:$0x3] }
 0x1a4   : > { %1366 = vmatprep.subr.bf16.mxu0 %v3946_v50  ;;  %1407 = vmatprep.subr.bf16.mxu1 %v3947_v5  ;;  %v3318_v53 = vrot.slane %v431_v60, %v741_v1 }
 0x1a5   : > { %v3320_v50 = vrot.slane %v431_v60, %v745_v0  ;;  %v3325_v0 = vrot.slane %v431_v60, %v753_v61 }
 0x1a6   : > { %3953 = vst [vmem:[#allocation9_spill] sm:$0xff] %v3318_v53 }
 0x1a7   : > { %1367 = vmatpush2.bf16.msra.mxu0 %v3948_v6  ;;  %1408 = vmatpush2.bf16.msra.mxu1 %v3949_v62  ;;  %3954 = vst [vmem:[#allocation10_spill] sm:$0xff] %v3320_v50  ;;  %3955 = vst [vmem:[#allocation11_spill] sm:$0xff] %v3325_v0 }
 0x1a8   : > { %1451 = vmatprep.subr.bf16.mxu0 %v3950_v35  ;;  %1492 = vmatprep.subr.bf16.mxu1 %v3951_v52 }
 0x20a   : > { %v1113_v5 = vpop.f32.mrf.mxu0  ;;  %v1154_v6 = vpop.f32.mrf.mxu1 }
 0x20b   : > { %v1114_v62 = vadd.f32 %v1113_v5, %v3318_v53  ;;  %v3329_v53 = vrot.slane %v431_v60, %v749_v58 }
 0x20c   : > { %v1115_v55 = vpop.f32.mrf.mxu0  ;;  %v1156_v35 = vpop.f32.mrf.mxu1 }
 0x20d   : > { %v2165_v3 = vmul.f32 -1.442695, %v1114_v62  ;;  %v1116_v52 = vadd.f32 %v1115_v55, %v3320_v50  ;;  %v1157_v5 = vadd.f32 %v1156_v35, %v3325_v0  ;;  %3956 = vst [vmem:[#allocation12_spill] sm:$0xff] %v3329_v53  ;;  %v1155_v55 = vadd.f32 %v1154_v6, %v3329_v53 }
 0x20e   : > { %v1117_v54 = vpop.f32.mrf.mxu0  ;;  %v1158_v57 = vpop.f32.mrf.mxu1 }
 0x20f   : > { %2379 = vpow2.f32 %v2165_v3  ;;  %v2166_v2 = vmul.f32 -1.442695, %v1116_v52  ;;  %v2167_v62 = vmul.f32 -1.442695, %v1157_v5 }
 0x210   : > { %v1118_v56 = vpop.f32.mrf.mxu0  ;;  %v1159_v1 = vpop.f32.mrf.mxu1 }
 0x211   : > { %2381 = vpow2.f32 %v2166_v2 }
 0x212   : > { %2383 = vpow2.f32 %v2167_v62 }
 0x21c   : > { %v2380_v59 = vpop.eup %2379 }
 0x21d   : > { %v1166_v50 = vadd.f32 1.0, %v2380_v59 }
 0x21e   : > { %v2382_v54 = vpop.eup %2381 }
 0x21f   : > { %2385 = vrcp.f32 %v1166_v50  ;;  %v1172_v57 = vadd.f32 1.0, %v2382_v54  ;;  %v2384_v61 = vpop.eup %2383 }
 0x220   : > { %2387 = vtanh.f32 %v1155_v55  ;;  %v1179_v6 = vadd.f32 1.0, %v2384_v61 }
 0x221   : > { %2389 = vrcp.f32 %v1172_v57  ;;  %v2168_v57 = vld [vmem:[%s2708_s20 + $0x8] sm:$0xff] }
 0x222   : > { %2391 = vrcp.f32 %v1179_v6 }
 0x22a   : > { %v1228_v56 = vpop.f32.mrf.mxu0  ;;  %v1269_v2 = vpop.f32.mrf.mxu1 }
 0x22c   : > { %v2386_v3 = vpop.eup %2385  ;;  %v1230_v35 = vpop.f32.mrf.mxu0 }
 0x22d   : > { %v1271_v58 = vpop.f32.mrf.mxu1  ;;  %v2388_v60 = vpop.eup %2387  ;;  %v1280_v52 = vcombine.low %v1228_v56, %v1230_v35 }
 0x22e   : > { %v1281_v1 = vcombine.low %v1269_v2, %v1271_v58  ;;  %v2390_v5 = vpop.eup %2389  ;;  %v1232_v59 = vpop.f32.mrf.mxu0  ;;  %v1183_v62 = vmul.f32 %v2388_v60, %v2386_v3 }
 0x22f   : > { %v1273_v53 = vpop.f32.mrf.mxu1  ;;  %v1182_v50 = vmul.f32 %v2390_v5, %v1162_v51  ;;  %v1288_v55 = vrot.slane %v1280_v52, %v3210_v63  ;;  %v2392_v51 = vpop.eup %2391 }
 0x230   : > { %v1295_v54 = vrot.slane %v1281_v1, %v3210_v63  ;;  %v1233_v0 = vpop.f32.mrf.mxu0 }
 0x231   : > { %v1274_v4 = vpop.f32.mrf.mxu1  ;;  %v1184_v24 = vadd.f32 %v1183_v62, %v1182_v50 }
 0x232   : > { %v1296_v23 = vcombine.low %v1288_v55, %v1295_v54  ;;  %v1299_v54 = vld [vmem:[#allocation3] sm:$0x3] }
 0x233   : > { %2393 = vtanh.f32 %v1184_v24  ;;  %1188 = vst [vmem:[#allocation3 + $0x2] sm:$0x3] %v1184_v24 }
 0x234   : > { %v1298_v56 = vadd.f32 %v2168_v57, %v1296_v23 }
 0x236   : > { %v2169_v2 = vmul.f32 -1.442695, %v1298_v56  ;;  %v1307_v61 = vrot.slane %v1298_v56, 2  ;;  %v1318_v3 = vrot.slane %v1298_v56, 6  ;;  %v1315_v0 = vrot.slane %v1298_v56, 4 }
 0x238   : > { %2395 = vpow2.f32 %v2169_v2  ;;  %v2170_v53 = vmul.f32 -1.442695, %v1307_v61  ;;  %v2171_v60 = vmul.f32 -1.442695, %v1318_v3 }
 0x23a   : > { %2397 = vpow2.f32 %v2170_v53 }
 0x23b   : > { %2399 = vpow2.f32 %v2171_v60  ;;  %v3342_v60 = vld [vmem:[#allocation4 + $0xc4] ss:$16 sps:$4 sm:$0xff]  }
 0x240   : > { %v2394_v35 = vpop.eup %2393 }
 0x241   : > { %v1186_v58 = vmul.f32 %v2394_v35, %v2392_v51  ;;  %v3336_v35 = vld [vmem:[#allocation4 + $0xe0] ss:$16 sps:$4 sm:$0xff]  }
 0x243   : > { %1187 = vst [vmem:[#allocation2 + $0x2] sm:$0x3] %v1186_v58  ;;  %1189 = vst [vmem:[%s2713_s23] sm:$0x3] %v1186_v58  ;;  %v3339_v58 = vld [vmem:[#allocation4 + $0xe8] ss:$16 sps:$4 sm:$0xff]  }
 0x245   : > { %v2396_v4 = vpop.eup %2395 }
 0x246   : > { %v1303_v52 = vadd.f32 1.0, %v2396_v4  ;;  %v3345_v4 = vld [vmem:[#allocation4 + $0xcc] ss:$16 sps:$4 sm:$0xff]  }
 0x247   : > { %v2398_v1 = vpop.eup %2397 }
 0x248   : > { %2401 = vrcp.f32 %v1303_v52  ;;  %v1312_v24 = vadd.f32 1.0, %v2398_v1  ;;  %v2400_v6 = vpop.eup %2399  ;;  %v3353_v52 = vld [vmem:[#allocation4 + $0xc8] ss:$16 sps:$4 sm:$0xff]   ;;  %v3356_v1 = vld [vmem:[#allocation4 + $0xa4] ss:$16 sps:$4 sm:$0xff]  }
 0x249   : > { %2403 = vtanh.f32 %v1315_v0  ;;  %v1323_v55 = vadd.f32 1.0, %v2400_v6  ;;  %v3350_v0 = vld [vmem:[#allocation4 + $0xc0] ss:$16 sps:$4 sm:$0xff]   ;;  %v3368_v6 = vld [vmem:[#allocation4 + $0x84] ss:$16 sps:$4 sm:$0xff]  }
 0x24a   : > { %2405 = vrcp.f32 %v1312_v24  ;;  %v1333_v23 = vld [vmem:[#allocation2 + $0x2] sm:$0x3]  ;;  %v3359_v24 = vld [vmem:[#allocation4 + $0xac] ss:$16 sps:$4 sm:$0xff]  }
 0x24b   : > { %v1335_v5 = vpack.c.bf16 %v1333_v23, %v1333_v23  ;;  %2407 = vrcp.f32 %v1323_v55  ;;  %v3362_v23 = vld [vmem:[#allocation4 + $0xa0] ss:$16 sps:$4 sm:$0xff]   ;;  %v3380_v55 = vld [vmem:[#allocation4 + $0x64] ss:$16 sps:$4 sm:$0xff]  }
 0x24d   : > { %1368 = vmatprep.mubr.bf16.mxu0 %v1335_v5  ;;  %1409 = vmatprep.mubr.bf16.mxu1 %v1335_v5  ;;  %v3365_v5 = vld [vmem:[#allocation4 + $0xa8] ss:$16 sps:$4 sm:$0xff]  }
 0x255   : > { %v2402_v59 = vpop.eup %2401 }
 0x256   : > { %v2404_v62 = vpop.eup %2403 }
 0x257   : > { %v2406_v50 = vpop.eup %2405  ;;  %v1327_v2 = vmul.f32 %v2404_v62, %v2402_v59  ;;  %v3371_v59 = vld [vmem:[#allocation4 + $0x8c] ss:$16 sps:$4 sm:$0xff]   ;;  %v3374_v62 = vld [vmem:[#allocation4 + $0x80] ss:$16 sps:$4 sm:$0xff]  }
 0x258   : > { %v1326_v57 = vmul.f32 %v2406_v50, %v1299_v54  ;;  %v2408_v61 = vpop.eup %2407  ;;  %v3377_v50 = vld [vmem:[#allocation4 + $0x88] ss:$16 sps:$4 sm:$0xff]   ;;  %v3383_v54 = vld [vmem:[#allocation4 + $0x6c] ss:$16 sps:$4 sm:$0xff]  }
 0x25a   : > { %v1328_v56 = vadd.f32 %v1327_v2, %v1326_v57  ;;  %v3386_v57 = vld [vmem:[#allocation4 + $0x60] ss:$16 sps:$4 sm:$0xff]   ;;  %v3389_v2 = vld [vmem:[#allocation4 + $0x68] ss:$16 sps:$4 sm:$0xff]  }
 0x25c   : > { %2409 = vtanh.f32 %v1328_v56  ;;  %1332 = vst [vmem:[#allocation3] sm:$0x3] %v1328_v56  ;;  %v3392_v56 = vld [vmem:[#allocation4 + $0x44] ss:$16 sps:$4 sm:$0xff]  }
 0x269   : > { %v2410_v53 = vpop.eup %2409 }
 0x26a   : > { %v1330_v3 = vmul.f32 %v2410_v53, %v2408_v61  ;;  %v3395_v61 = vld [vmem:[#allocation4 + $0x4c] ss:$16 sps:$4 sm:$0xff]  }
 0x26c   : > { %1331 = vst [vmem:[#allocation2] sm:$0x3] %v1330_v3  ;;  %v1334_v51 = vpack.c.bf16 %v1330_v3, %v1330_v3 }
 0x26e   : > { %1369 = vmatmul.mubr.bf16.vlgmr.msra.gmra.mxu0 %v1334_v51  ;;  %1410 = vmatmul.mubr.bf16.vlgmr.msra.gmra.mxu1 %v1334_v51  ;;  %v3992_v51 = vld [vmem:[#allocation9_spill] sm:$0xff] }
 0x26f   : > { %1452 = vmatpush1.bf16.msra.mxu0 %v3336_v35  ;;  %1493 = vmatpush1.bf16.msra.mxu1 %v3339_v58 }
 0x270   : > { %1453 = vmatprep.subr.bf16.mxu0 %v3342_v60  ;;  %1494 = vmatprep.subr.bf16.mxu1 %v3345_v4 }
 0x271   : > { %1483 = vmatprep.mubr.bf16.mxu0 %v3898_v36  ;;  %1524 = vmatprep.mubr.bf16.mxu1 %v3898_v36 }
 0x273   : > { %1454 = vmatpush1.bf16.msra.mxu0 %v3350_v0  ;;  %1495 = vmatpush1.bf16.msra.mxu1 %v3353_v52  ;;  %v1449_v53 = vld [vmem:[#allocation2] sm:$0x3] }
 0x274   : > { %1455 = vmatprep.subr.bf16.mxu0 %v3356_v1  ;;  %1496 = vmatprep.subr.bf16.mxu1 %v3359_v24 }
 0x277   : > { %1456 = vmatpush1.bf16.msra.mxu0 %v3362_v23  ;;  %1497 = vmatpush1.bf16.msra.mxu1 %v3365_v5 }
 0x278   : > { %1457 = vmatprep.subr.bf16.mxu0 %v3368_v6  ;;  %1498 = vmatprep.subr.bf16.mxu1 %v3371_v59 }
 0x27b   : > { %1458 = vmatpush1.bf16.msra.mxu0 %v3374_v62  ;;  %1499 = vmatpush1.bf16.msra.mxu1 %v3377_v50 }
 0x27c   : > { %1459 = vmatprep.subr.bf16.mxu0 %v3380_v55  ;;  %1500 = vmatprep.subr.bf16.mxu1 %v3383_v54 }
 0x27f   : > { %1460 = vmatpush1.bf16.msra.mxu0 %v3386_v57  ;;  %1501 = vmatpush1.bf16.msra.mxu1 %v3389_v2 }
 0x280   : > { %1461 = vmatprep.subr.bf16.mxu0 %v3392_v56  ;;  %1502 = vmatprep.subr.bf16.mxu1 %v3395_v61 }
 0x283   : > { %1462 = vmatpush1.bf16.msra.mxu0 %v2789_v25  ;;  %1503 = vmatpush1.bf16.msra.mxu1 %v2791_v26  ;;  %v1450_v25 = vpack.c.bf16 %v1449_v53, %v1449_v53  ;;  %v3957_v26 = vld [vmem:[#allocation25_spill] sm:$0xff] }
 0x284   : > { %1463 = vmatprep.subr.bf16.mxu0 %v2795_v27  ;;  %1504 = vmatprep.subr.bf16.mxu1 %v2797_v28  ;;  %v3958_v27 = vld [vmem:[#allocation26_spill] sm:$0xff]  ;;  %v3959_v28 = vld [vmem:[#allocation27_spill] sm:$0xff] }
 0x287   : > { %1464 = vmatpush1.bf16.msra.mxu0 %v2799_v29  ;;  %1505 = vmatpush1.bf16.msra.mxu1 %v2801_v30  ;;  %v3960_v29 = vld [vmem:[#allocation28_spill] sm:$0xff]  ;;  %v3961_v30 = vld [vmem:[#allocation29_spill] sm:$0xff] }
 0x288   : > { %1465 = vmatprep.subr.bf16.mxu0 %v2803_v31  ;;  %1506 = vmatprep.subr.bf16.mxu1 %v2805_v32  ;;  %v3962_v31 = vld [vmem:[#allocation30_spill] sm:$0xff]  ;;  %v3963_v32 = vld [vmem:[#allocation31_spill] sm:$0xff] }
 0x28b   : > { %1466 = vmatpush1.bf16.msra.mxu0 %v2811_v33  ;;  %1507 = vmatpush1.bf16.msra.mxu1 %v2813_v34  ;;  %v3964_v33 = vld [vmem:[#allocation32_spill] sm:$0xff]  ;;  %v3965_v34 = vld [vmem:[#allocation33_spill] sm:$0xff] }
 0x28c   : > { %1593 = vmatprep.subr.bf16.mxu0 %v2824_v37  ;;  %1634 = vmatprep.subr.bf16.mxu1 %v2829_v38  ;;  %v3966_v37 = vld [vmem:[#allocation34_spill] sm:$0xff]  ;;  %v3967_v38 = vld [vmem:[#allocation35_spill] sm:$0xff] }
 0x28e   : > { %1484 = vmatmul.mubr.bf16.vlgmr.msra.gmra.mxu0 %v1450_v25  ;;  %1525 = vmatmul.mubr.bf16.vlgmr.msra.gmra.mxu1 %v1450_v25 }
 0x28f   : > { %1594 = vmatpush1.bf16.msra.mxu0 %v2834_v39  ;;  %1635 = vmatpush1.bf16.msra.mxu1 %v2839_v40  ;;  %v3968_v39 = vld [vmem:[#allocation36_spill] sm:$0xff]  ;;  %v3969_v40 = vld [vmem:[#allocation37_spill] sm:$0xff] }
 0x290   : > { %1595 = vmatprep.subr.bf16.mxu0 %v2848_v41  ;;  %1636 = vmatprep.subr.bf16.mxu1 %v2853_v42  ;;  %v3970_v41 = vld [vmem:[#allocation38_spill] sm:$0xff]  ;;  %v3971_v42 = vld [vmem:[#allocation39_spill] sm:$0xff] }
 0x293   : > { %1596 = vmatpush1.bf16.msra.mxu0 %v2858_v43  ;;  %1637 = vmatpush1.bf16.msra.mxu1 %v2863_v44  ;;  %v3972_v43 = vld [vmem:[#allocation40_spill] sm:$0xff]  ;;  %v3973_v44 = vld [vmem:[#allocation41_spill] sm:$0xff] }
 0x294   : > { %1597 = vmatprep.subr.bf16.mxu0 %v2872_v45  ;;  %1638 = vmatprep.subr.bf16.mxu1 %v2877_v46  ;;  %v3974_v45 = vld [vmem:[#allocation42_spill] sm:$0xff]  ;;  %v3975_v46 = vld [vmem:[#allocation43_spill] sm:$0xff] }
 0x297   : > { %1598 = vmatpush1.bf16.msra.mxu0 %v2882_v47  ;;  %1639 = vmatpush1.bf16.msra.mxu1 %v2887_v48  ;;  %v3976_v47 = vld [vmem:[#allocation44_spill] sm:$0xff]  ;;  %v3977_v48 = vld [vmem:[#allocation45_spill] sm:$0xff] }
 0x298   : > { %1599 = vmatprep.subr.bf16.mxu0 %v2896_v49  ;;  %1640 = vmatprep.subr.bf16.mxu1 %v3899_v7  ;;  %v3978_v49 = vld [vmem:[#allocation46_spill] sm:$0xff]  ;;  %v3979_v7 = vld [vmem:[#allocation47_spill] sm:$0xff] }
 0x29b   : > { %1600 = vmatpush1.bf16.msra.mxu0 %v3900_v8  ;;  %1641 = vmatpush1.bf16.msra.mxu1 %v3901_v9  ;;  %v3980_v8 = vld [vmem:[#allocation48_spill] sm:$0xff]  ;;  %v3981_v9 = vld [vmem:[#allocation49_spill] sm:$0xff] }
 0x29c   : > { %1601 = vmatprep.subr.bf16.mxu0 %v3902_v10  ;;  %1642 = vmatprep.subr.bf16.mxu1 %v3903_v11  ;;  %v3982_v10 = vld [vmem:[#allocation50_spill] sm:$0xff]  ;;  %v3983_v11 = vld [vmem:[#allocation51_spill] sm:$0xff] }
 0x29f   : > { %1602 = vmatpush1.bf16.msra.mxu0 %v3904_v12  ;;  %1643 = vmatpush1.bf16.msra.mxu1 %v3905_v13  ;;  %v3984_v12 = vld [vmem:[#allocation52_spill] sm:$0xff]  ;;  %v3985_v13 = vld [vmem:[#allocation53_spill] sm:$0xff] }
 0x2a0   : > { %1603 = vmatprep.subr.bf16.mxu0 %v3906_v14  ;;  %1644 = vmatprep.subr.bf16.mxu1 %v3907_v15  ;;  %v3986_v14 = vld [vmem:[#allocation54_spill] sm:$0xff]  ;;  %v3987_v15 = vld [vmem:[#allocation55_spill] sm:$0xff] }
 0x2a3   : > { %1604 = vmatpush1.bf16.msra.mxu0 %v3908_v16  ;;  %1645 = vmatpush1.bf16.msra.mxu1 %v3909_v17  ;;  %v3988_v16 = vld [vmem:[#allocation56_spill] sm:$0xff]  ;;  %v3989_v17 = vld [vmem:[#allocation57_spill] sm:$0xff] }
 0x2a4   : > { %1605 = vmatprep.subr.bf16.mxu0 %v3910_v18  ;;  %1646 = vmatprep.subr.bf16.mxu1 %v3911_v19  ;;  %v3990_v18 = vld [vmem:[#allocation58_spill] sm:$0xff]  ;;  %v3991_v19 = vld [vmem:[#allocation59_spill] sm:$0xff] }
 0x2a7   : > { %1606 = vmatpush1.bf16.msra.mxu0 %v3912_v20  ;;  %1647 = vmatpush1.bf16.msra.mxu1 %v3913_v21  ;;  %v2511_v20 = vld [vmem:[#allocation4 + $0xe4] ss:$16 sps:$4 sm:$0xff]   ;;  %v2512_v21 = vld [vmem:[#allocation4 + $0xec] ss:$16 sps:$4 sm:$0xff]  }
 0x2a8   : > { %1607 = vmatprep.subr.bf16.mxu0 %v3914_v22  ;;  %1648 = vmatprep.subr.bf16.mxu1 %v3957_v26 }
 0x2ab   : > { %1608 = vmatpush1.bf16.msra.mxu0 %v3958_v27  ;;  %1649 = vmatpush1.bf16.msra.mxu1 %v3959_v28  ;;  %v3993_v28 = vld [vmem:[#allocation10_spill] sm:$0xff] }
 0x2ac   : > { %1609 = vmatprep.subr.bf16.mxu0 %v3960_v29  ;;  %1650 = vmatprep.subr.bf16.mxu1 %v3961_v30 }
 0x2af   : > { %1610 = vmatpush2.bf16.msra.mxu0 %v3962_v31  ;;  %1651 = vmatpush2.bf16.msra.mxu1 %v3963_v32 }
 0x2b0   : > { %1611 = vmatprep.subr.bf16.mxu0 %v3964_v33  ;;  %1652 = vmatprep.subr.bf16.mxu1 %v3965_v34 }
 0x2b3   : > { %1612 = vmatpush2.bf16.msra.mxu0 %v3966_v37  ;;  %1653 = vmatpush2.bf16.msra.mxu1 %v3967_v38  ;;  %v3994_v37 = vld [vmem:[#allocation11_spill] sm:$0xff] }
 0x2b4   : > { %1613 = vmatprep.subr.bf16.mxu0 %v3968_v39  ;;  %1654 = vmatprep.subr.bf16.mxu1 %v3969_v40 }
 0x2b7   : > { %1614 = vmatpush2.bf16.msra.mxu0 %v3970_v41  ;;  %1655 = vmatpush2.bf16.msra.mxu1 %v3971_v42  ;;  %v3995_v41 = vld [vmem:[#allocation12_spill] sm:$0xff] }
 0x2b8   : > { %1615 = vmatprep.subr.bf16.mxu0 %v3972_v43  ;;  %1656 = vmatprep.subr.bf16.mxu1 %v3973_v44 }
 0x2bb   : > { %1616 = vmatpush2.bf16.msra.mxu0 %v3974_v45  ;;  %1657 = vmatpush2.bf16.msra.mxu1 %v3975_v46 }
 0x2bc   : > { %1617 = vmatprep.subr.bf16.mxu0 %v3976_v47  ;;  %1658 = vmatprep.subr.bf16.mxu1 %v3977_v48 }
 0x2bf   : > { %1618 = vmatpush2.bf16.msra.mxu0 %v3978_v49  ;;  %1659 = vmatpush2.bf16.msra.mxu1 %v3979_v7 }
 0x2c0   : > { %1619 = vmatprep.subr.bf16.mxu0 %v3980_v8  ;;  %1660 = vmatprep.subr.bf16.mxu1 %v3981_v9 }
 0x2c3   : > { %1620 = vmatpush2.bf16.msra.mxu0 %v3982_v10  ;;  %1661 = vmatpush2.bf16.msra.mxu1 %v3983_v11 }
 0x2c4   : > { %1621 = vmatprep.subr.bf16.mxu0 %v3984_v12  ;;  %1662 = vmatprep.subr.bf16.mxu1 %v3985_v13  ;;  %v1418_v13 = vld [vmem:[#allocation3 + $0x2] sm:$0x3] }
 0x2c7   : > { %1622 = vmatpush2.bf16.msra.mxu0 %v3986_v14  ;;  %1663 = vmatpush2.bf16.msra.mxu1 %v3987_v15 }
 0x2c8   : > { %1623 = vmatprep.subr.bf16.mxu0 %v3988_v16  ;;  %1664 = vmatprep.subr.bf16.mxu1 %v3989_v17 }
 0x2cb   : > { %1624 = vmatpush2.bf16.msra.mxu0 %v3990_v18  ;;  %1665 = vmatpush2.bf16.msra.mxu1 %v3991_v19 }
 0x2cc   : > { %1708 = vmatprep.subr.bf16.mxu0 %v2511_v20  ;;  %1749 = vmatprep.subr.bf16.mxu1 %v2512_v21  ;;  %v2176_v21 = vld [vmem:[%s2708_s20 + $0x10] sm:$0xff] }
 0x32e   : > { %v1370_v22 = vpop.f32.mrf.mxu0  ;;  %v1411_v3 = vpop.f32.mrf.mxu1 }
 0x32f   : > { %v1371_v53 = vadd.f32 %v1370_v22, %v3992_v51  ;;  %v1412_v42 = vadd.f32 %v1411_v3, %v3995_v41 }
 0x330   : > { %v1372_v25 = vpop.f32.mrf.mxu0  ;;  %v1413_v26 = vpop.f32.mrf.mxu1 }
 0x331   : > { %v2172_v27 = vmul.f32 -1.442695, %v1371_v53  ;;  %v1373_v29 = vadd.f32 %v1372_v25, %v3993_v28  ;;  %v1414_v38 = vadd.f32 %v1413_v26, %v3994_v37 }
 0x332   : > { %v1374_v30 = vpop.f32.mrf.mxu0  ;;  %v1415_v31 = vpop.f32.mrf.mxu1 }
 0x333   : > { %2411 = vpow2.f32 %v2172_v27  ;;  %v2173_v32 = vmul.f32 -1.442695, %v1373_v29  ;;  %v2174_v39 = vmul.f32 -1.442695, %v1414_v38 }
 0x334   : > { %v1375_v33 = vpop.f32.mrf.mxu0  ;;  %v1416_v34 = vpop.f32.mrf.mxu1 }
 0x335   : > { %2413 = vpow2.f32 %v2173_v32 }
 0x336   : > { %2415 = vpow2.f32 %v2174_v39 }
 0x340   : > { %v2412_v40 = vpop.eup %2411 }
 0x341   : > { %v1422_v43 = vadd.f32 1.0, %v2412_v40 }
 0x342   : > { %v2414_v44 = vpop.eup %2413 }
 0x343   : > { %2417 = vrcp.f32 %v1422_v43  ;;  %v1428_v45 = vadd.f32 1.0, %v2414_v44  ;;  %v2416_v48 = vpop.eup %2415 }
 0x344   : > { %2419 = vtanh.f32 %v1412_v42  ;;  %v1435_v14 = vadd.f32 1.0, %v2416_v48 }
 0x345   : > { %2421 = vrcp.f32 %v1428_v45 }
 0x346   : > { %2423 = vrcp.f32 %v1435_v14 }
 0x34e   : > { %v1485_v46 = vpop.f32.mrf.mxu0  ;;  %v1526_v47 = vpop.f32.mrf.mxu1 }
 0x350   : > { %v2418_v49 = vpop.eup %2417  ;;  %v1487_v7 = vpop.f32.mrf.mxu0 }
 0x351   : > { %v1528_v8 = vpop.f32.mrf.mxu1  ;;  %v2420_v9 = vpop.eup %2419  ;;  %v1537_v10 = vcombine.low %v1485_v46, %v1487_v7 }
 0x352   : > { %v1538_v11 = vcombine.low %v1526_v47, %v1528_v8  ;;  %v2422_v12 = vpop.eup %2421  ;;  %v1489_v15 = vpop.f32.mrf.mxu0  ;;  %v1439_v17 = vmul.f32 %v2420_v9, %v2418_v49  ;;  %v1556_v9 = vld [vmem:[#allocation3] sm:$0x3] }
 0x353   : > { %v1530_v16 = vpop.f32.mrf.mxu1  ;;  %v1438_v18 = vmul.f32 %v2422_v12, %v1418_v13  ;;  %v1545_v19 = vrot.slane %v1537_v10, %v3210_v63  ;;  %v2424_v32 = vpop.eup %2423 }
 0x354   : > { %v1552_v20 = vrot.slane %v1538_v11, %v3210_v63  ;;  %v1490_v22 = vpop.f32.mrf.mxu0 }
 0x355   : > { %v1531_v3 = vpop.f32.mrf.mxu1  ;;  %v1440_v53 = vadd.f32 %v1439_v17, %v1438_v18  ;;  %v2532_v17 = vld [vmem:[%s3719_s2 + $0xac] ss:$16 sps:$4 sm:$0xff]   ;;  %v2533_v18 = vld [vmem:[%s3719_s2 + $0xa0] ss:$16 sps:$4 sm:$0xff]  }
 0x356   : > { %v1553_v25 = vcombine.low %v1545_v19, %v1552_v20  ;;  %v2534_v19 = vld [vmem:[%s3719_s2 + $0xa8] ss:$16 sps:$4 sm:$0xff]   ;;  %v2535_v20 = vld [vmem:[%s3719_s2 + $0x84] ss:$16 sps:$4 sm:$0xff]   ;;  %v2537_v22 = vld [vmem:[%s3719_s2 + $0x80] ss:$16 sps:$4 sm:$0xff]  }
 0x357   : > { %2425 = vtanh.f32 %v1440_v53  ;;  %1444 = vst [vmem:[#allocation3 + $0x2] sm:$0x3] %v1440_v53  ;;  %v2538_v3 = vld [vmem:[%s3719_s2 + $0x88] ss:$16 sps:$4 sm:$0xff]   ;;  %v2539_v53 = vld [vmem:[%s3719_s2 + $0x64] ss:$16 sps:$4 sm:$0xff]  }
 0x358   : > { %v1555_v26 = vadd.f32 %v2176_v21, %v1553_v25  ;;  %v2536_v21 = vld [vmem:[%s3719_s2 + $0x8c] ss:$16 sps:$4 sm:$0xff]  }
 0x359   : > { %v2540_v25 = vld [vmem:[%s3719_s2 + $0x6c] ss:$16 sps:$4 sm:$0xff]  }
 0x35a   : > { %v2177_v27 = vmul.f32 -1.442695, %v1555_v26  ;;  %v1564_v29 = vrot.slane %v1555_v26, 2  ;;  %v1575_v31 = vrot.slane %v1555_v26, 6  ;;  %v1572_v40 = vrot.slane %v1555_v26, 4 }
 0x35b   : > { %v2541_v26 = vld [vmem:[%s3719_s2 + $0x60] ss:$16 sps:$4 sm:$0xff]  }
 0x35c   : > { %2427 = vpow2.f32 %v2177_v27  ;;  %v2178_v30 = vmul.f32 -1.442695, %v1564_v29  ;;  %v2179_v38 = vmul.f32 -1.442695, %v1575_v31  ;;  %v2542_v27 = vld [vmem:[%s3719_s2 + $0x68] ss:$16 sps:$4 sm:$0xff]  }
 0x35d   : > { %v2543_v29 = vld [vmem:[%s3719_s2 + $0x44] ss:$16 sps:$4 sm:$0xff]   ;;  %v2545_v31 = vld [vmem:[%s3719_s2 + $0x40] ss:$16 sps:$4 sm:$0xff]  }
 0x35e   : > { %2429 = vpow2.f32 %v2178_v30  ;;  %v2544_v30 = vld [vmem:[%s3719_s2 + $0x4c] ss:$16 sps:$4 sm:$0xff]  }
 0x35f   : > { %2431 = vpow2.f32 %v2179_v38  ;;  %v2549_v38 = vld [vmem:[%s3719_s2 + $0x20] ss:$16 sps:$4 sm:$0xff]  }
 0x364   : > { %v2426_v33 = vpop.eup %2425 }
 0x365   : > { %v1442_v34 = vmul.f32 %v2426_v33, %v2424_v32  ;;  %v2546_v32 = vld [vmem:[%s3719_s2 + $0x48] ss:$16 sps:$4 sm:$0xff]   ;;  %v2547_v33 = vld [vmem:[%s3719_s2 + $0x24] ss:$16 sps:$4 sm:$0xff]  }
 0x367   : > { %1443 = vst [vmem:[#allocation2 + $0x2] sm:$0x3] %v1442_v34  ;;  %2175 = vst [vmem:[%s2713_s23 + $0x2] sm:$0x3] %v1442_v34  ;;  %v2548_v34 = vld [vmem:[%s3719_s2 + $0x2c] ss:$16 sps:$4 sm:$0xff]  }
 0x369   : > { %v2428_v39 = vpop.eup %2427 }
 0x36a   : > { %v1560_v42 = vadd.f32 1.0, %v2428_v39  ;;  %v2550_v39 = vld [vmem:[%s3719_s2 + $0x28] ss:$16 sps:$4 sm:$0xff]  }
 0x36b   : > { %v2430_v43 = vpop.eup %2429 }
 0x36c   : > { %2433 = vrcp.f32 %v1560_v42  ;;  %v1569_v44 = vadd.f32 1.0, %v2430_v43  ;;  %v2432_v47 = vpop.eup %2431  ;;  %v2552_v42 = vld [vmem:[%s3719_s2 + $0xc] ss:$16 sps:$4 sm:$0xff]   ;;  %v2553_v43 = vld [vmem:[%s3719_s2] ss:$16 sps:$4 sm:$0xff]  }
 0x36d   : > { %2435 = vtanh.f32 %v1572_v40  ;;  %v1580_v8 = vadd.f32 1.0, %v2432_v47  ;;  %v2551_v40 = vld [vmem:[%s3719_s2 + $0x4] ss:$16 sps:$4 sm:$0xff]   ;;  %v2557_v47 = vld [vmem:[%s3719_s2 + $0x1e0] ss:$16 sps:$4 sm:$0xff]  }
 0x36e   : > { %2437 = vrcp.f32 %v1569_v44  ;;  %v1590_v45 = vld [vmem:[#allocation2 + $0x2] sm:$0x3]  ;;  %v2554_v44 = vld [vmem:[%s3719_s2 + $0x8] ss:$16 sps:$4 sm:$0xff]  }
 0x36f   : > { %v1592_v46 = vpack.c.bf16 %v1590_v45, %v1590_v45  ;;  %2439 = vrcp.f32 %v1580_v8  ;;  %v2555_v45 = vld [vmem:[%s3719_s2 + $0x1e4] ss:$16 sps:$4 sm:$0xff]   ;;  %v2561_v8 = vld [vmem:[%s3719_s2 + $0x1c0] ss:$16 sps:$4 sm:$0xff]  }
 0x371   : > { %1625 = vmatprep.mubr.bf16.mxu0 %v1592_v46  ;;  %1666 = vmatprep.mubr.bf16.mxu1 %v1592_v46  ;;  %v2556_v46 = vld [vmem:[%s3719_s2 + $0x1ec] ss:$16 sps:$4 sm:$0xff]  }
 0x379   : > { %v2434_v48 = vpop.eup %2433 }
 0x37a   : > { %v2436_v49 = vpop.eup %2435 }
 0x37b   : > { %v2438_v7 = vpop.eup %2437  ;;  %v1584_v11 = vmul.f32 %v2436_v49, %v2434_v48  ;;  %v2558_v48 = vld [vmem:[%s3719_s2 + $0x1e8] ss:$16 sps:$4 sm:$0xff]   ;;  %v2559_v49 = vld [vmem:[%s3719_s2 + $0x1c4] ss:$16 sps:$4 sm:$0xff]  }
 0x37c   : > { %v1583_v10 = vmul.f32 %v2438_v7, %v1556_v9  ;;  %v2440_v13 = vpop.eup %2439  ;;  %v2560_v7 = vld [vmem:[%s3719_s2 + $0x1cc] ss:$16 sps:$4 sm:$0xff]   ;;  %v2562_v9 = vld [vmem:[%s3719_s2 + $0x1c8] ss:$16 sps:$4 sm:$0xff]  }
 0x37e   : > { %v1585_v12 = vadd.f32 %v1584_v11, %v1583_v10  ;;  %v2563_v10 = vld [vmem:[%s3719_s2 + $0x1a4] ss:$16 sps:$4 sm:$0xff]   ;;  %v2564_v11 = vld [vmem:[%s3719_s2 + $0x1ac] ss:$16 sps:$4 sm:$0xff]  }
 0x380   : > { %2441 = vtanh.f32 %v1585_v12  ;;  %1589 = vst [vmem:[#allocation3] sm:$0x3] %v1585_v12  ;;  %v2565_v12 = vld [vmem:[%s3719_s2 + $0x1a0] ss:$16 sps:$4 sm:$0xff]  }
 0x38d   : > { %v2442_v14 = vpop.eup %2441 }
 0x38e   : > { %v1587_v15 = vmul.f32 %v2442_v14, %v2440_v13  ;;  %v2566_v13 = vld [vmem:[%s3719_s2 + $0x1a8] ss:$16 sps:$4 sm:$0xff]   ;;  %v2567_v14 = vld [vmem:[%s3719_s2 + $0x184] ss:$16 sps:$4 sm:$0xff]  }
 0x390   : > { %1588 = vst [vmem:[#allocation2] sm:$0x3] %v1587_v15  ;;  %v1591_v16 = vpack.c.bf16 %v1587_v15, %v1587_v15  ;;  %v2568_v15 = vld [vmem:[%s3719_s2 + $0x18c] ss:$16 sps:$4 sm:$0xff]  }
 0x392   : > { %1626 = vmatmul.mubr.bf16.vlgmr.msra.gmra.mxu0 %v1591_v16  ;;  %1667 = vmatmul.mubr.bf16.vlgmr.msra.gmra.mxu1 %v1591_v16  ;;  %v2569_v16 = vld [vmem:[%s3719_s2 + $0x180] ss:$16 sps:$4 sm:$0xff]  }
 0x393   : > { %1709 = vmatpush1.bf16.msra.mxu0 %v3336_v35  ;;  %1750 = vmatpush1.bf16.msra.mxu1 %v3339_v58  ;;  %v2514_v35 = vld [vmem:[#allocation4 + $0x48] ss:$16 sps:$4 sm:$0xff]   ;;  %v2515_v58 = vld [vmem:[#allocation4 + $0x24] ss:$16 sps:$4 sm:$0xff]  }
 0x394   : > { %1710 = vmatprep.subr.bf16.mxu0 %v3342_v60  ;;  %1751 = vmatprep.subr.bf16.mxu1 %v3345_v4  ;;  %v2516_v60 = vld [vmem:[#allocation4 + $0x2c] ss:$16 sps:$4 sm:$0xff]   ;;  %v2517_v4 = vld [vmem:[#allocation4 + $0x20] ss:$16 sps:$4 sm:$0xff]  }
 0x395   : > { %1740 = vmatprep.mubr.bf16.mxu0 %v3898_v36  ;;  %1781 = vmatprep.mubr.bf16.mxu1 %v3898_v36  ;;  %v2513_v36 = vld [vmem:[#allocation4 + $0x40] ss:$16 sps:$4 sm:$0xff]  }
 0x397   : > { %1711 = vmatpush1.bf16.msra.mxu0 %v3350_v0  ;;  %1752 = vmatpush1.bf16.msra.mxu1 %v3353_v52  ;;  %v2518_v0 = vld [vmem:[#allocation4 + $0x28] ss:$16 sps:$4 sm:$0xff]   ;;  %v2519_v52 = vld [vmem:[#allocation4 + $0x4] ss:$16 sps:$4 sm:$0xff]  }
 0x398   : > { %1712 = vmatprep.subr.bf16.mxu0 %v3356_v1  ;;  %1753 = vmatprep.subr.bf16.mxu1 %v3359_v24  ;;  %v2520_v1 = vld [vmem:[#allocation4 + $0xc] ss:$16 sps:$4 sm:$0xff]   ;;  %v1706_v24 = vld [vmem:[#allocation2] sm:$0x3] }
 0x39b   : > { %1713 = vmatpush1.bf16.msra.mxu0 %v3362_v23  ;;  %1754 = vmatpush1.bf16.msra.mxu1 %v3365_v5  ;;  %v2521_v23 = vld [vmem:[#allocation4] ss:$16 sps:$4 sm:$0xff]   ;;  %v2522_v5 = vld [vmem:[#allocation4 + $0x8] ss:$16 sps:$4 sm:$0xff]  }
 0x39c   : > { %1714 = vmatprep.subr.bf16.mxu0 %v3368_v6  ;;  %1755 = vmatprep.subr.bf16.mxu1 %v3371_v59  ;;  %v1707_v6 = vpack.c.bf16 %v1706_v24, %v1706_v24  ;;  %v2523_v59 = vld [vmem:[%s3719_s2 + $0xe4] ss:$16 sps:$4 sm:$0xff]   ;;  %v2578_v24 = vld [vmem:[%s3719_s2 + $0x148] ss:$16 sps:$4 sm:$0xff]  }
 0x39f   : > { %1715 = vmatpush1.bf16.msra.mxu0 %v3374_v62  ;;  %1756 = vmatpush1.bf16.msra.mxu1 %v3377_v50  ;;  %v2524_v62 = vld [vmem:[%s3719_s2 + $0xec] ss:$16 sps:$4 sm:$0xff]   ;;  %v2525_v50 = vld [vmem:[%s3719_s2 + $0xe0] ss:$16 sps:$4 sm:$0xff]  }
 0x3a0   : > { %1716 = vmatprep.subr.bf16.mxu0 %v3380_v55  ;;  %1757 = vmatprep.subr.bf16.mxu1 %v3383_v54  ;;  %v2526_v55 = vld [vmem:[%s3719_s2 + $0xe8] ss:$16 sps:$4 sm:$0xff]   ;;  %v2527_v54 = vld [vmem:[%s3719_s2 + $0xc4] ss:$16 sps:$4 sm:$0xff]  }
 0x3a3   : > { %1717 = vmatpush1.bf16.msra.mxu0 %v3386_v57  ;;  %1758 = vmatpush1.bf16.msra.mxu1 %v3389_v2  ;;  %v2528_v57 = vld [vmem:[%s3719_s2 + $0xcc] ss:$16 sps:$4 sm:$0xff]   ;;  %v2529_v2 = vld [vmem:[%s3719_s2 + $0xc0] ss:$16 sps:$4 sm:$0xff]  }
 0x3a4   : > { %1718 = vmatprep.subr.bf16.mxu0 %v3392_v56  ;;  %1759 = vmatprep.subr.bf16.mxu1 %v3395_v61  ;;  %v2530_v56 = vld [vmem:[%s3719_s2 + $0xc8] ss:$16 sps:$4 sm:$0xff]   ;;  %v2531_v61 = vld [vmem:[%s3719_s2 + $0xa4] ss:$16 sps:$4 sm:$0xff]  }
 0x3a7   : > { %1719 = vmatpush1.bf16.msra.mxu0 %v2513_v36  ;;  %1760 = vmatpush1.bf16.msra.mxu1 %v2514_v35  ;;  %v2570_v36 = vld [vmem:[%s3719_s2 + $0x188] ss:$16 sps:$4 sm:$0xff]   ;;  %v2571_v35 = vld [vmem:[%s3719_s2 + $0x164] ss:$16 sps:$4 sm:$0xff]  }
 0x3a8   : > { %1720 = vmatprep.subr.bf16.mxu0 %v2515_v58  ;;  %1761 = vmatprep.subr.bf16.mxu1 %v2516_v60  ;;  %v2572_v58 = vld [vmem:[%s3719_s2 + $0x16c] ss:$16 sps:$4 sm:$0xff]   ;;  %v2573_v60 = vld [vmem:[%s3719_s2 + $0x160] ss:$16 sps:$4 sm:$0xff]  }
 0x3ab   : > { %1721 = vmatpush1.bf16.msra.mxu0 %v2517_v4  ;;  %1762 = vmatpush1.bf16.msra.mxu1 %v2518_v0  ;;  %v2574_v4 = vld [vmem:[%s3719_s2 + $0x168] ss:$16 sps:$4 sm:$0xff]   ;;  %v2575_v0 = vld [vmem:[%s3719_s2 + $0x144] ss:$16 sps:$4 sm:$0xff]  }
 0x3ac   : > { %1722 = vmatprep.subr.bf16.mxu0 %v2519_v52  ;;  %1763 = vmatprep.subr.bf16.mxu1 %v2520_v1  ;;  %v2576_v52 = vld [vmem:[%s3719_s2 + $0x14c] ss:$16 sps:$4 sm:$0xff]   ;;  %v2577_v1 = vld [vmem:[%s3719_s2 + $0x140] ss:$16 sps:$4 sm:$0xff]  }
 0x3af   : > { %1723 = vmatpush1.bf16.msra.mxu0 %v2521_v23  ;;  %1764 = vmatpush1.bf16.msra.mxu1 %v2522_v5  ;;  %v2579_v23 = vld [vmem:[%s3719_s2 + $0x124] ss:$16 sps:$4 sm:$0xff]   ;;  %v2580_v5 = vld [vmem:[%s3719_s2 + $0x12c] ss:$16 sps:$4 sm:$0xff]  }
 0x3b0   : > { %1850 = vmatprep.subr.bf16.mxu0 %v2523_v59  ;;  %1891 = vmatprep.subr.bf16.mxu1 %v2524_v62  ;;  %v2582_v59 = vld [vmem:[%s3719_s2 + $0x128] ss:$16 sps:$4 sm:$0xff]   ;;  %v2583_v62 = vld [vmem:[%s3719_s2 + $0x104] ss:$16 sps:$4 sm:$0xff]  }
 0x3b2   : > { %1741 = vmatmul.mubr.bf16.vlgmr.msra.gmra.mxu0 %v1707_v6  ;;  %1782 = vmatmul.mubr.bf16.vlgmr.msra.gmra.mxu1 %v1707_v6  ;;  %v2581_v6 = vld [vmem:[%s3719_s2 + $0x120] ss:$16 sps:$4 sm:$0xff]  }
 0x3b3   : > { %1851 = vmatpush1.bf16.msra.mxu0 %v2525_v50  ;;  %1892 = vmatpush1.bf16.msra.mxu1 %v2526_v55  ;;  %v2584_v50 = vld [vmem:[%s3719_s2 + $0x10c] ss:$16 sps:$4 sm:$0xff]   ;;  %v2585_v55 = vld [vmem:[%s3719_s2 + $0x100] ss:$16 sps:$4 sm:$0xff]  }
 0x3b4   : > { %1852 = vmatprep.subr.bf16.mxu0 %v2527_v54  ;;  %1893 = vmatprep.subr.bf16.mxu1 %v2528_v57  ;;  %v2586_v54 = vld [vmem:[%s3719_s2 + $0x108] ss:$16 sps:$4 sm:$0xff]  }
 0x3b7   : > { %1853 = vmatpush1.bf16.msra.mxu0 %v2529_v2  ;;  %1894 = vmatpush1.bf16.msra.mxu1 %v2530_v56 }
 0x3b8   : > { %1854 = vmatprep.subr.bf16.mxu0 %v2531_v61  ;;  %1895 = vmatprep.subr.bf16.mxu1 %v2532_v17 }
 0x3bb   : > { %1855 = vmatpush1.bf16.msra.mxu0 %v2533_v18  ;;  %1896 = vmatpush1.bf16.msra.mxu1 %v2534_v19 }
 0x3bc   : > { %1856 = vmatprep.subr.bf16.mxu0 %v2535_v20  ;;  %1897 = vmatprep.subr.bf16.mxu1 %v2536_v21 }
 0x3bf   : > { %1857 = vmatpush1.bf16.msra.mxu0 %v2537_v22  ;;  %1898 = vmatpush1.bf16.msra.mxu1 %v2538_v3 }
 0x3c0   : > { %1858 = vmatprep.subr.bf16.mxu0 %v2539_v53  ;;  %1899 = vmatprep.subr.bf16.mxu1 %v2540_v25 }
 0x3c3   : > { %1859 = vmatpush1.bf16.msra.mxu0 %v2541_v26  ;;  %1900 = vmatpush1.bf16.msra.mxu1 %v2542_v27 }
 0x3c4   : > { %1860 = vmatprep.subr.bf16.mxu0 %v2543_v29  ;;  %1901 = vmatprep.subr.bf16.mxu1 %v2544_v30 }
 0x3c7   : > { %1861 = vmatpush1.bf16.msra.mxu0 %v2545_v31  ;;  %1902 = vmatpush1.bf16.msra.mxu1 %v2546_v32 }
 0x3c8   : > { %1862 = vmatprep.subr.bf16.mxu0 %v2547_v33  ;;  %1903 = vmatprep.subr.bf16.mxu1 %v2548_v34 }
 0x3cb   : > { %1863 = vmatpush1.bf16.msra.mxu0 %v2549_v38  ;;  %1904 = vmatpush1.bf16.msra.mxu1 %v2550_v39 }
 0x3cc   : > { %1864 = vmatprep.subr.bf16.mxu0 %v2551_v40  ;;  %1905 = vmatprep.subr.bf16.mxu1 %v2552_v42 }
 0x3cf   : > { %1865 = vmatpush1.bf16.msra.mxu0 %v2553_v43  ;;  %1906 = vmatpush1.bf16.msra.mxu1 %v2554_v44 }
 0x3d0   : > { %1866 = vmatprep.subr.bf16.mxu0 %v2555_v45  ;;  %1907 = vmatprep.subr.bf16.mxu1 %v2556_v46 }
 0x3d3   : > { %1867 = vmatpush2.bf16.msra.mxu0 %v2557_v47  ;;  %1908 = vmatpush2.bf16.msra.mxu1 %v2558_v48  ;;  %v1675_v47 = vld [vmem:[#allocation3 + $0x2] sm:$0x3] }
 0x3d4   : > { %1868 = vmatprep.subr.bf16.mxu0 %v2559_v49  ;;  %1909 = vmatprep.subr.bf16.mxu1 %v2560_v7 }
 0x3d7   : > { %1869 = vmatpush2.bf16.msra.mxu0 %v2561_v8  ;;  %1910 = vmatpush2.bf16.msra.mxu1 %v2562_v9 }
 0x3d8   : > { %1870 = vmatprep.subr.bf16.mxu0 %v2563_v10  ;;  %1911 = vmatprep.subr.bf16.mxu1 %v2564_v11 }
 0x3db   : > { %1871 = vmatpush2.bf16.msra.mxu0 %v2565_v12  ;;  %1912 = vmatpush2.bf16.msra.mxu1 %v2566_v13  ;;  %v2184_v12 = vld [vmem:[%s2708_s20 + $0x18] sm:$0xff] }
 0x3dc   : > { %1872 = vmatprep.subr.bf16.mxu0 %v2567_v14  ;;  %1913 = vmatprep.subr.bf16.mxu1 %v2568_v15 }
 0x3df   : > { %1873 = vmatpush2.bf16.msra.mxu0 %v2569_v16  ;;  %1914 = vmatpush2.bf16.msra.mxu1 %v2570_v36 }
 0x3e0   : > { %1874 = vmatprep.subr.bf16.mxu0 %v2571_v35  ;;  %1915 = vmatprep.subr.bf16.mxu1 %v2572_v58 }
 0x3e3   : > { %1875 = vmatpush2.bf16.msra.mxu0 %v2573_v60  ;;  %1916 = vmatpush2.bf16.msra.mxu1 %v2574_v4 }
 0x3e4   : > { %1876 = vmatprep.subr.bf16.mxu0 %v2575_v0  ;;  %1917 = vmatprep.subr.bf16.mxu1 %v2576_v52 }
 0x3e7   : > { %1877 = vmatpush2.bf16.msra.mxu0 %v2577_v1  ;;  %1918 = vmatpush2.bf16.msra.mxu1 %v2578_v24 }
 0x3e8   : > { %1878 = vmatprep.subr.bf16.mxu0 %v2579_v23  ;;  %1919 = vmatprep.subr.bf16.mxu1 %v2580_v5 }
 0x3eb   : > { %1879 = vmatpush2.bf16.msra.mxu0 %v2581_v6  ;;  %1920 = vmatpush2.bf16.msra.mxu1 %v2582_v59 }
 0x3ec   : > { %1880 = vmatprep.subr.bf16.mxu0 %v2583_v62  ;;  %1921 = vmatprep.subr.bf16.mxu1 %v2584_v50 }
 0x3ef   : > { %1881 = vmatpush2.bf16.msra.mxu0 %v2585_v55  ;;  %1922 = vmatpush2.bf16.msra.mxu1 %v2586_v54 }
 0x452   : > { %v1627_v57 = vpop.f32.mrf.mxu0  ;;  %v1668_v2 = vpop.f32.mrf.mxu1 }
 0x453   : > { %v1628_v56 = vadd.f32 %v1627_v57, %v3992_v51  ;;  %v1669_v29 = vadd.f32 %v1668_v2, %v3995_v41 }
 0x454   : > { %v1629_v61 = vpop.f32.mrf.mxu0  ;;  %v1670_v17 = vpop.f32.mrf.mxu1 }
 0x455   : > { %v2180_v18 = vmul.f32 -1.442695, %v1628_v56  ;;  %v1630_v19 = vadd.f32 %v1629_v61, %v3993_v28  ;;  %v1671_v25 = vadd.f32 %v1670_v17, %v3994_v37  ;;  %v1813_v61 = vld [vmem:[#allocation3] sm:$0x3] }
 0x456   : > { %v1631_v20 = vpop.f32.mrf.mxu0  ;;  %v1672_v21 = vpop.f32.mrf.mxu1 }
 0x457   : > { %2443 = vpow2.f32 %v2180_v18  ;;  %v2181_v22 = vmul.f32 -1.442695, %v1630_v19  ;;  %v2182_v26 = vmul.f32 -1.442695, %v1671_v25 }
 0x458   : > { %v1632_v3 = vpop.f32.mrf.mxu0  ;;  %v1673_v53 = vpop.f32.mrf.mxu1 }
 0x459   : > { %2445 = vpow2.f32 %v2181_v22 }
 0x45a   : > { %2447 = vpow2.f32 %v2182_v26 }
 0x464   : > { %v2444_v27 = vpop.eup %2443 }
 0x465   : > { %v1679_v30 = vadd.f32 1.0, %v2444_v27 }
 0x466   : > { %v2446_v31 = vpop.eup %2445 }
 0x467   : > { %2449 = vrcp.f32 %v1679_v30  ;;  %v1685_v32 = vadd.f32 1.0, %v2446_v31  ;;  %v2448_v38 = vpop.eup %2447 }
 0x468   : > { %2451 = vtanh.f32 %v1669_v29  ;;  %v1692_v48 = vadd.f32 1.0, %v2448_v38 }
 0x469   : > { %2453 = vrcp.f32 %v1685_v32 }
 0x46a   : > { %2455 = vrcp.f32 %v1692_v48 }
 0x472   : > { %v1742_v33 = vpop.f32.mrf.mxu0  ;;  %v1783_v34 = vpop.f32.mrf.mxu1 }
 0x474   : > { %v2450_v39 = vpop.eup %2449  ;;  %v1744_v40 = vpop.f32.mrf.mxu0 }
 0x475   : > { %v1785_v42 = vpop.f32.mrf.mxu1  ;;  %v2452_v43 = vpop.eup %2451  ;;  %v1794_v44 = vcombine.low %v1742_v33, %v1744_v40 }
 0x476   : > { %v1795_v45 = vcombine.low %v1783_v34, %v1785_v42  ;;  %v2454_v46 = vpop.eup %2453  ;;  %v1746_v49 = vpop.f32.mrf.mxu0  ;;  %v1696_v8 = vmul.f32 %v2452_v43, %v2450_v39 }
 0x477   : > { %v1787_v7 = vpop.f32.mrf.mxu1  ;;  %v1695_v9 = vmul.f32 %v2454_v46, %v1675_v47  ;;  %v1802_v10 = vrot.slane %v1794_v44, %v3210_v63  ;;  %v2456_v0 = vpop.eup %2455 }
 0x478   : > { %v1809_v11 = vrot.slane %v1795_v45, %v3210_v63  ;;  %v1747_v13 = vpop.f32.mrf.mxu0 }
 0x479   : > { %v1788_v14 = vpop.f32.mrf.mxu1  ;;  %v1697_v15 = vadd.f32 %v1696_v8, %v1695_v9 }
 0x47a   : > { %v1810_v16 = vcombine.low %v1802_v10, %v1809_v11 }
 0x47b   : > { %2457 = vtanh.f32 %v1697_v15  ;;  %1701 = vst [vmem:[#allocation3 + $0x2] sm:$0x3] %v1697_v15 }
 0x47c   : > { %v1812_v36 = vadd.f32 %v2184_v12, %v1810_v16 }
 0x47e   : > { %v2185_v35 = vmul.f32 -1.442695, %v1812_v36  ;;  %v1821_v58 = vrot.slane %v1812_v36, 2  ;;  %v1832_v4 = vrot.slane %v1812_v36, 6  ;;  %v1829_v23 = vrot.slane %v1812_v36, 4 }
 0x480   : > { %2459 = vpow2.f32 %v2185_v35  ;;  %v2186_v60 = vmul.f32 -1.442695, %v1821_v58  ;;  %v2187_v63 = vmul.f32 -1.442695, %v1832_v4 }
 0x482   : > { %2461 = vpow2.f32 %v2186_v60  ;;  %v1932_v7 = vld [vmem:[#allocation3 + $0x2] sm:$0x3] }
 0x483   : > { %2463 = vpow2.f32 %v2187_v63 }
 0x488   : > { %v2458_v52 = vpop.eup %2457 }
 0x489   : > { %v1699_v1 = vmul.f32 %v2458_v52, %v2456_v0 }
 0x48b   : > { %1700 = vst [vmem:[#allocation2 + $0x2] sm:$0x3] %v1699_v1  ;;  %2183 = vst [vmem:[%s2713_s23 + $0x4] sm:$0x3] %v1699_v1 }
 0x48d   : > { %v2460_v24 = vpop.eup %2459 }
 0x48e   : > { %v1817_v5 = vadd.f32 1.0, %v2460_v24 }
 0x48f   : > { %v2462_v6 = vpop.eup %2461 }
 0x490   : > { %2465 = vrcp.f32 %v1817_v5  ;;  %v1826_v59 = vadd.f32 1.0, %v2462_v6  ;;  %v2464_v55 = vpop.eup %2463 }
 0x491   : > { %2467 = vtanh.f32 %v1829_v23  ;;  %v1837_v56 = vadd.f32 1.0, %v2464_v55 }
 0x492   : > { %2469 = vrcp.f32 %v1826_v59  ;;  %v1847_v62 = vld [vmem:[#allocation2 + $0x2] sm:$0x3] }
 0x493   : > { %v1849_v50 = vpack.c.bf16 %v1847_v62, %v1847_v62  ;;  %2471 = vrcp.f32 %v1837_v56 }
 0x495   : > { %1882 = vmatprep.mubr.bf16.mxu0 %v1849_v50  ;;  %1923 = vmatprep.mubr.bf16.mxu1 %v1849_v50 }
 0x49d   : > { %v2466_v54 = vpop.eup %2465 }
 0x49e   : > { %v2468_v57 = vpop.eup %2467 }
 0x49f   : > { %v2470_v2 = vpop.eup %2469  ;;  %v1841_v18 = vmul.f32 %v2468_v57, %v2466_v54 }
 0x4a0   : > { %v1840_v17 = vmul.f32 %v2470_v2, %v1813_v61  ;;  %v2472_v20 = vpop.eup %2471 }
 0x4a2   : > { %v1842_v19 = vadd.f32 %v1841_v18, %v1840_v17 }
 0x4a4   : > { %2473 = vtanh.f32 %v1842_v19  ;;  %1846 = vst [vmem:[#allocation3] sm:$0x3] %v1842_v19 }
 0x4b1   : > { %v2474_v21 = vpop.eup %2473 }
 0x4b2   : > { %v1844_v22 = vmul.f32 %v2474_v21, %v2472_v20 }
 0x4b4   : > { %1845 = vst [vmem:[#allocation2] sm:$0x3] %v1844_v22  ;;  %v1848_v3 = vpack.c.bf16 %v1844_v22, %v1844_v22 }
 0x4b6   : > { %1883 = vmatmul.mubr.bf16.vlgmr.msra.gmra.mxu0 %v1848_v3  ;;  %1924 = vmatmul.mubr.bf16.vlgmr.msra.gmra.mxu1 %v1848_v3 }
 0x576   : > { %v1884_v53 = vpop.f32.mrf.mxu0  ;;  %v1925_v25 = vpop.f32.mrf.mxu1 }
 0x577   : > { %v1885_v26 = vadd.f32 %v1884_v53, %v3992_v51  ;;  %v1926_v44 = vadd.f32 %v1925_v25, %v3995_v41 }
 0x578   : > { %v1886_v27 = vpop.f32.mrf.mxu0  ;;  %v1927_v29 = vpop.f32.mrf.mxu1 }
 0x579   : > { %v2188_v30 = vmul.f32 -1.442695, %v1885_v26  ;;  %v1887_v31 = vadd.f32 %v1886_v27, %v3993_v28  ;;  %v1928_v40 = vadd.f32 %v1927_v29, %v3994_v37 }
 0x57a   : > { %v1888_v32 = vpop.f32.mrf.mxu0  ;;  %v1929_v33 = vpop.f32.mrf.mxu1 }
 0x57b   : > { %2475 = vpow2.f32 %v2188_v30  ;;  %v2189_v34 = vmul.f32 -1.442695, %v1887_v31  ;;  %v2190_v42 = vmul.f32 -1.442695, %v1928_v40 }
 0x57c   : > { %v1889_v38 = vpop.f32.mrf.mxu0  ;;  %v1930_v39 = vpop.f32.mrf.mxu1 }
 0x57d   : > { %2477 = vpow2.f32 %v2189_v34 }
 0x57e   : > { %2479 = vpow2.f32 %v2190_v42 }
 0x588   : > { %v2476_v43 = vpop.eup %2475 }
 0x589   : > { %v1936_v45 = vadd.f32 1.0, %v2476_v43 }
 0x58a   : > { %v2478_v51 = vpop.eup %2477 }
 0x58b   : > { %2481 = vrcp.f32 %v1936_v45  ;;  %v1942_v46 = vadd.f32 1.0, %v2478_v51  ;;  %v2480_v28 = vpop.eup %2479 }
 0x58c   : > { %2483 = vtanh.f32 %v1926_v44  ;;  %v1949_v8 = vadd.f32 1.0, %v2480_v28 }
 0x58d   : > { %2485 = vrcp.f32 %v1942_v46 }
 0x58e   : > { %2487 = vrcp.f32 %v1949_v8 }
 0x598   : > { %v2482_v47 = vpop.eup %2481 }
 0x599   : > { %v2484_v48 = vpop.eup %2483 }
 0x59a   : > { %v2486_v49 = vpop.eup %2485  ;;  %v1953_v9 = vmul.f32 %v2484_v48, %v2482_v47 }
 0x59b   : > { %v1952_v37 = vmul.f32 %v2486_v49, %v1932_v7  ;;  %v2488_v41 = vpop.eup %2487 }
 0x59d   : > { %v1954_v10 = vadd.f32 %v1953_v9, %v1952_v37 }
 0x59f   : > { %2489 = vtanh.f32 %v1954_v10  ;;  %1958 = vst [vmem:[#allocation3 + $0x2] sm:$0x3] %v1954_v10 }
 0x5ab   : > { %1964 = sbr.rel (%p2192_p2) target bundleno = 1464 (0x5b8), region = 56 }
 0x5ac   : > { %v2490_v11 = vpop.eup %2489 }
 0x5ad   : > { %v1956_v12 = vmul.f32 %v2490_v11, %v2488_v41 }
 0x5af   : > { %1957 = vst [vmem:[#allocation2 + $0x2] sm:$0x3] %v1956_v12  ;;  %2191 = vst [vmem:[%s2713_s23 + $0x6] sm:$0x3] %v1956_v12 }
 0x5b0   : > { %v1969_v14 = vld [vmem:[#allocation3] sm:$0xf]  }
 0x5b1   : > { %1971 = vst [vmem:[%s3725_s8] sm:$0xf] %v1969_v14  }
 0x5b6   : > { %v1965_v13 = vld [vmem:[#allocation2] sm:$0xf]  }
 0x5b7   : > { %1967 = vst [vmem:[%s3724_s7] sm:$0xf] %v1965_v13  }
 0x5b8 PF: > { %s20_s27 = sadd.s32 1, %s2623_s27  }
 0x5b9   : > { %p17_p3 = scmp.ge.s32.totalorder %s20_s27, 4  }
 0x5bb   :  { %19 = sbr.rel (!%p17_p3) target bundleno = 1 (0x1), region = 111 }
 0x5c0   :  { %2007 = vsyncpa [#allocation5], 1 }
 0x5c1   :  { %2009 = vsyncpa [#allocation5 + $0x1], 1 }

</bundles_post_ra>
